<compile_context>
chip_gen: v7x
topology: tpu7x:2x2x1
jax: 0.10.0
libtpu: 0.0.40
codegen_flags: <defaults>
</compile_context>

<pallas_src>
import jax
import jax.numpy as jnp
from jax import lax
from jax.experimental import pallas as pl
from jax.experimental.pallas import tpu as pltpu


LANE = 128   # channel dims padded to the TPU lane width
SUB = 8      # W padded to a multiple of the sublane width
HPAD = 8     # aligned zero borders (columns) of the padded-h1 scratch


def _round_up(x, m):
    return (x + m - 1) // m * m


# ---------------------------------------------------------------------------
# Fused kernel: conv1(1x1)+BN+ReLU -> conv2(3x3)+BN+ReLU -> (+residual)
# ---------------------------------------------------------------------------
def _make_kernel(th, H, W, Wp, cin_p, hid_p, cout_p, use_add):
    def kernel(xc_ref, xt_ref, xb_ref, w1_ref, b1_ref, w2_ref, b2_ref,
               o_ref, hp_ref, slab_ref, acc_ref):
        row0 = pl.program_id(1) * th          # first output row of this block

        w1 = w1_ref[...]                      # (cin_p, hid_p) bf16
        b1 = b1_ref[...]                      # (1, hid_p)     f32

        def conv1(x2d):                       # (M, cin_p) f32 -> (M, hid_p) f32
            h = jnp.dot(x2d.astype(jnp.bfloat16), w1,
                        preferred_element_type=jnp.float32)
            return jnp.maximum(h + b1, 0.0)   # folded BN bias + ReLU (f32)

        # ---- conv1 directly on the center block and the two halo rows ------
        h1c = conv1(xc_ref[0].reshape(th * Wp, cin_p)).reshape(th, Wp, hid_p)
        h1t = conv1(xt_ref[0].reshape(Wp, cin_p)).reshape(1, Wp, hid_p)
        h1b = conv1(xb_ref[0].reshape(Wp, cin_p)).reshape(1, Wp, hid_p)

        # h1 rows/cols outside the real image must be ZERO (conv2's zero
        # padding, clamped halos, the cdiv row tail and the W sublane pad).
        r = (row0 - 1) + lax.broadcasted_iota(jnp.int32, (th + 2, 1, 1), 0)
        ok = (r >= 0) & (r < H)
        if Wp > W:
            ok = ok & (lax.broadcasted_iota(jnp.int32, (1, Wp, 1), 1) < W)
        h1t = jnp.where(ok[0:1], h1t, 0.0)
        h1c = jnp.where(ok[1:th + 1], h1c, 0.0)
        h1b = jnp.where(ok[th + 1:th + 2], h1b, 0.0)

        # ---- padded-h1 scratch: only the aligned borders need (re)zeroing --
        z = jnp.zeros((th + 2, HPAD, hid_p), jnp.bfloat16)
        hp_ref[:, 0:HPAD, :] = z
        hp_ref[:, HPAD + Wp:HPAD + Wp + HPAD, :] = z
        hp_ref[0:1, HPAD:HPAD + Wp, :] = h1t.astype(jnp.bfloat16)
        hp_ref[1:th + 1, HPAD:HPAD + Wp, :] = h1c.astype(jnp.bfloat16)
        hp_ref[th + 1:th + 2, HPAD:HPAD + Wp, :] = h1b.astype(jnp.bfloat16)

        # ---- kx-im2col slab: 3 horizontal taps concatenated along lanes ----
        # slab[r, xo, kx*hid:(kx+1)*hid] = h1_pad[r, xo + kx - 1, :]
        # (reads are sublane-shifted vld; writes are aligned full-lane vst)
        for kx in range(3):
            slab_ref[:, :, kx * hid_p:(kx + 1) * hid_p] = (
                hp_ref[:, HPAD - 1 + kx:HPAD - 1 + kx + Wp, :])

        # ---- conv2 (3x3, pad 1): 3 MXU matmuls with K = 3*hid, accumulated
        # into a VMEM scratch ref (MRB-friendly accumulate on v7x) ----------
        for ky in range(3):
            tap = jnp.dot(slab_ref[ky:ky + th].reshape(th * Wp, 3 * hid_p),
                          w2_ref[ky], preferred_element_type=jnp.float32)
            if ky == 0:
                acc_ref[...] = tap
            else:
                acc_ref[...] += tap

        # ---- f32 epilogue: + folded-BN bias, ReLU, residual AFTER ReLU -----
        y = jnp.maximum(acc_ref[...] + b2_ref[...], 0.0)
        if use_add:
            y = y + xc_ref[0].reshape(th * Wp, cin_p)
        o_ref[...] = y.reshape(1, th, Wp, cout_p).astype(o_ref.dtype)

    return kernel


# ---------------------------------------------------------------------------
# Generation-aware VMEM budgeting / row-tile selection
# ---------------------------------------------------------------------------
def _vmem_limit_bytes():
    """~48 MiB on v7x (64 MiB/TC physical), ~96 MiB on v5e/v6e (128 MiB)."""
    try:
        phys = int(pltpu.get_tpu_info().vmem_capacity_bytes)
    except Exception:
        phys = 64 << 20                  # conservative fallback (v7x per-TC)
    return int(min(phys * 3 // 4, 112 << 20))


def _step_vmem_bytes(th, Wp, cin_p, hid_p, cout_p):
    """Honest per-grid-step VMEM estimate: double-buffered I/O blocks,
    resident weights, all scratch slabs AND the in-kernel value temps."""
    f32, bf16 = 4, 2
    rows = th + 2
    blocks = 2 * (rows * Wp * cin_p * f32            # x center + 2 halo rows
                  + th * Wp * cout_p * f32)          # output tile
    weights = 2 * ((cin_p * hid_p + 9 * hid_p * cout_p) * bf16
                   + (hid_p + cout_p) * f32)
    scratch = (rows * (Wp + 2 * HPAD) * hid_p * bf16     # padded h1
               + rows * Wp * 3 * hid_p * bf16            # kx-im2col slab
               + th * Wp * cout_p * f32)                 # conv2 accumulator
    temps = (rows * Wp * hid_p * (f32 + bf16)            # h1 value + bf16 cast
             + th * Wp * 3 * hid_p * bf16                # slab row-window load
             + th * Wp * (cout_p * f32 + cin_p * bf16))  # epilogue y, x cast
    return blocks + weights + scratch + temps


def _pick_row_tile(N, H, Wp, cin_p, hid_p, cout_p, budget):
    th = min(_round_up(H, SUB), 512)
    while th > SUB and _step_vmem_bytes(th, Wp, cin_p, hid_p, cout_p) > budget:
        th -= SUB
    while th > 1 and _step_vmem_bytes(th, Wp, cin_p, hid_p, cout_p) > budget:
        th -= 1
    if N == 1 and H > SUB:
        # v7x megacore: guarantee >=2 parallel row blocks so both TCs work.
        th = min(th, _round_up(pl.cdiv(H, 2), SUB))
    return max(int(th), 1)


# ---------------------------------------------------------------------------
# pallas_call on the padded NHWC layout (use directly inside a network to
# avoid the NCHW<->NHWC / padding HBM round trips between layers).
# ---------------------------------------------------------------------------
def _bottleneck_nhwc_padded(x_p, w1_p, b1_p, w2_p, b2_p, *, th, H, W,
                            use_add, vmem_limit):
    N, Hp, Wp, cin_p = x_p.shape
    hid_p = w2_p.shape[1] // 3
    cout_p = w2_p.shape[2]
    assert Hp % th == 0
    num_hb = Hp // th

    kernel = _make_kernel(th, H, W, Wp, cin_p, hid_p, cout_p, use_add)

    grid_spec = pltpu.PrefetchScalarGridSpec(
        num_scalar_prefetch=0,
        grid=(N, num_hb),
        in_specs=[
            # center rows of this block
            pl.BlockSpec((1, th, Wp, cin_p), lambda n, hb: (n, hb, 0, 0)),
            # 1-row top halo (clamped; masked to zero in-kernel when hb == 0)
            pl.BlockSpec((1, 1, Wp, cin_p),
                         lambda n, hb: (n, jnp.maximum(hb * th - 1, 0), 0, 0)),
            # 1-row bottom halo (clamped; masked when past the real image)
            pl.BlockSpec((1, 1, Wp, cin_p),
                         lambda n, hb: (n, jnp.minimum(hb * th + th, Hp - 1), 0, 0)),
            # TODO(synk): add pipeline_mode=pl.Buffered(1) on the 4 grid-
            # invariant weight/bias specs (halves their VMEM residency) once
            # single-buffered pipeline_mode is confirmed on the target jax rev.
            pl.BlockSpec((cin_p, hid_p), lambda n, hb: (0, 0)),          # w1 (bf16)
            pl.BlockSpec((1, hid_p), lambda n, hb: (0, 0)),              # b1 (f32)
            pl.BlockSpec((3, 3 * hid_p, cout_p), lambda n, hb: (0, 0, 0)),  # w2 (bf16)
            pl.BlockSpec((1, cout_p), lambda n, hb: (0, 0)),             # b2 (f32)
        ],
        out_specs=pl.BlockSpec((1, th, Wp, cout_p), lambda n, hb: (n, hb, 0, 0)),
        scratch_shapes=[
            pltpu.VMEM((th + 2, Wp + 2 * HPAD, hid_p), jnp.bfloat16),  # padded h1
            pltpu.VMEM((th + 2, Wp, 3 * hid_p), jnp.bfloat16),         # kx-im2col slab
            pltpu.VMEM((th * Wp, cout_p), jnp.float32),                # conv2 acc
        ],
    )

    return pl.pallas_call(
        kernel,
        out_shape=jax.ShapeDtypeStruct((N, Hp, Wp, cout_p), jnp.float32),
        grid_spec=grid_spec,
        compiler_params=pltpu.CompilerParams(
            dimension_semantics=("parallel", "parallel"),
            vmem_limit_bytes=int(vmem_limit),
        ),
    )(x_p, x_p, x_p, w1_p, b1_p, w2_p, b2_p)


# ---------------------------------------------------------------------------
# Weight prep (fold eval-mode BN scale, pad to lanes, pack conv2 per-ky rows)
# ---------------------------------------------------------------------------
def _prep_weights(params, cin, hidc, ouc, cin_p, hid_p, cout_p):
    w1_mat = jnp.transpose(params["w1"][:, :, 0, 0], (1, 0)) * params["scale1"][None, :]
    w1_p = (jnp.zeros((cin_p, hid_p), jnp.float32)
            .at[:cin, :hidc].set(w1_mat).astype(jnp.bfloat16))
    # w2 packed as (ky, kx*hid + ci, co) to match the kx-concat slab layout.
    w2_t = (jnp.transpose(params["w2"], (2, 3, 1, 0)) *
            params["scale2"][None, None, None, :])
    w2_p = (jnp.zeros((3, 3, hid_p, cout_p), jnp.float32)
            .at[:, :, :hidc, :ouc].set(w2_t)
            .reshape(3, 3 * hid_p, cout_p).astype(jnp.bfloat16))
    b1_p = jnp.zeros((1, hid_p), jnp.float32).at[0, :hidc].set(params["bias1"])
    b2_p = jnp.zeros((1, cout_p), jnp.float32).at[0, :ouc].set(params["bias2"])
    return w1_p, b1_p, w2_p, b2_p


# ---------------------------------------------------------------------------
# NCHW wrapper (PyTorch parity for the standalone test)
# ---------------------------------------------------------------------------
def bottleneck_forward(x_nchw, params, use_add, row_tile=None):
    N, Cin, H, W = x_nchw.shape
    w1, w2 = params["w1"], params["w2"]
    ouc, hidc = w2.shape[0], w2.shape[1]
    assert w1.shape[1] == Cin
    # The PyTorch forward is only shape-consistent when conv1's output channel
    # count equals conv2's input channel count.
    assert w1.shape[0] == hidc
    assert (not use_add) or Cin == ouc

    cin_p = _round_up(Cin, LANE)
    hid_p = _round_up(hidc, LANE)
    cout_p = _round_up(ouc, LANE)
    if use_add:
        cin_p = cout_p = max(cin_p, cout_p)
    Wp = _round_up(W, SUB)

    w1_p, b1_p, w2_p, b2_p = _prep_weights(params, Cin, hidc, ouc,
                                           cin_p, hid_p, cout_p)

    vmem_limit = _vmem_limit_bytes()
    th = (row_tile if row_tile is not None else
          _pick_row_tile(N, H, Wp, cin_p, hid_p, cout_p, vmem_limit * 3 // 4))
    th = max(1, min(int(th), H))
    num_hb = pl.cdiv(H, th)
    Hp = num_hb * th

    # NCHW -> NHWC, pad channels to lanes, W to sublanes, H to the row tile.
    # (In a real network keep this padded NHWC layout across layers instead.)
    x_nhwc = jnp.transpose(x_nchw, (0, 2, 3, 1))
    x_p = jnp.pad(x_nhwc, ((0, 0), (0, Hp - H), (0, Wp - W), (0, cin_p - Cin)))

    y_p = _bottleneck_nhwc_padded(x_p, w1_p, b1_p, w2_p, b2_p, th=th, H=H, W=W,
                                  use_add=use_add, vmem_limit=vmem_limit)
    return jnp.transpose(y_p[:, :H, :W, :ouc], (0, 3, 1, 2))


# ---------------------------------------------------------------------------
# Deterministic synthetic parameters (eval-mode BatchNorm) + JAX reference
# ---------------------------------------------------------------------------
def fold_bn(gamma, beta, running_mean, running_var, eps=1e-5):
    scale = gamma / jnp.sqrt(running_var + eps)
    return scale, beta - running_mean * scale


def make_params(key, inc, ouc, expansion):
    hidc = int(inc * expansion)
    ks = jax.random.split(key, 6)
    w1 = 0.1 * jax.random.normal(ks[0], (ouc, inc, 1, 1), jnp.float32)
    w2 = 0.1 * jax.random.normal(ks[1], (ouc, hidc, 3, 3), jnp.float32)
    g1 = 1.0 + 0.1 * jax.random.normal(ks[2], (ouc,), jnp.float32)
    b1 = 0.1 * jax.random.normal(ks[3], (ouc,), jnp.float32)
    g2 = 1.0 + 0.1 * jax.random.normal(ks[4], (ouc,), jnp.float32)
    b2 = 0.1 * jax.random.normal(ks[5], (ouc,), jnp.float32)
    # TODO(synk): BatchNorm running stats at PyTorch defaults, eval mode only.
    scale1, bias1 = fold_bn(g1, b1, jnp.zeros((ouc,)), jnp.ones((ouc,)))
    scale2, bias2 = fold_bn(g2, b2, jnp.zeros((ouc,)), jnp.ones((ouc,)))
    return {"w1": w1, "scale1": scale1, "bias1": bias1,
            "w2": w2, "scale2": scale2, "bias2": bias2}


def ref_bottleneck(x, params, use_add):
    def conv_bn_relu(x, w, scale, bias, pad):
        y = lax.conv_general_dilated(
            x, w, (1, 1), [(pad, pad), (pad, pad)],
            dimension_numbers=("NCHW", "OIHW", "NCHW"))
        y = y * scale[None, :, None, None] + bias[None, :, None, None]
        return jnp.maximum(y, 0.0)
    h = conv_bn_relu(x, params["w1"], params["scale1"], params["bias1"], 0)
    y = conv_bn_relu(h, params["w2"], params["scale2"], params["bias2"], 1)
    if use_add:
        y = y + x
    return y


if __name__ == "__main__":
    key = jax.random.PRNGKey(0)
    kx1, kp1, kx2, kp2 = jax.random.split(key, 4)

    # bf16 MXU operands (f32 accumulate/epilogue) => compare at ~1e-2 tolerance.
    RTOL = ATOL = 2e-2

    # Config 1: Bottleneck(inc=4, ouc=4, shortcut=True, expansion=1.0) so the
    # PyTorch forward is shape-consistent (hidc == ouc) and the residual runs.
    inc, ouc, expansion, shortcut = 4, 4, 1.0, True
    use_add = shortcut and inc == ouc
    x = jax.random.normal(kx1, (2, inc, 16, 16), jnp.float32)   # NCHW
    params = make_params(kp1, inc, ouc, expansion)
    y_ref = jax.block_until_ready(ref_bottleneck(x, params, use_add))
    # auto row tile, multi-block halos, and a non-divisible (cdiv tail) tiling
    for rt in (None, 8, 6):
        y = jax.block_until_ready(
            bottleneck_forward(x, params, use_add, row_tile=rt))
        assert y.shape == y_ref.shape == (2, ouc, 16, 16)
        assert jnp.allclose(y, y_ref, rtol=RTOL, atol=ATOL), \
            f"mismatch vs JAX reference (row_tile={rt})"

    # Config 2: no residual (inc != ouc), expansion=2.0 so hidc == ouc,
    # batch 1 (exercises the 2-block megacore split) and W=12 (sublane pad).
    inc2, ouc2 = 4, 8
    x2 = jax.random.normal(kx2, (1, inc2, 12, 12), jnp.float32)
    params2 = make_params(kp2, inc2, ouc2, 2.0)
    y2 = jax.block_until_ready(bottleneck_forward(x2, params2, use_add=False))
    y2_ref = jax.block_until_ready(ref_bottleneck(x2, params2, use_add=False))
    assert y2.shape == y2_ref.shape == (1, ouc2, 12, 12)
    assert jnp.allclose(y2, y2_ref, rtol=RTOL, atol=ATOL), "mismatch (config 2)"

    print("KERNEL_OK")
</pallas_src>

<mosaic_0001>
module attributes {stable_mosaic.version = 11 : i64} {
  func.func @kernel(%arg0: i32, %arg1: i32, %arg2: memref<1x16x16x128xf32, #tpu.memory_space<vmem>>, %arg3: memref<1x1x16x128xf32, #tpu.memory_space<vmem>>, %arg4: memref<1x1x16x128xf32, #tpu.memory_space<vmem>>, %arg5: memref<128x128xbf16, #tpu.memory_space<vmem>>, %arg6: memref<1x128xf32, #tpu.memory_space<vmem>>, %arg7: memref<3x384x128xbf16, #tpu.memory_space<vmem>>, %arg8: memref<1x128xf32, #tpu.memory_space<vmem>>, %arg9: memref<1x16x16x128xf32, #tpu.memory_space<vmem>>, %arg10: memref<18x32x128xbf16, #tpu.memory_space<vmem>>, %arg11: memref<18x16x384xbf16, #tpu.memory_space<vmem>>, %arg12: memref<256x128xf32, #tpu.memory_space<vmem>>) attributes {dimension_semantics = [#tpu.dimension_semantics<parallel>, #tpu.dimension_semantics<parallel>], iteration_bounds = array<i64: 2, 1>, scalar_prefetch = 0 : i64, scratch_operands = 3 : i64, tpu.core_type = #tpu.core_type<tc>, window_params = [{transform_indices = @transform_0, window_bounds = array<i64: 1, 16, 16, 128>}, {transform_indices = @transform_1, window_bounds = array<i64: 1, 1, 16, 128>}, {transform_indices = @transform_2, window_bounds = array<i64: 1, 1, 16, 128>}, {pipeline_mode = #tpu.pipeline_mode<synchronous>, transform_indices = @transform_3, window_bounds = array<i64: 128, 128>}, {pipeline_mode = #tpu.pipeline_mode<synchronous>, transform_indices = @transform_4, window_bounds = array<i64: 1, 128>}, {pipeline_mode = #tpu.pipeline_mode<synchronous>, transform_indices = @transform_5, window_bounds = array<i64: 3, 384, 128>}, {pipeline_mode = #tpu.pipeline_mode<synchronous>, transform_indices = @transform_6, window_bounds = array<i64: 1, 128>}, {transform_indices = @transform_7, window_bounds = array<i64: 1, 16, 16, 128>}]} {
    %c16_i32 = arith.constant 16 : i32
    %0 = arith.muli %arg1, %c16_i32 : i32
    %c0 = arith.constant 0 : index
    %c0_0 = arith.constant 0 : index
    %1 = vector.load %arg5[%c0, %c0_0] : memref<128x128xbf16, #tpu.memory_space<vmem>>, vector<128x128xbf16>
    %c0_1 = arith.constant 0 : index
    %c0_2 = arith.constant 0 : index
    %2 = vector.load %arg6[%c0_1, %c0_2] : memref<1x128xf32, #tpu.memory_space<vmem>>, vector<1x128xf32>
    %c0_3 = arith.constant 0 : index
    %c0_4 = arith.constant 0 : index
    %c0_5 = arith.constant 0 : index
    %c0_6 = arith.constant 0 : index
    %3 = vector.load %arg2[%c0_3, %c0_4, %c0_5, %c0_6] : memref<1x16x16x128xf32, #tpu.memory_space<vmem>>, vector<1x16x16x128xf32>
    %4 = vector.shape_cast %3 : vector<1x16x16x128xf32> to vector<16x16x128xf32>
    %5 = vector.shape_cast %4 : vector<16x16x128xf32> to vector<256x128xf32>
    %6 = arith.truncf %5 : vector<256x128xf32> to vector<256x128xbf16>
    %cst = arith.constant dense<0.000000e+00> : vector<256x128xf32>
    %7 = tpu.matmul %6, %1, %cst {dimension_numbers = #tpu.dot_dimension_numbers<[1], [0], [0], [1], [0, 0, 1, 1], [], []>} : vector<256x128xbf16>, vector<128x128xbf16>, vector<256x128xf32> -> vector<256x128xf32>
    %8 = vector.broadcast %2 : vector<1x128xf32> to vector<256x128xf32>
    %9 = arith.addf %7, %8 : vector<256x128xf32>
    %cst_7 = arith.constant 0.000000e+00 : f32
    %10 = vector.broadcast %cst_7 : f32 to vector<256x128xf32>
    %11 = arith.maximumf %9, %10 : vector<256x128xf32>
    %12 = vector.shape_cast %11 : vector<256x128xf32> to vector<16x16x128xf32>
    %c0_8 = arith.constant 0 : index
    %c0_9 = arith.constant 0 : index
    %c0_10 = arith.constant 0 : index
    %c0_11 = arith.constant 0 : index
    %13 = vector.load %arg3[%c0_8, %c0_9, %c0_10, %c0_11] : memref<1x1x16x128xf32, #tpu.memory_space<vmem>>, vector<1x1x16x128xf32>
    %14 = vector.shape_cast %13 : vector<1x1x16x128xf32> to vector<1x16x128xf32>
    %15 = vector.shape_cast %14 : vector<1x16x128xf32> to vector<16x128xf32>
    %16 = arith.truncf %15 : vector<16x128xf32> to vector<16x128xbf16>
    %cst_12 = arith.constant dense<0.000000e+00> : vector<16x128xf32>
    %17 = tpu.matmul %16, %1, %cst_12 {dimension_numbers = #tpu.dot_dimension_numbers<[1], [0], [0], [1], [0, 0, 1, 1], [], []>} : vector<16x128xbf16>, vector<128x128xbf16>, vector<16x128xf32> -> vector<16x128xf32>
    %18 = vector.broadcast %2 : vector<1x128xf32> to vector<16x128xf32>
    %19 = arith.addf %17, %18 : vector<16x128xf32>
    %cst_13 = arith.constant 0.000000e+00 : f32
    %20 = vector.broadcast %cst_13 : f32 to vector<16x128xf32>
    %21 = arith.maximumf %19, %20 : vector<16x128xf32>
    %22 = vector.shape_cast %21 : vector<16x128xf32> to vector<1x16x128xf32>
    %c0_14 = arith.constant 0 : index
    %c0_15 = arith.constant 0 : index
    %c0_16 = arith.constant 0 : index
    %c0_17 = arith.constant 0 : index
    %23 = vector.load %arg4[%c0_14, %c0_15, %c0_16, %c0_17] : memref<1x1x16x128xf32, #tpu.memory_space<vmem>>, vector<1x1x16x128xf32>
    %24 = vector.shape_cast %23 : vector<1x1x16x128xf32> to vector<1x16x128xf32>
    %25 = vector.shape_cast %24 : vector<1x16x128xf32> to vector<16x128xf32>
    %26 = arith.truncf %25 : vector<16x128xf32> to vector<16x128xbf16>
    %cst_18 = arith.constant dense<0.000000e+00> : vector<16x128xf32>
    %27 = tpu.matmul %26, %1, %cst_18 {dimension_numbers = #tpu.dot_dimension_numbers<[1], [0], [0], [1], [0, 0, 1, 1], [], []>} : vector<16x128xbf16>, vector<128x128xbf16>, vector<16x128xf32> -> vector<16x128xf32>
    %28 = vector.broadcast %2 : vector<1x128xf32> to vector<16x128xf32>
    %29 = arith.addf %27, %28 : vector<16x128xf32>
    %cst_19 = arith.constant 0.000000e+00 : f32
    %30 = vector.broadcast %cst_19 : f32 to vector<16x128xf32>
    %31 = arith.maximumf %29, %30 : vector<16x128xf32>
    %32 = vector.shape_cast %31 : vector<16x128xf32> to vector<1x16x128xf32>
    %c1_i32 = arith.constant 1 : i32
    %33 = arith.subi %0, %c1_i32 : i32
    %34 = tpu.iota {dimensions = array<i32: 0>} : vector<18x1x1xi32>
    %35 = vector.broadcast %33 : i32 to vector<18x1x1xi32>
    %36 = arith.addi %35, %34 : vector<18x1x1xi32>
    %c0_i32 = arith.constant 0 : i32
    %37 = vector.broadcast %c0_i32 : i32 to vector<18x1x1xi32>
    %38 = arith.cmpi sge, %36, %37 : vector<18x1x1xi32>
    %c16_i32_20 = arith.constant 16 : i32
    %39 = vector.broadcast %c16_i32_20 : i32 to vector<18x1x1xi32>
    %40 = arith.cmpi slt, %36, %39 : vector<18x1x1xi32>
    %41 = arith.andi %38, %40 : vector<18x1x1xi1>
    %42 = vector.extract_strided_slice %41 {offsets = [0, 0, 0], sizes = [1, 1, 1], strides = [1, 1, 1]} : vector<18x1x1xi1> to vector<1x1x1xi1>
    %cst_21 = arith.constant 0.000000e+00 : f32
    %43 = vector.shape_cast %42 : vector<1x1x1xi1> to vector<1x1x1xi1>
    %44 = vector.broadcast %43 : vector<1x1x1xi1> to vector<1x16x128xi1>
    %45 = vector.broadcast %cst_21 : f32 to vector<1x16x128xf32>
    %46 = arith.select %44, %22, %45 : vector<1x16x128xi1>, vector<1x16x128xf32>
    %47 = vector.extract_strided_slice %41 {offsets = [1, 0, 0], sizes = [16, 1, 1], strides = [1, 1, 1]} : vector<18x1x1xi1> to vector<16x1x1xi1>
    %cst_22 = arith.constant 0.000000e+00 : f32
    %48 = vector.shape_cast %47 : vector<16x1x1xi1> to vector<16x1x1xi1>
    %49 = vector.broadcast %48 : vector<16x1x1xi1> to vector<16x16x128xi1>
    %50 = vector.broadcast %cst_22 : f32 to vector<16x16x128xf32>
    %51 = arith.select %49, %12, %50 : vector<16x16x128xi1>, vector<16x16x128xf32>
    %52 = vector.extract_strided_slice %41 {offsets = [17, 0, 0], sizes = [1, 1, 1], strides = [1, 1, 1]} : vector<18x1x1xi1> to vector<1x1x1xi1>
    %cst_23 = arith.constant 0.000000e+00 : f32
    %53 = vector.shape_cast %52 : vector<1x1x1xi1> to vector<1x1x1xi1>
    %54 = vector.broadcast %53 : vector<1x1x1xi1> to vector<1x16x128xi1>
    %55 = vector.broadcast %cst_23 : f32 to vector<1x16x128xf32>
    %56 = arith.select %54, %32, %55 : vector<1x16x128xi1>, vector<1x16x128xf32>
    %cst_24 = arith.constant 0.000000e+00 : bf16
    %57 = vector.broadcast %cst_24 : bf16 to vector<18x8x128xbf16>
    %c0_25 = arith.constant 0 : index
    %c0_26 = arith.constant 0 : index
    %c0_27 = arith.constant 0 : index
    %58 = vector.load %arg10[%c0_25, %c0_26, %c0_27] : memref<18x32x128xbf16, #tpu.memory_space<vmem>>, vector<18x8x128xbf16>
    tpu.vector_store %arg10[%c0_25, %c0_26, %c0_27], %57 {strides = array<i32>} : memref<18x32x128xbf16, #tpu.memory_space<vmem>>, vector<18x8x128xbf16>,
    %c0_28 = arith.constant 0 : index
    %c24 = arith.constant 24 : index
    %c0_29 = arith.constant 0 : index
    %59 = vector.load %arg10[%c0_28, %c24, %c0_29] : memref<18x32x128xbf16, #tpu.memory_space<vmem>>, vector<18x8x128xbf16>
    tpu.vector_store %arg10[%c0_28, %c24, %c0_29], %57 {strides = array<i32>} : memref<18x32x128xbf16, #tpu.memory_space<vmem>>, vector<18x8x128xbf16>,
    %60 = arith.truncf %46 : vector<1x16x128xf32> to vector<1x16x128xbf16>
    %c0_30 = arith.constant 0 : index
    %c8 = arith.constant 8 : index
    %c0_31 = arith.constant 0 : index
    %61 = vector.load %arg10[%c0_30, %c8, %c0_31] : memref<18x32x128xbf16, #tpu.memory_space<vmem>>, vector<1x16x128xbf16>
    tpu.vector_store %arg10[%c0_30, %c8, %c0_31], %60 {strides = array<i32>} : memref<18x32x128xbf16, #tpu.memory_space<vmem>>, vector<1x16x128xbf16>,
    %62 = arith.truncf %51 : vector<16x16x128xf32> to vector<16x16x128xbf16>
    %c1 = arith.constant 1 : index
    %c8_32 = arith.constant 8 : index
    %c0_33 = arith.constant 0 : index
    %63 = vector.load %arg10[%c1, %c8_32, %c0_33] : memref<18x32x128xbf16, #tpu.memory_space<vmem>>, vector<16x16x128xbf16>
    tpu.vector_store %arg10[%c1, %c8_32, %c0_33], %62 {strides = array<i32>} : memref<18x32x128xbf16, #tpu.memory_space<vmem>>, vector<16x16x128xbf16>,
    %64 = arith.truncf %56 : vector<1x16x128xf32> to vector<1x16x128xbf16>
    %c17 = arith.constant 17 : index
    %c8_34 = arith.constant 8 : index
    %c0_35 = arith.constant 0 : index
    %65 = vector.load %arg10[%c17, %c8_34, %c0_35] : memref<18x32x128xbf16, #tpu.memory_space<vmem>>, vector<1x16x128xbf16>
    tpu.vector_store %arg10[%c17, %c8_34, %c0_35], %64 {strides = array<i32>} : memref<18x32x128xbf16, #tpu.memory_space<vmem>>, vector<1x16x128xbf16>,
    %c0_36 = arith.constant 0 : index
    %c7 = arith.constant 7 : index
    %c0_37 = arith.constant 0 : index
    %66 = vector.load %arg10[%c0_36, %c7, %c0_37] : memref<18x32x128xbf16, #tpu.memory_space<vmem>>, vector<18x16x128xbf16>
    %c0_38 = arith.constant 0 : index
    %c0_39 = arith.constant 0 : index
    %c0_40 = arith.constant 0 : index
    %67 = vector.load %arg11[%c0_38, %c0_39, %c0_40] : memref<18x16x384xbf16, #tpu.memory_space<vmem>>, vector<18x16x128xbf16>
    tpu.vector_store %arg11[%c0_38, %c0_39, %c0_40], %66 {strides = array<i32>} : memref<18x16x384xbf16, #tpu.memory_space<vmem>>, vector<18x16x128xbf16>,
    %c0_41 = arith.constant 0 : index
    %c8_42 = arith.constant 8 : index
    %c0_43 = arith.constant 0 : index
    %68 = vector.load %arg10[%c0_41, %c8_42, %c0_43] : memref<18x32x128xbf16, #tpu.memory_space<vmem>>, vector<18x16x128xbf16>
    %c0_44 = arith.constant 0 : index
    %c0_45 = arith.constant 0 : index
    %c128 = arith.constant 128 : index
    %69 = vector.load %arg11[%c0_44, %c0_45, %c128] : memref<18x16x384xbf16, #tpu.memory_space<vmem>>, vector<18x16x128xbf16>
    tpu.vector_store %arg11[%c0_44, %c0_45, %c128], %68 {strides = array<i32>} : memref<18x16x384xbf16, #tpu.memory_space<vmem>>, vector<18x16x128xbf16>,
    %c0_46 = arith.constant 0 : index
    %c9 = arith.constant 9 : index
    %c0_47 = arith.constant 0 : index
    %70 = vector.load %arg10[%c0_46, %c9, %c0_47] : memref<18x32x128xbf16, #tpu.memory_space<vmem>>, vector<18x16x128xbf16>
    %c0_48 = arith.constant 0 : index
    %c0_49 = arith.constant 0 : index
    %c256 = arith.constant 256 : index
    %71 = vector.load %arg11[%c0_48, %c0_49, %c256] : memref<18x16x384xbf16, #tpu.memory_space<vmem>>, vector<18x16x128xbf16>
    tpu.vector_store %arg11[%c0_48, %c0_49, %c256], %70 {strides = array<i32>} : memref<18x16x384xbf16, #tpu.memory_space<vmem>>, vector<18x16x128xbf16>,
    %c0_50 = arith.constant 0 : index
    %c0_51 = arith.constant 0 : index
    %c0_52 = arith.constant 0 : index
    %72 = vector.load %arg11[%c0_50, %c0_51, %c0_52] : memref<18x16x384xbf16, #tpu.memory_space<vmem>>, vector<16x16x384xbf16>
    %73 = vector.shape_cast %72 : vector<16x16x384xbf16> to vector<256x384xbf16>
    %c0_53 = arith.constant 0 : index
    %c0_54 = arith.constant 0 : index
    %c0_55 = arith.constant 0 : index
    %74 = vector.load %arg7[%c0_53, %c0_54, %c0_55] : memref<3x384x128xbf16, #tpu.memory_space<vmem>>, vector<1x384x128xbf16>
    %75 = vector.shape_cast %74 : vector<1x384x128xbf16> to vector<384x128xbf16>
    %cst_56 = arith.constant dense<0.000000e+00> : vector<256x128xf32>
    %76 = tpu.matmul %73, %75, %cst_56 {dimension_numbers = #tpu.dot_dimension_numbers<[1], [0], [0], [1], [0, 0, 1, 1], [], []>} : vector<256x384xbf16>, vector<384x128xbf16>, vector<256x128xf32> -> vector<256x128xf32>
    %c0_57 = arith.constant 0 : index
    %c0_58 = arith.constant 0 : index
    %77 = vector.load %arg12[%c0_57, %c0_58] : memref<256x128xf32, #tpu.memory_space<vmem>>, vector<256x128xf32>
    tpu.vector_store %arg12[%c0_57, %c0_58], %76 {strides = array<i32>} : memref<256x128xf32, #tpu.memory_space<vmem>>, vector<256x128xf32>,
    %c1_59 = arith.constant 1 : index
    %c0_60 = arith.constant 0 : index
    %c0_61 = arith.constant 0 : index
    %78 = vector.load %arg11[%c1_59, %c0_60, %c0_61] : memref<18x16x384xbf16, #tpu.memory_space<vmem>>, vector<16x16x384xbf16>
    %79 = vector.shape_cast %78 : vector<16x16x384xbf16> to vector<256x384xbf16>
    %c1_62 = arith.constant 1 : index
    %c0_63 = arith.constant 0 : index
    %c0_64 = arith.constant 0 : index
    %80 = vector.load %arg7[%c1_62, %c0_63, %c0_64] : memref<3x384x128xbf16, #tpu.memory_space<vmem>>, vector<1x384x128xbf16>
    %81 = vector.shape_cast %80 : vector<1x384x128xbf16> to vector<384x128xbf16>
    %cst_65 = arith.constant dense<0.000000e+00> : vector<256x128xf32>
    %82 = tpu.matmul %79, %81, %cst_65 {dimension_numbers = #tpu.dot_dimension_numbers<[1], [0], [0], [1], [0, 0, 1, 1], [], []>} : vector<256x384xbf16>, vector<384x128xbf16>, vector<256x128xf32> -> vector<256x128xf32>
    %c0_66 = arith.constant 0 : index
    %c0_67 = arith.constant 0 : index
    %83 = vector.load %arg12[%c0_66, %c0_67] : memref<256x128xf32, #tpu.memory_space<vmem>>, vector<256x128xf32>
    %84 = arith.addf %83, %82 : vector<256x128xf32>
    %c0_68 = arith.constant 0 : index
    %c0_69 = arith.constant 0 : index
    %85 = vector.load %arg12[%c0_68, %c0_69] : memref<256x128xf32, #tpu.memory_space<vmem>>, vector<256x128xf32>
    tpu.vector_store %arg12[%c0_68, %c0_69], %84 {strides = array<i32>} : memref<256x128xf32, #tpu.memory_space<vmem>>, vector<256x128xf32>,
    %c2 = arith.constant 2 : index
    %c0_70 = arith.constant 0 : index
    %c0_71 = arith.constant 0 : index
    %86 = vector.load %arg11[%c2, %c0_70, %c0_71] : memref<18x16x384xbf16, #tpu.memory_space<vmem>>, vector<16x16x384xbf16>
    %87 = vector.shape_cast %86 : vector<16x16x384xbf16> to vector<256x384xbf16>
    %c2_72 = arith.constant 2 : index
    %c0_73 = arith.constant 0 : index
    %c0_74 = arith.constant 0 : index
    %88 = vector.load %arg7[%c2_72, %c0_73, %c0_74] : memref<3x384x128xbf16, #tpu.memory_space<vmem>>, vector<1x384x128xbf16>
    %89 = vector.shape_cast %88 : vector<1x384x128xbf16> to vector<384x128xbf16>
    %cst_75 = arith.constant dense<0.000000e+00> : vector<256x128xf32>
    %90 = tpu.matmul %87, %89, %cst_75 {dimension_numbers = #tpu.dot_dimension_numbers<[1], [0], [0], [1], [0, 0, 1, 1], [], []>} : vector<256x384xbf16>, vector<384x128xbf16>, vector<256x128xf32> -> vector<256x128xf32>
    %c0_76 = arith.constant 0 : index
    %c0_77 = arith.constant 0 : index
    %91 = vector.load %arg12[%c0_76, %c0_77] : memref<256x128xf32, #tpu.memory_space<vmem>>, vector<256x128xf32>
    %92 = arith.addf %91, %90 : vector<256x128xf32>
    %c0_78 = arith.constant 0 : index
    %c0_79 = arith.constant 0 : index
    %93 = vector.load %arg12[%c0_78, %c0_79] : memref<256x128xf32, #tpu.memory_space<vmem>>, vector<256x128xf32>
    tpu.vector_store %arg12[%c0_78, %c0_79], %92 {strides = array<i32>} : memref<256x128xf32, #tpu.memory_space<vmem>>, vector<256x128xf32>,
    %c0_80 = arith.constant 0 : index
    %c0_81 = arith.constant 0 : index
    %94 = vector.load %arg12[%c0_80, %c0_81] : memref<256x128xf32, #tpu.memory_space<vmem>>, vector<256x128xf32>
    %c0_82 = arith.constant 0 : index
    %c0_83 = arith.constant 0 : index
    %95 = vector.load %arg8[%c0_82, %c0_83] : memref<1x128xf32, #tpu.memory_space<vmem>>, vector<1x128xf32>
    %96 = vector.broadcast %95 : vector<1x128xf32> to vector<256x128xf32>
    %97 = arith.addf %94, %96 : vector<256x128xf32>
    %cst_84 = arith.constant 0.000000e+00 : f32
    %98 = vector.broadcast %cst_84 : f32 to vector<256x128xf32>
    %99 = arith.maximumf %97, %98 : vector<256x128xf32>
    %c0_85 = arith.constant 0 : index
    %c0_86 = arith.constant 0 : index
    %c0_87 = arith.constant 0 : index
    %c0_88 = arith.constant 0 : index
    %100 = vector.load %arg2[%c0_85, %c0_86, %c0_87, %c0_88] : memref<1x16x16x128xf32, #tpu.memory_space<vmem>>, vector<1x16x16x128xf32>
    %101 = vector.shape_cast %100 : vector<1x16x16x128xf32> to vector<16x16x128xf32>
    %102 = vector.shape_cast %101 : vector<16x16x128xf32> to vector<256x128xf32>
    %103 = arith.addf %99, %102 : vector<256x128xf32>
    %104 = vector.shape_cast %103 : vector<256x128xf32> to vector<1x16x16x128xf32>
    %c0_89 = arith.constant 0 : index
    %c0_90 = arith.constant 0 : index
    %c0_91 = arith.constant 0 : index
    %c0_92 = arith.constant 0 : index
    %105 = vector.load %arg9[%c0_89, %c0_90, %c0_91, %c0_92] : memref<1x16x16x128xf32, #tpu.memory_space<vmem>>, vector<1x16x16x128xf32>
    tpu.vector_store %arg9[%c0_89, %c0_90, %c0_91, %c0_92], %104 {strides = array<i32>} : memref<1x16x16x128xf32, #tpu.memory_space<vmem>>, vector<1x16x16x128xf32>,
    return
  }
  func.func @transform_0(%arg0: i32, %arg1: i32) -> (i32, i32, i32, i32) {
    %c0_i32 = arith.constant 0 : i32
    %c0_i32_0 = arith.constant 0 : i32
    %c0_i32_1 = arith.constant 0 : i32
    return %arg0, %arg1, %c0_i32, %c0_i32_0 : i32, i32, i32, i32
  }
  func.func @transform_1(%arg0: i32, %arg1: i32) -> (i32, i32, i32, i32) {
    %c16_i32 = arith.constant 16 : i32
    %0 = arith.muli %arg1, %c16_i32 : i32
    %c1_i32 = arith.constant 1 : i32
    %1 = arith.subi %0, %c1_i32 : i32
    %c0_i32 = arith.constant 0 : i32
    %2 = arith.maxsi %1, %c0_i32 : i32
    %c0_i32_0 = arith.constant 0 : i32
    %c0_i32_1 = arith.constant 0 : i32
    %c0_i32_2 = arith.constant 0 : i32
    return %arg0, %2, %c0_i32_0, %c0_i32_1 : i32, i32, i32, i32
  }
  func.func @transform_2(%arg0: i32, %arg1: i32) -> (i32, i32, i32, i32) {
    %c16_i32 = arith.constant 16 : i32
    %0 = arith.muli %arg1, %c16_i32 : i32
    %c16_i32_0 = arith.constant 16 : i32
    %1 = arith.addi %0, %c16_i32_0 : i32
    %c15_i32 = arith.constant 15 : i32
    %2 = arith.minsi %1, %c15_i32 : i32
    %c0_i32 = arith.constant 0 : i32
    %c0_i32_1 = arith.constant 0 : i32
    %c0_i32_2 = arith.constant 0 : i32
    return %arg0, %2, %c0_i32, %c0_i32_1 : i32, i32, i32, i32
  }
  func.func @transform_3(%arg0: i32, %arg1: i32) -> (i32, i32) {
    %c0_i32 = arith.constant 0 : i32
    %c0_i32_0 = arith.constant 0 : i32
    %c0_i32_1 = arith.constant 0 : i32
    return %c0_i32, %c0_i32_0 : i32, i32
  }
  func.func @transform_4(%arg0: i32, %arg1: i32) -> (i32, i32) {
    %c0_i32 = arith.constant 0 : i32
    %c0_i32_0 = arith.constant 0 : i32
    %c0_i32_1 = arith.constant 0 : i32
    return %c0_i32, %c0_i32_0 : i32, i32
  }
  func.func @transform_5(%arg0: i32, %arg1: i32) -> (i32, i32, i32) {
    %c0_i32 = arith.constant 0 : i32
    %c0_i32_0 = arith.constant 0 : i32
    %c0_i32_1 = arith.constant 0 : i32
    %c0_i32_2 = arith.constant 0 : i32
    return %c0_i32, %c0_i32_0, %c0_i32_1 : i32, i32, i32
  }
  func.func @transform_6(%arg0: i32, %arg1: i32) -> (i32, i32) {
    %c0_i32 = arith.constant 0 : i32
    %c0_i32_0 = arith.constant 0 : i32
    %c0_i32_1 = arith.constant 0 : i32
    return %c0_i32, %c0_i32_0 : i32, i32
  }
  func.func @transform_7(%arg0: i32, %arg1: i32) -> (i32, i32, i32, i32) {
    %c0_i32 = arith.constant 0 : i32
    %c0_i32_0 = arith.constant 0 : i32
    %c0_i32_1 = arith.constant 0 : i32
    return %arg0, %arg1, %c0_i32, %c0_i32_0 : i32, i32, i32, i32
  }
}

</mosaic_0001>

<bundles_post_ra>
// kernel: tpu_custom_call.1
= control target key start
LH: loop header
LB: loop body
LE: loop exit
PB: predicated region body
PF: predicated region fallthrough
CT: control target
= control target key end

     0   :  { %s7252_s0 = inlined_call_operand.hbm [shape: f32[2,16,16,128], index: 0, kind: input, shape index: {}]   ;;  %s7253_s1 = inlined_call_operand.hbm [shape: f32[2,16,16,128], index: 1, kind: input, shape index: {}]   ;;  %s7254_s2 = inlined_call_operand.hbm [shape: f32[2,16,16,128], index: 2, kind: input, shape index: {}]   ;;  %s7255_s3 = inlined_call_operand.hbm [shape: bf16[128,128], index: 3, kind: input, shape index: {}]   ;;  %s7256_s4 = inlined_call_operand.vmem [shape: f32[1,128], index: 4, kind: input, shape index: {}]   ;;  %s7257_s5 = inlined_call_operand.hbm [shape: bf16[3,384,128], index: 5, kind: input, shape index: {}]   ;;  %s7258_s6 = inlined_call_operand.vmem [shape: f32[1,128], index: 6, kind: input, shape index: {}]   ;;  %s7259_s7 = inlined_call_operand.hbm [shape: f32[2,16,16,128], index: 7, kind: output, shape index: {}]  }
   0x1   :  { %7283 = sst [smem:[#allocation26_spill]] %s7253_s1 }
   0x2   :  { %7284 = sst [smem:[#allocation27_spill]] %s7255_s3 }
   0x3   :  { %7285 = sst [smem:[#allocation28_spill]] %s7259_s7 }
   0x4   :  { %12 = vsyncpa [#allocation6], 0 }
   0x5   :  { %14 = vsyncpa [#allocation6 + $0x1], 0 }
   0x6   :  { %15 = vsyncpa [#allocation9], 0 }
   0x7   :  { %17 = vsyncpa [#allocation9 + $0x1], 0 }
   0x8   :  { %18 = vsyncpa [#allocation12], 0 }
   0x9   :  { %19 = vsyncpa [#allocation7], 0 }
   0xa   :  { %21 = vsyncpa [#allocation7 + $0x1], 0  ;;  %s6052_s24 = smov 0   ;;  %s6054_s25 = smov 0  }
   0xb   :  { %s6056_s26 = smov 0   ;;  %s6058_s27 = smov 0  }
   0xc   :  { %s6060_s28 = smov 0   ;;  %s6062_s29 = smov 0  }
   0xd LB: > { %7286 = sst [smem:[#allocation19_spill]] %s5974_s24  ;;  %s6083_s30 = sadd.s32 4294967295, %s5994_s29   ;;  %s5994_s29 = sphi %s6062_s29, %s27_s29   ;;  %s5990_s28 = sphi %s6060_s28, %s7327_s28   ;;  %s5986_s27 = sphi %s6058_s27, %s7326_s27   ;;  %s5982_s26 = sphi %s6056_s26, %s7325_s26   ;;  %s5978_s25 = sphi %s6054_s25, %s7329_s25   ;;  %s5974_s24 = sphi %s6052_s24, %s7328_s24  }
   0xe   : > { %7287 = sst [smem:[#allocation20_spill]] %s5982_s26  ;;  %s4619_s8 = sadd.s32 4294967294, %s5994_s29  }
   0xf   : > { %7288 = sst [smem:[#allocation21_spill]] %s5990_s28  ;;  %p55_p0 = scmp.ne.s32.totalorder %s5982_s26, %s5978_s25 }
  0x10   : > { %7289 = sst [smem:[#allocation22_spill]] %s5994_s29  ;;  %p56_p1 = scmp.eq.s32.totalorder %s5994_s29, 0 }
  0x11   : > { %p61_p2 = scmp.ne.s32.totalorder %s5978_s25, %s5974_s24  ;;  %p7260_p3 = scmp.eq.s32.totalorder %s6083_s30, 0 }
  0x12   : > { %p6092_p4 = por %p56_p1, %p55_p0  ;;  %p243_p5 = scmp.eq.s32.totalorder %s6083_s30, 1 }
  0x13   : > { %p6099_p6 = por %p7260_p3, %p61_p2  ;;  %p249_p7 = scmp.eq.s32.totalorder %s4619_s8, 1 }
  0x14   : > { %p6103_p8 = por %p243_p5, %p55_p0  ;;  %p4620_p9 = scmp.ge.s32.totalorder %s5994_s29, 1 }
  0x15   : > { %s7291_s10 = scalar_select %p6099_p6, 1, 0 }
  0x16   : > { %s7292_s11 = scalar_select %p6103_p8, 1, 0 }
  0x17   : > { %p6108_p10 = por %p249_p7, %p61_p2  ;;  %p256_p11 = scmp.lt.s32.totalorder %s5994_s29, 3 }
  0x18   : > { %s5996_s14 = smov [#allocation11]   ;;  %s39_s17 = sadd.s32 1, %s5990_s28 }
  0x19   : > { %s7293_s12 = scalar_select %p6108_p10, 1, 0 }
  0x1a   : > { %p6113_p12 = pnand %p4620_p9, %p256_p11  ;;  %s268_s15 = sshll.u32 %s5996_s14, 4  ;;  %s6117_s15 = int_to_ptr.vmem [resolvable:$true] %s268_s15 }
  0x1b   : > { %7294 = sst [smem:[#allocation23_spill]] %s7293_s12  ;;  %p6130_p2 = scmp.ge.s32.totalorder %s39_s17, 2 }
  0x1c   : > { %s7295_s13 = scalar_select %p6113_p12, 1, 0 }
  0x1d   : > { %p5591_p13 = pneg %p6113_p12  ;;  %s7298_s3 = sld [smem:[#allocation27_spill]] }
  0x1f   : > { %p6124_p1 = pnand %p5591_p13, %p7260_p3 }
  0x21   : > { %s7296_s16 = scalar_select %p6124_p1, 1, 0 }
  0x22   : > { %p7272_p7 = pneg %p6124_p1 }
  0x23   : > { %s5758_s22 = scalar_lea.hbm %s7298_s3, 1024 }
  0x24   : > { %p5759_p5 = scmp.ne.s32.totalorder %s7298_s3, %s5758_s22  ;;  %p5765_p13 = scmp.lt.u32.totalorder %s5758_s22, %s7298_s3 }
  0x26   : > { %p5761_p9 = pnand %p7272_p7, %p5759_p5 }
  0x28   : > { %p5762_p11 = pneg %p5761_p9 }
  0x2a   : > { %p5767_p0 = pnand %p5765_p13, %p5762_p11 }
  0x2c   : > { %5770 = shalt.err (!%p5767_p0)
}
  0x2d   : > { %s5771_s20 = scalar_lea.vmem %s6117_s15, 1024  ;;  %p5779_p6 = scmp.lt.s32.totalorder %s6117_s15, %s6117_s15 }
  0x2e   : > { %p5772_p3 = scmp.ne.s32.totalorder %s6117_s15, %s5771_s20  ;;  %p5780_p5 = scmp.lt.s32.totalorder %s5771_s20, %s5771_s20 }
  0x30   : > { %p5774_p10 = pnand %p5772_p3, %p7272_p7  ;;  %p5781_p9 = por %p5780_p5, %p5779_p6 }
  0x32   : > { %p5775_p8 = pneg %p5774_p10 }
  0x34   : > { %p5782_p12 = pnand %p5781_p9, %p5775_p8 }
  0x36   : > { %5785 = shalt.err (!%p5782_p12)
}
  0x37   : > { %s7265_s18 = smov 64   ;;  %s7266_s21 = smov 4  }
  0x38   : > { %5594 = dma.hbm_to_vmem [thread:$0]  (!%p6124_p1), %s7298_s3, 1024, %s6117_s15, [#allocation12], %s7265_s18, %s7265_s18, %s7266_s21  }
  0x39   : > { %s7331_s17 = smov (%p6130_p2, %s39_s17), 0  ;;  %p5614_p3 = scmp.lt.s32.totalorder %s5994_s29, 2 }
  0x3a   : > { %7299 = sst [smem:[#allocation24_spill]] %s7331_s17  ;;  %s6170_s8 = sand.u32 1, %s5982_s26  }
  0x3b   : > { %s43_s14 = ssub.s32 %s5990_s28, %s7331_s17  ;;  %s6175_s20 = sshll.u32 %s5990_s28, 12 }
  0x3c   : > { %p46_p6 = scmp.eq.s32.totalorder %s43_s14, 0  ;;  %p6179_p8 = pnand %p5614_p3, %p6092_p4 }
  0x3d   : > { %s7301_s22 = sadd.s32 1, %s5982_s26  ;;  %s325_s19 = sand.u32 1, %s5994_s29  }
  0x3e   : > { %s7300_s12 = scalar_select %p6179_p8, 1, 0 }
  0x3f   : > { %s6186_s15 = scalar_select %p46_p6, %s5982_s26, %s7301_s22  }
  0x40   : > { %s4627_s23 = sshll.u32 %s6170_s8, 4  ;;  %s7303_s1 = sld [smem:[#allocation26_spill]] }
  0x41   : > { %7302 = sst [smem:[#allocation25_spill]] %s6186_s15  ;;  %s329_s9 = scalar_lea.vmem [#allocation8], %s4627_s23 }
  0x42   : > { %s342_s14 = sshll.u32 %s329_s9, 4  ;;  %s6198_s17 = scalar_lea.vmem [#allocation10], %s4627_s23  ;;  %s6196_s14 = int_to_ptr.vmem [resolvable:$true] %s342_s14 }
  0x43   : > { %s369_s22 = sshll.u32 %s6198_s17, 4  ;;  %s6201_s28 = scalar_lea.sflag [#allocation9], %s325_s19  ;;  %s6236_s22 = int_to_ptr.vmem [resolvable:$true] %s369_s22 }
  0x44   : > { %p6207_p10 = pneg %p6179_p8 }
  0x46   : > { %s6194_s3 = scalar_lea.hbm %s7303_s1, %s6175_s20  ;;  %s5791_s23 = scalar_lea.hbm %s7303_s1, 8192 }
  0x47   : > { %s5786_s15 = scalar_lea.hbm %s6194_s3, 256  ;;  %p5792_p2 = scmp.lt.u32.totalorder %s6194_s3, %s7303_s1 }
  0x48   : > { %p5787_p4 = scmp.ne.s32.totalorder %s6194_s3, %s5786_s15  ;;  %p5793_p11 = scmp.lt.u32.totalorder %s5791_s23, %s5786_s15 }
  0x49   : > { %s7304_s18 = scalar_select %p6207_p10, 1, 0 }
  0x4a   : > { %p5789_p12 = pnand %p6207_p10, %p5787_p4  ;;  %p5794_p13 = por %p5793_p11, %p5792_p2 }
  0x4b   : > { %p5795_p5 = scmp.lt.u32.totalorder %s5786_s15, %s6194_s3 }
  0x4c   : > { %p5790_p0 = pneg %p5789_p12 }
  0x4d   : > { %p5796_p9 = por %p5795_p5, %p5794_p13 }
  0x4f   : > { %p5797_p3 = pnand %p5796_p9, %p5790_p0 }
  0x51   : > { %5800 = shalt.err (!%p5797_p3)
}
  0x52   : > { %s5801_s19 = scalar_lea.vmem %s6196_s14, 256  ;;  %s5999_s21 = smov [#allocation8]  }
  0x53   : > { %p5802_p6 = scmp.ne.s32.totalorder %s6196_s14, %s5801_s19  ;;  %s5806_s9 = sshll.u32 %s5999_s21, 4  ;;  %s5807_s9 = int_to_ptr.vmem [resolvable:$false] %s5806_s9 }
  0x54   : > { %s5808_s26 = scalar_lea.vmem %s5807_s9, 512  ;;  %p5809_p7 = scmp.lt.s32.totalorder %s6196_s14, %s5807_s9 }
  0x55   : > { %p5804_p4 = pnand %p5802_p6, %p6207_p10  ;;  %p5810_p1 = scmp.lt.s32.totalorder %s5808_s26, %s5801_s19 }
  0x57   : > { %p5805_p12 = pneg %p5804_p4  ;;  %p5811_p2 = por %p5810_p1, %p5809_p7 }
  0x59   : > { %p5812_p11 = pnand %p5811_p2, %p5805_p12 }
  0x5b   : > { %5815 = shalt.err (!%p5812_p11)
}
  0x5c   : > { %s7281_s29 = smov 128   ;;  %s6001_s15 = smov 8  }
  0x5d   : > { %5604 = dma.hbm_to_vmem [thread:$0]  (!%p6179_p8), %s6194_s3, 256, %s6196_s14, %s6201_s28, %s7281_s29, %s7281_s29, %s6001_s15  }
  0x5e   : > { %s6002_s23 = smov [#allocation13]   ;;  %s4624_s21 = sshll.u32 %s6170_s8, 8 }
  0x5f   : > { %s284_s19 = sshll.u32 %s6002_s23, 4  ;;  %s5816_s1 = scalar_lea.hbm %s7257_s5, 9216  ;;  %s285_s19 = int_to_ptr.vmem [resolvable:$true] %s284_s19 }
  0x60   : > { %p5817_p1 = scmp.ne.s32.totalorder %s7257_s5, %s5816_s1  ;;  %p7305_p7 = scmp.ne.s32.totalorder %s7296_s16, 0 }
  0x61   : > { %p5823_p9 = scmp.lt.u32.totalorder %s5816_s1, %s7257_s5 }
  0x62   : > { %p7306_p0 = pneg %p7305_p7 }
  0x64   : > { %p5819_p13 = pnand %p5817_p1, %p7306_p0 }
  0x66   : > { %p5820_p5 = pneg %p5819_p13 }
  0x68   : > { %p5825_p3 = pnand %p5823_p9, %p5820_p5 }
  0x6a   : > { %5828 = shalt.err (!%p5825_p3)
}
  0x6b   : > { %s5829_s14 = scalar_lea.vmem %s285_s19, 9216  ;;  %p7307_p4 = pmov %p7306_p0 }
  0x6c   : > { %p5830_p6 = scmp.ne.s32.totalorder %s285_s19, %s5829_s14  ;;  %p5837_p11 = scmp.lt.s32.totalorder %s285_s19, %s285_s19 }
  0x6d   : > { %p5838_p8 = scmp.lt.s32.totalorder %s5829_s14, %s5829_s14 }
  0x6e   : > { %p5832_p12 = pnand %p5830_p6, %p7307_p4 }
  0x6f   : > { %p5839_p10 = por %p5838_p8, %p5837_p11 }
  0x70   : > { %p5833_p2 = pneg %p5832_p12 }
  0x72   : > { %p5840_p0 = pnand %p5839_p10, %p5833_p2 }
  0x74   : > { %5843 = shalt.err (!%p5840_p0)
}
  0x75   : > { %s7308_s7 = smov 4   ;;  %s7309_s24 = smov 64  }
  0x76   : > { %5597 = dma.hbm_to_vmem [thread:$0]  (!%p7305_p7), %s7257_s5, 9216, %s285_s19, [#allocation12], %s7309_s24, %s7309_s24, %s7308_s7  }
  0x77   : > { %s6266_s3 = scalar_lea.hbm %s7252_s0, %s6175_s20  ;;  %s305_s16 = scalar_lea.vmem [#allocation5], %s4624_s21 }
  0x78   : > { %s315_s17 = sshll.u32 %s305_s16, 4  ;;  %s4730_s14 = sadd.s32 3840, %s6175_s20  ;;  %s6269_s17 = int_to_ptr.vmem [resolvable:$true] %s315_s17 }
  0x79   : > { %s6274_s29 = scalar_lea.hbm %s7254_s2, %s4730_s14  ;;  %s302_s19 = scalar_lea.sflag [#allocation6], %s6170_s8 }
  0x7a   : > { %s5844_s7 = scalar_lea.hbm %s6266_s3, 4096  ;;  %p7310_p10 = scmp.ne.s32.totalorder %s7304_s18, 0 }
  0x7b   : > { %p5845_p8 = scmp.ne.s32.totalorder %s6266_s3, %s5844_s7  ;;  %s5849_s26 = scalar_lea.hbm %s7252_s0, 8192 }
  0x7c   : > { %p5850_p13 = scmp.lt.u32.totalorder %s6266_s3, %s7252_s0  ;;  %p5851_p5 = scmp.lt.u32.totalorder %s5849_s26, %s5844_s7 }
  0x7d   : > { %p5847_p1 = pnand %p5845_p8, %p7310_p10  ;;  %p5853_p3 = scmp.lt.u32.totalorder %s5844_s7, %s6266_s3 }
  0x7e   : > { %p5852_p9 = por %p5851_p5, %p5850_p13 }
  0x7f   : > { %p5848_p7 = pneg %p5847_p1 }
  0x80   : > { %p5854_p6 = por %p5853_p3, %p5852_p9 }
  0x82   : > { %p5855_p4 = pnand %p5854_p6, %p5848_p7 }
  0x84   : > { %5858 = shalt.err (!%p5855_p4)
}
  0x85   : > { %s5859_s20 = scalar_lea.vmem %s6269_s17, 4096  ;;  %s6003_s14 = smov [#allocation5]  }
  0x86   : > { %p5860_p12 = scmp.ne.s32.totalorder %s6269_s17, %s5859_s20  ;;  %s5864_s1 = sshll.u32 %s6003_s14, 4  ;;  %s5865_s1 = int_to_ptr.vmem [resolvable:$false] %s5864_s1 }
  0x87   : > { %s5866_s23 = scalar_lea.vmem %s5865_s1, 8192  ;;  %p5867_p0 = scmp.lt.s32.totalorder %s6269_s17, %s5865_s1 }
  0x88   : > { %p5862_p2 = pnand %p5860_p12, %p7310_p10  ;;  %p5868_p8 = scmp.lt.s32.totalorder %s5866_s23, %s5859_s20 }
  0x8a   : > { %p5863_p11 = pneg %p5862_p2  ;;  %p5869_p1 = por %p5868_p8, %p5867_p0 }
  0x8c   : > { %p5870_p13 = pnand %p5869_p1, %p5863_p11 }
  0x8e   : > { %5873 = shalt.err (!%p5870_p13)
}
  0x8f   : > { %p7311_p7 = scmp.ne.s32.totalorder %s7300_s12, 0  ;;  %s7312_s7 = smov 128  }
  0x90   : > { %s5874_s24 = scalar_lea.hbm %s6274_s29, 256  ;;  %s5879_s21 = scalar_lea.hbm %s7254_s2, 8192 }
  0x91   : > { %5601 = dma.hbm_to_vmem [thread:$0]  (!%p7311_p7), %s6266_s3, 4096, %s6269_s17, %s302_s19, %s7312_s7, %s7312_s7, %s6001_s15  }
  0x92   : > { %p5875_p5 = scmp.ne.s32.totalorder %s6274_s29, %s5874_s24  ;;  %p5880_p6 = scmp.lt.u32.totalorder %s6274_s29, %s7254_s2 }
  0x93   : > { %p5881_p4 = scmp.lt.u32.totalorder %s5879_s21, %s5874_s24  ;;  %p5883_p2 = scmp.lt.u32.totalorder %s5874_s24, %s6274_s29 }
  0x94   : > { %p5877_p9 = pnand %p5875_p5, %p7310_p10 }
  0x95   : > { %p5882_p12 = por %p5881_p4, %p5880_p6 }
  0x96   : > { %p5878_p3 = pneg %p5877_p9 }
  0x97   : > { %p5884_p11 = por %p5883_p2, %p5882_p12 }
  0x99   : > { %p5885_p0 = pnand %p5884_p11, %p5878_p3 }
  0x9b   : > { %5888 = shalt.err (!%p5885_p0)
}
  0x9c   : > { %s5889_s8 = scalar_lea.vmem %s6236_s22, 256  ;;  %s6004_s3 = smov [#allocation10]  }
  0x9d   : > { %p5890_p8 = scmp.ne.s32.totalorder %s6236_s22, %s5889_s8  ;;  %s5894_s17 = sshll.u32 %s6004_s3, 4  ;;  %s5895_s17 = int_to_ptr.vmem [resolvable:$false] %s5894_s17 }
  0x9e   : > { %s5896_s19 = scalar_lea.vmem %s5895_s17, 512  ;;  %p5897_p5 = scmp.lt.s32.totalorder %s6236_s22, %s5895_s17 }
  0x9f   : > { %p5892_p1 = pnand %p5890_p8, %p7310_p10  ;;  %p5898_p9 = scmp.lt.s32.totalorder %s5896_s19, %s5889_s8 }
  0xa1   : > { %p5893_p13 = pneg %p5892_p1  ;;  %p5899_p6 = por %p5898_p9, %p5897_p5 }
  0xa3   : > { %p5900_p4 = pnand %p5899_p6, %p5893_p13 }
  0xa5   : > { %5903 = shalt.err (!%p5900_p4)
}
  0xa6   : > { %5607 = dma.hbm_to_vmem [thread:$0]  (!%p7311_p7), %s6274_s29, 256, %s6236_s22, %s6201_s28, %s7312_s7, %s7312_s7, %s6001_s15  }
  0xa7   : > { %p7313_p10 = scmp.ne.s32.totalorder %s7295_s13, 0 }
  0xa8   : > { %s6331_s18 = sand.u32 (!%p7313_p10), 1, %s5978_s25   ;;  %p7314_p3 = scmp.ne.s32.totalorder (!%p7313_p10), %s7291_s10, 0 }
  0xa9   : > { %381 = sbr.rel (%p7313_p10) target bundleno = 1033 (0x409), region = 48  ;;  %s4634_s14 = sshll.u32 (!%p7313_p10), %s6331_s18, 8 }
  0xaa   : > { %s384_s1 = scalar_lea.sflag (!%p7313_p10), [#allocation6], %s6331_s18  ;;  %s6337_s12 = scalar_lea.vmem (!%p7313_p10), [#allocation5], %s4634_s14 }
  0xb0   : > { %5957 = dma.done.wait (%p7314_p3), %s384_s1, 4096  }
  0xb1   : > { %5959 = vsyncadd (%p7314_p3), %s384_s1, 4294963200  ;;  %s392_s28 = sand.u32 1, %s6083_s30   ;;  %s4635_s13 = sshll.u32 %s6331_s18, 4 }
  0xb2   : > { %s393_s22 = scalar_lea.sflag [#allocation9], %s392_s28  ;;  %s6345_s29 = scalar_lea.vmem [#allocation8], %s4635_s13 }
  0xb3   : > { %5961 = dma.done.wait (%p7314_p3), %s393_s22, 512  }
  0xb4   : > { %5963 = vsyncadd (%p7314_p3), %s393_s22, 4294966784  ;;  %s6351_s15 = scalar_lea.vmem [#allocation10], %s4635_s13  ;;  %p7315_p7 = scmp.eq.s32.totalorder %s6083_s30, 0 }
  0xb6   : > { %5965 = dma.done.wait (%p7315_p7), [#allocation12], 10240   ;;  %p7316_p12 = pmov %p7315_p7 }
  0xb7   : > { %v6005_v0 = vmov 0.0   ;;  %vm6006_vm0 = vmmov 0   ;;  %v6360_v1 = vld [vmem:[#allocation11] sm:$0xff]   ;;  %v6362_v2 = vld [vmem:[#allocation11 + $0x8] sm:$0xff]   ;;  %v6369_v3 = vld [vmem:[#allocation11 + $0x10] sm:$0xff]   ;;  %vm1192_vm1 = vcmask 1041409  }
  0xb8   : > { %5967 = vsyncadd (%p7316_p12), [#allocation12], 4294957056  ;;  %5251 = vmatprep.subr.bf16.mxu1 %v6005_v0  ;;  %5267 = vmatprep.mubr.msk.bf16.mxu1 %vm6006_vm0, %v6005_v0  ;;  %v6375_v4 = vld [vmem:[#allocation11 + $0x18] sm:$0xff]   ;;  %v483_v5 = vld [vmem:[%s6337_s12] sm:$0xff]  ;;  %vm1195_vm2 = vcmask 1042434   ;;  %vm1198_vm3 = vcmask 1043459  }
  0xb9   : > { %5183 = vmatprep.subr.bf16.mxu0 %v6360_v1  ;;  %5252 = vmatpush3.bf16.msra.mxu1 %v6360_v1  ;;  %v484_v6 = vld [vmem:[%s6337_s12 + $0x8] sm:$0xff]  ;;  %v6382_v8 = vld [vmem:[#allocation11 + $0x20] sm:$0xff]   ;;  %v6395_v10 = vld [vmem:[#allocation11 + $0x30] sm:$0xff]   ;;  %vm1201_vm4 = vcmask 1044484   ;;  %vm1204_vm5 = vcmask 1045509   ;;  %vm1207_vm6 = vcmask 1046534  }
  0xba   : > { %5184 = vmatpush3.bf16.msra.mxu0 %v6360_v1  ;;  %5253 = vmatprep.subr.bf16.mxu1 %v6005_v0  ;;  %v515_v7 = vpack.c.bf16 %v484_v6, %v483_v5  ;;  %v6389_v9 = vld [vmem:[#allocation11 + $0x28] sm:$0xff]   ;;  %v6401_v11 = vld [vmem:[#allocation11 + $0x38] sm:$0xff]   ;;  %v485_v12 = vld [vmem:[%s6337_s12 + $0x10] sm:$0xff]  ;;  %vm1210_vm7 = vcmask 1047559   ;;  %vm1863_vm8 = vcmask 1043456   ;;  %s7078_s24 = scalar_lea.vmem [#allocation14], %s4634_s14 }
  0xbb   : > { %5185 = vmatprep.subr.bf16.mxu0 %v6362_v2  ;;  %v486_v13 = vld [vmem:[%s6337_s12 + $0x18] sm:$0xff]  ;;  %v824_v14 = vld [vmem:[%s6351_s15] sm:$0xff]  ;;  %v488_v18 = vld [vmem:[%s6337_s12 + $0x28] sm:$0xff]  ;;  %vm1448_vm9 = vsmask.f32 4352  ;;  %s4731_s9 = sshll.u32 %s5986_s27, 12 }
  0xbc   : > { %5199 = vmatprep.mubr.bf16.mxu0 %v515_v7  ;;  %v487_v15 = vld [vmem:[%s6337_s12 + $0x20] sm:$0xff]  ;;  %v825_v16 = vld [vmem:[%s6351_s15 + $0x8] sm:$0xff]  ;;  %v516_v20 = vpack.c.bf16 %v486_v13, %v485_v12  ;;  %v489_v23 = vld [vmem:[%s6337_s12 + $0x30] sm:$0xff]  ;;  %vm1990_vm10 = vsmask.f32 3328  ;;  %s4463_s26 = sshll.u32 %s7078_s24, 4  ;;  %s7200_s26 = int_to_ptr.vmem [resolvable:$true] %s4463_s26 }
  0xbd   : > { %5254 = vmatpush3.bf16.msra.mxu1 %v6362_v2  ;;  %v5690_v17 = vld [vmem:[#allocation13 + $0x80] sm:$0xff]   ;;  %v826_v19 = vpack.c.bf16 %v825_v16, %v824_v14  ;;  %v5693_v21 = vld [vmem:[#allocation13 + $0x88] sm:$0xff]   ;;  %v517_v22 = vpack.c.bf16 %v488_v18, %v487_v15  ;;  %v490_v24 = vld [vmem:[%s6337_s12 + $0x38] sm:$0xff]  ;;  %s7317_s20 = sld [smem:[#allocation28_spill]]  ;;  %s4447_s27 = scalar_lea.sflag [#allocation7], %s6331_s18 }
  0xbe   : > { %5186 = vmatpush3.bf16.msra.mxu0 %v6362_v2  ;;  %5255 = vmatprep.subr.bf16.mxu1 %v6005_v0  ;;  %v491_v25 = vld [vmem:[%s6337_s12 + $0x40] sm:$0xff]  ;;  %v492_v26 = vld [vmem:[%s6337_s12 + $0x48] sm:$0xff]  ;;  %v518_v27 = vpack.c.bf16 %v490_v24, %v489_v23  ;;  %v493_v29 = vld [vmem:[%s6337_s12 + $0x50] sm:$0xff]  ;;  %s5904_s3 = scalar_lea.vmem %s7200_s26, 4096  ;;  %p7318_p11 = scmp.ne.s32.totalorder %s7292_s11, 0 }
  0xbf   : > { %5187 = vmatprep.subr.bf16.mxu0 %v6369_v3  ;;  %v519_v28 = vpack.c.bf16 %v492_v26, %v491_v25  ;;  %v494_v30 = vld [vmem:[%s6337_s12 + $0x58] sm:$0xff]  ;;  %v495_v31 = vld [vmem:[%s6337_s12 + $0x60] sm:$0xff]  ;;  %v496_v32 = vld [vmem:[%s6337_s12 + $0x68] sm:$0xff]  ;;  %p5905_p2 = scmp.ne.s32.totalorder %s7200_s26, %s5904_s3  ;;  %s6009_s17 = smov [#allocation14]  }
  0xc0   : > { %v520_v33 = vpack.c.bf16 %v494_v30, %v493_v29  ;;  %v521_v34 = vpack.c.bf16 %v496_v32, %v495_v31  ;;  %v497_v35 = vld [vmem:[%s6337_s12 + $0x70] sm:$0xff]  ;;  %v498_v36 = vld [vmem:[%s6337_s12 + $0x78] sm:$0xff]  ;;  %v499_v37 = vld [vmem:[%s6337_s12 + $0x80] sm:$0xff]  ;;  %v6008_v29 = vmov 0   ;;  %s5908_s19 = sshll.u32 %s6009_s17, 4  ;;  %s5909_s19 = int_to_ptr.vmem [resolvable:$false] %s5908_s19 }
  0xc1   : > { %5256 = vmatpush3.bf16.msra.mxu1 %v6369_v3  ;;  %v500_v38 = vld [vmem:[%s6337_s12 + $0x88] sm:$0xff]  ;;  %v522_v39 = vpack.c.bf16 %v498_v36, %v497_v35  ;;  %v501_v41 = vld [vmem:[%s6337_s12 + $0x90] sm:$0xff]  ;;  %v502_v42 = vld [vmem:[%s6337_s12 + $0x98] sm:$0xff]  ;;  %1107 = vst [vmem:[#allocation2] sm:$0xf] %v6008_v29  ;;  %p5906_p0 = pnand %p5905_p2, %p7318_p11  ;;  %s5910_s14 = scalar_lea.vmem %s5909_s19, 8192 }
  0xc2   : > { %5188 = vmatpush3.bf16.msra.mxu0 %v6369_v3  ;;  %5257 = vmatprep.subr.bf16.mxu1 %v6005_v0  ;;  %v523_v40 = vpack.c.bf16 %v500_v38, %v499_v37  ;;  %v503_v43 = vld [vmem:[%s6337_s12 + $0xa0] sm:$0xff]  ;;  %v504_v44 = vld [vmem:[%s6337_s12 + $0xa8] sm:$0xff]  ;;  %v524_v46 = vpack.c.bf16 %v502_v42, %v501_v41  ;;  %v505_v48 = vld [vmem:[%s6337_s12 + $0xb0] sm:$0xff]  ;;  %1108 = vst [vmem:[#allocation2 + $0x10] sm:$0xf] %v6008_v29  ;;  %p5911_p1 = scmp.lt.s32.totalorder %s7200_s26, %s5909_s19  ;;  %p5912_p13 = scmp.lt.s32.totalorder %s5910_s14, %s5904_s3 }
  0xc3   : > { %5189 = vmatprep.subr.bf16.mxu0 %v6375_v4  ;;  %v5686_v45 = vld [vmem:[#allocation13 + $0x40] sm:$0xff]   ;;  %v525_v47 = vpack.c.bf16 %v504_v44, %v503_v43  ;;  %v506_v49 = vld [vmem:[%s6337_s12 + $0xb8] sm:$0xff]  ;;  %v508_v51 = vld [vmem:[%s6337_s12 + $0xc8] sm:$0xff]  ;;  %1109 = vst [vmem:[#allocation2 + $0x20] sm:$0xf] %v6008_v29  ;;  %s7198_s8 = scalar_lea.hbm %s7317_s20, %s4731_s9  ;;  %p5907_p8 = pneg %p5906_p0 }
  0xc4   : > { %v507_v50 = vld [vmem:[%s6337_s12 + $0xc0] sm:$0xff]  ;;  %v526_v52 = vpack.c.bf16 %v506_v49, %v505_v48  ;;  %v509_v54 = vld [vmem:[%s6337_s12 + $0xd0] sm:$0xff]  ;;  %v510_v55 = vld [vmem:[%s6337_s12 + $0xd8] sm:$0xff]  ;;  %1110 = vst [vmem:[#allocation2 + $0x30] sm:$0xf] %v6008_v29  ;;  %p5913_p5 = por %p5912_p13, %p5911_p1 }
  0xc5   : > { %5258 = vmatpush3.bf16.msra.mxu1 %v6375_v4  ;;  %v527_v53 = vpack.c.bf16 %v508_v51, %v507_v50  ;;  %v511_v56 = vld [vmem:[%s6337_s12 + $0xe0] sm:$0xff]  ;;  %v512_v57 = vld [vmem:[%s6337_s12 + $0xe8] sm:$0xff]  ;;  %v528_v58 = vpack.c.bf16 %v510_v55, %v509_v54  ;;  %v513_v60 = vld [vmem:[%s6337_s12 + $0xf0] sm:$0xff]  ;;  %1111 = vst [vmem:[#allocation2 + $0x40] sm:$0xf] %v6008_v29 }
  0xc6   : > { %5190 = vmatpush3.bf16.msra.mxu0 %v6375_v4  ;;  %5259 = vmatprep.subr.bf16.mxu1 %v6005_v0  ;;  %v529_v59 = vpack.c.bf16 %v512_v57, %v511_v56  ;;  %v514_v61 = vld [vmem:[%s6337_s12 + $0xf8] sm:$0xff]  ;;  %v778_v63 = vld [vmem:[%s6345_s29] sm:$0xff]  ;;  %v5689_v5 = vld [vmem:[#allocation13 + $0x8] sm:$0xff]   ;;  %1112 = vst [vmem:[#allocation2 + $0x50] sm:$0xf] %v6008_v29  ;;  %p5914_p9 = pnand %p5913_p5, %p5907_p8 }
  0xc7   : > { %5191 = vmatprep.subr.bf16.mxu0 %v6382_v8  ;;  %v530_v62 = vpack.c.bf16 %v514_v61, %v513_v60  ;;  %v5691_v6 = vld [vmem:[#allocation13 + $0x50] sm:$0xff]   ;;  %v5695_v18 = vld [vmem:[#allocation13 + $0x18] sm:$0xff]   ;;  %v5697_v25 = vld [vmem:[#allocation13 + $0x60] sm:$0xff]   ;;  %1113 = vst [vmem:[#allocation2 + $0x60] sm:$0xf] %v6008_v29 }
  0xc8   : > { %v5692_v7 = vld [vmem:[#allocation13 + $0x10] sm:$0xff]   ;;  %1114 = vst [vmem:[#allocation2 + $0x70] sm:$0xf] %v6008_v29  ;;  %1115 = vst [vmem:[#allocation2 + $0x80] sm:$0xf] %v6008_v29  ;;  %v5699_v30 = vld [vmem:[#allocation13 + $0x98] sm:$0xff]  }
  0xc9   : > { %5260 = vmatpush3.bf16.msra.mxu1 %v6382_v8  ;;  %v5696_v24 = vld [vmem:[#allocation13 + $0x90] sm:$0xff]   ;;  %1116 = vst [vmem:[#allocation2 + $0x90] sm:$0xf] %v6008_v29  ;;  %1117 = vst [vmem:[#allocation2 + $0xa0] sm:$0xf] %v6008_v29  ;;  %v5700_v31 = vld [vmem:[#allocation13 + $0x68] sm:$0xff]  }
  0xca   : > { %5192 = vmatpush3.bf16.msra.mxu0 %v6382_v8  ;;  %5261 = vmatprep.subr.bf16.mxu1 %v6005_v0  ;;  %1118 = vst [vmem:[#allocation2 + $0xb0] sm:$0xf] %v6008_v29  ;;  %1119 = vst [vmem:[#allocation2 + $0xc0] sm:$0xf] %v6008_v29  ;;  %v5701_v32 = vld [vmem:[#allocation13 + $0x28] sm:$0xff]   ;;  %v5704_v35 = vld [vmem:[#allocation13 + $0x30] sm:$0xff]  }
  0xcb   : > { %5193 = vmatprep.subr.bf16.mxu0 %v6389_v9  ;;  %1120 = vst [vmem:[#allocation2 + $0xd0] sm:$0xf] %v6008_v29  ;;  %1121 = vst [vmem:[#allocation2 + $0xe0] sm:$0xf] %v6008_v29  ;;  %v5705_v42 = vld [vmem:[#allocation13 + $0xa8] sm:$0xff]   ;;  %v5706_v43 = vld [vmem:[#allocation13 + $0x78] sm:$0xff]  }
  0xcc   : > { %1122 = vst [vmem:[#allocation2 + $0xf0] sm:$0xf] %v6008_v29  ;;  %1123 = vst [vmem:[#allocation2 + $0x100] sm:$0xf] %v6008_v29  ;;  %v5707_v44 = vld [vmem:[#allocation13 + $0x38] sm:$0xff]   ;;  %v5708_v54 = vld [vmem:[#allocation13 + $0xb0] sm:$0xff]  }
  0xcd   : > { %5262 = vmatpush3.bf16.msra.mxu1 %v6389_v9  ;;  %1124 = vst [vmem:[#allocation2 + $0x110] sm:$0xf] %v6008_v29  ;;  %1125 = vst [vmem:[#allocation2 + $0x8] sm:$0xf0] %v6008_v29 }
  0xce   : > { %5194 = vmatpush3.bf16.msra.mxu0 %v6389_v9  ;;  %5263 = vmatprep.subr.bf16.mxu1 %v6005_v0  ;;  %1126 = vst [vmem:[#allocation2 + $0x18] sm:$0xf0] %v6008_v29  ;;  %1127 = vst [vmem:[#allocation2 + $0x28] sm:$0xf0] %v6008_v29 }
  0xcf   : > { %5195 = vmatprep.subr.bf16.mxu0 %v6395_v10  ;;  %1128 = vst [vmem:[#allocation2 + $0x38] sm:$0xf0] %v6008_v29  ;;  %1129 = vst [vmem:[#allocation2 + $0x48] sm:$0xf0] %v6008_v29 }
  0xd0   : > { %1130 = vst [vmem:[#allocation2 + $0x58] sm:$0xf0] %v6008_v29  ;;  %1131 = vst [vmem:[#allocation2 + $0x68] sm:$0xf0] %v6008_v29 }
  0xd1   : > { %5264 = vmatpush3.bf16.msra.mxu1 %v6395_v10  ;;  %1132 = vst [vmem:[#allocation2 + $0x78] sm:$0xf0] %v6008_v29  ;;  %1133 = vst [vmem:[#allocation2 + $0x88] sm:$0xf0] %v6008_v29 }
  0xd2   : > { %5196 = vmatpush3.bf16.msra.mxu0 %v6395_v10  ;;  %5265 = vmatprep.subr.bf16.mxu1 %v6005_v0  ;;  %1134 = vst [vmem:[#allocation2 + $0x98] sm:$0xf0] %v6008_v29  ;;  %1135 = vst [vmem:[#allocation2 + $0xa8] sm:$0xf0] %v6008_v29 }
  0xd3   : > { %5197 = vmatprep.subr.bf16.mxu0 %v6401_v11  ;;  %1136 = vst [vmem:[#allocation2 + $0xb8] sm:$0xf0] %v6008_v29  ;;  %1137 = vst [vmem:[#allocation2 + $0xc8] sm:$0xf0] %v6008_v29 }
  0xd4   : > { %1138 = vst [vmem:[#allocation2 + $0xd8] sm:$0xf0] %v6008_v29  ;;  %1139 = vst [vmem:[#allocation2 + $0xe8] sm:$0xf0] %v6008_v29 }
  0xd5   : > { %5266 = vmatpush3.bf16.msra.mxu1 %v6401_v11  ;;  %1140 = vst [vmem:[#allocation2 + $0xf8] sm:$0xf0] %v6008_v29  ;;  %1141 = vst [vmem:[#allocation2 + $0x108] sm:$0xf0] %v6008_v29 }
  0xd6   : > { %5198 = vmatpush3.bf16.msra.mxu0 %v6401_v11  ;;  %5271 = vmatprep.subr.bf16.mxu1 %v5690_v17  ;;  %1142 = vst [vmem:[#allocation2 + $0x118] sm:$0xf0] %v6008_v29 }
  0xd7   : > { %5231 = vmatprep.subr.bf16.mxu0 %v6005_v0 }
  0xd8   : > { %5268 = vmatmul.mubr.bf16.vlgmr.msra.gmra.mrb[0].mxu1 %v826_v19 }
  0xd9   : > { %5200 = vmatmul.mubr.bf16.vlgmr.msra.gmra.mrb[0].mxu0 %v516_v20  ;;  %5272 = vmatpush3.bf16.msra.mxu1 %v5690_v17 }
  0xda   : > { %5203 = vmatprep.mubr.bf16.mxu0 %v517_v22  ;;  %5232 = vmatpush3.bf16.msra.mxu0 %v6360_v1  ;;  %v779_v1 = vld [vmem:[%s6345_s29 + $0x8] sm:$0xff] }
  0xdb   : > { %5233 = vmatprep.subr.bf16.mxu0 %v6005_v0  ;;  %5273 = vmatprep.subr.bf16.mxu1 %v5693_v21 }
  0xdd   : > { %5274 = vmatpush3.bf16.msra.mxu1 %v5693_v21 }
  0xde   : > { %5234 = vmatpush3.bf16.msra.mxu0 %v6362_v2  ;;  %v780_v2 = vpack.c.bf16 %v779_v1, %v778_v63  ;;  %5275 = vmatprep.subr.bf16.mxu1 %v5696_v24  ;;  %v5709_v1 = vld [vmem:[#allocation13 + $0xb8] sm:$0xff]  }
  0xdf   : > { %5235 = vmatprep.subr.bf16.mxu0 %v6005_v0 }
  0xe1   : > { %5204 = vmatmul.mubr.bf16.gmra.mrb[4].mxu0 %v518_v27  ;;  %v5698_v27 = vld [vmem:[#allocation13 + $0x20] sm:$0xff]   ;;  %5276 = vmatpush3.bf16.msra.mxu1 %v5696_v24 }
  0xe2   : > { %5207 = vmatprep.mubr.bf16.mxu0 %v519_v28  ;;  %5236 = vmatpush3.bf16.msra.mxu0 %v6369_v3  ;;  %v5687_v3 = vld [vmem:[#allocation13] sm:$0xff]  }
  0xe3   : > { %5237 = vmatprep.subr.bf16.mxu0 %v6005_v0  ;;  %5277 = vmatprep.subr.bf16.mxu1 %v5699_v30 }
  0xe5   : > { %5278 = vmatpush3.bf16.msra.mxu1 %v5699_v30 }
  0xe6   : > { %5238 = vmatpush3.bf16.msra.mxu0 %v6375_v4  ;;  %v5688_v4 = vld [vmem:[#allocation13 + $0x48] sm:$0xff]  }
  0xe7   : > { %5239 = vmatprep.subr.bf16.mxu0 %v6005_v0 }
  0xe9   : > { %5208 = vmatmul.mubr.bf16.gmra.mrb[8].mxu0 %v520_v33  ;;  %v5702_v33 = vld [vmem:[#allocation13 + $0xa0] sm:$0xff]  }
  0xea   : > { %5211 = vmatprep.mubr.bf16.mxu0 %v521_v34  ;;  %5240 = vmatpush3.bf16.msra.mxu0 %v6382_v8  ;;  %v5694_v8 = vld [vmem:[#allocation13 + $0x58] sm:$0xff]   ;;  %v5703_v34 = vld [vmem:[#allocation13 + $0x70] sm:$0xff]  }
  0xeb   : > { %5241 = vmatprep.subr.bf16.mxu0 %v6005_v0  ;;  %5279 = vmatprep.subr.bf16.mxu1 %v5702_v33 }
  0xec   : > { %5280 = vmatpush3.bf16.msra.mxu1 %v5702_v33 }
  0xed   : > { %5281 = vmatprep.subr.bf16.mxu1 %v5705_v42 }
  0xee   : > { %5242 = vmatpush3.bf16.msra.mxu0 %v6389_v9  ;;  %v6007_v9 = vmov 0.0|0.0  }
  0xef   : > { %5243 = vmatprep.subr.bf16.mxu0 %v6005_v0 }
  0xf0   : > { %5282 = vmatpush3.bf16.msra.mxu1 %v5705_v42 }
  0xf1   : > { %5212 = vmatmul.mubr.bf16.gmra.mrb[12].mxu0 %v522_v39  ;;  %5283 = vmatprep.subr.bf16.mxu1 %v5708_v54 }
  0xf2   : > { %5215 = vmatprep.mubr.bf16.mxu0 %v523_v40  ;;  %5244 = vmatpush3.bf16.msra.mxu0 %v6395_v10  ;;  %v1175_v10 = vunpack.c.l.b16 %v6007_v9  ;;  %v5710_v9 = vld [vmem:[#allocation13 + $0x100] sm:$0xff]  }
  0xf3   : > { %5245 = vmatprep.subr.bf16.mxu0 %v6005_v0 }
  0xf4   : > { %v1197_v13 = vrot.slane %v1175_v10, 5  ;;  %v1200_v15 = vrot.slane %v1175_v10, 4  ;;  %v1203_v17 = vrot.slane %v1175_v10, 3  ;;  %v1206_v20 = vrot.slane %v1175_v10, 2  ;;  %5284 = vmatpush3.bf16.msra.mxu1 %v5708_v54 }
  0xf5   : > { %v1209_v22 = vrot.slane %v1175_v10, 1  ;;  %5285 = vmatprep.subr.bf16.mxu1 %v5709_v1 }
  0xf6   : > { %5246 = vmatpush3.bf16.msra.mxu0 %v6401_v11  ;;  %v1191_v11 = vrot.slane %v1175_v10, 7 }
  0xf7   : > { %4775 = vmatprep.subr.bf16.mxu0 %v5686_v45 }
  0xf8   : > { %v1193_v12 = vsel %vm1192_vm1, %v1191_v11, %v1175_v10  ;;  %5286 = vmatpush3.bf16.msra.mxu1 %v5709_v1  ;;  %v5727_v11 = vld [vmem:[#allocation13 + $0x180] sm:$0xff]  }
  0xf9   : > { %5216 = vmatmul.mubr.bf16.gmra.mrb[16].mxu0 %v524_v46  ;;  %4911 = vmatprep.subr.bf16.mxu1 %v5710_v9 }
  0xfa   : > { %5219 = vmatprep.mubr.bf16.mxu0 %v525_v47 }
 0x101   : > { %5220 = vmatmul.mubr.bf16.gmra.mrb[20].mxu0 %v526_v52 }
 0x102   : > { %5223 = vmatprep.mubr.bf16.mxu0 %v527_v53 }
 0x109   : > { %5224 = vmatmul.mubr.bf16.gmra.mrb[24].mxu0 %v528_v58 }
 0x10a   : > { %5227 = vmatprep.mubr.bf16.mxu0 %v529_v59 }
 0x111   : > { %5228 = vmatmul.mubr.bf16.gmra.mrb[28].mxu0 %v530_v62 }
 0x112   : > { %5247 = vmatprep.mubr.msk.bf16.mxu0 %vm6006_vm0, %v6005_v0  ;;  %v1194_v0 = vrot.slane %v1175_v10, 6  ;;  %v5726_v10 = vld [vmem:[#allocation13 + $0x1c0] sm:$0xff]  }
 0x114   : > { %v1196_v14 = vsel %vm1195_vm2, %v1194_v0, %v1193_v12  ;;  %v6467_v0 = vld [vmem:[%s7256_s4] ss:$0 sm:$0xff]  ;;  %v5729_v12 = vld [vmem:[#allocation13 + $0x1c8] sm:$0xff]  }
 0x115   : > { %v1199_v16 = vsel %vm1198_vm3, %v1197_v13, %v1196_v14  ;;  %v5730_v13 = vld [vmem:[#allocation13 + $0x188] sm:$0xff]  }
 0x116   : > { %v1202_v19 = vsel %vm1201_vm4, %v1200_v15, %v1199_v16 }
 0x117   : > { %v1205_v21 = vsel %vm1204_vm5, %v1203_v17, %v1202_v19 }
 0x118   : > { %v1208_v23 = vsel %vm1207_vm6, %v1206_v20, %v1205_v21 }
 0x119   : > { %5248 = vmatmul.mubr.bf16.vlgmr.msra.gmra.mrb[32].mxu0 %v780_v2  ;;  %v1211_v26 = vsel %vm1210_vm7, %v1209_v22, %v1208_v23 }
 0x11a   : > { %4776 = vmatpush3.bf16.msra.mxu0 %v5687_v3  ;;  %v1226_v28 = vpack.c.b16 %v1211_v26, %v1211_v26 }
 0x11b   : > { %4777 = vmatprep.subr.bf16.mxu0 %v5688_v4 }
 0x11c   : > { %1230 = vst [vmem:[#allocation2 + $0x8] ss:$-4 sps:$4 sm:$0xff] %v1226_v28   ;;  %1410 = vst [vmem:[#allocation2 + $0x118] ss:$-4 sps:$4 sm:$0xff] %v1226_v28  }
 0x11e   : > { %4778 = vmatpush3.bf16.msra.mxu0 %v5689_v5 }
 0x11f   : > { %4779 = vmatprep.subr.bf16.mxu0 %v5691_v6 }
 0x122   : > { %4780 = vmatpush3.bf16.msra.mxu0 %v5692_v7 }
 0x123   : > { %4781 = vmatprep.subr.bf16.mxu0 %v5694_v8  ;;  %v1412_v36 = vld [vmem:[#allocation2] sm:$0xf8]  ;;  %v1413_v37 = vld [vmem:[#allocation2 + $0x8] sm:$0xf] }
 0x124   : > { %v1450_v38 = vshrl.u32 %v1412_v36, 16  ;;  %v1453_v39 = vshll.u32 %v1412_v36, 16  ;;  %v1458_v40 = vshrl.u32 %v1413_v37, 16  ;;  %v1461_v41 = vshll.u32 %v1413_v37, 16  ;;  %v1791_v45 = vld [vmem:[#allocation2] sm:$0xf0] }
 0x125   : > { %v1792_v46 = vld [vmem:[#allocation2 + $0x8] sm:$0xf]  ;;  %v1864_v48 = vrot.slane %v1791_v45, 4  ;;  %v1954_v57 = vld [vmem:[#allocation2] sm:$0xf0] }
 0x126   : > { %4782 = vmatpush3.bf16.msra.mxu0 %v5695_v18  ;;  %v1452_v47 = vrot.slane %v1450_v38, 3  ;;  %v1865_v49 = vrot.slane %v1792_v46, 4  ;;  %v1455_v50 = vrot.slane %v1453_v39, 4  ;;  %v1460_v51 = vrot.slane %v1458_v40, 3  ;;  %v1955_v58 = vld [vmem:[#allocation2 + $0x8] sm:$0x1f] }
 0x127   : > { %4783 = vmatprep.subr.bf16.mxu0 %v5697_v25  ;;  %v1463_v52 = vrot.slane %v1461_v41, 4  ;;  %v1992_v59 = vshrl.u32 %v1954_v57, 16  ;;  %v1995_v60 = vshll.u32 %v1954_v57, 16  ;;  %v2000_v61 = vshrl.u32 %v1955_v58, 16 }
 0x128   : > { %v1866_v53 = vsel %vm1863_vm8, %v1864_v48, %v1865_v49  ;;  %v1456_v55 = vor.u32 %v1455_v50, %v1452_v47  ;;  %v2003_v62 = vshll.u32 %v1955_v58, 16  ;;  %v5732_v47 = vld [vmem:[#allocation13 + $0x1d0] sm:$0xff]  }
 0x129   : > { %2605 = vmatprep.mubr.bf16.mxu0 %v1866_v53  ;;  %v1464_v56 = vor.u32 %v1463_v52, %v1460_v51  ;;  %v1994_v2 = vrot.slane %v1992_v59, 4  ;;  %v1997_v3 = vrot.slane %v1995_v60, 5  ;;  %v2002_v4 = vrot.slane %v2000_v61, 4  ;;  %v5733_v48 = vld [vmem:[#allocation13 + $0x190] sm:$0xff]  }
 0x12a   : > { %4784 = vmatpush3.bf16.msra.mxu0 %v5698_v27  ;;  %v2005_v5 = vrot.slane %v2003_v62, 5 }
 0x12b   : > { %4785 = vmatprep.subr.bf16.mxu0 %v5700_v31  ;;  %v1465_v63 = vsel %vm1448_vm9, %v1456_v55, %v1464_v56  ;;  %v1998_v6 = vor.u32 %v1997_v3, %v1994_v2 }
 0x12c   : > { %v2006_v7 = vor.u32 %v2005_v5, %v2002_v4 }
 0x12e   : > { %4786 = vmatpush3.bf16.msra.mxu0 %v5701_v32  ;;  %v2007_v8 = vsel %vm1990_vm10, %v1998_v6, %v2006_v7 }
 0x12f   : > { %4787 = vmatprep.subr.bf16.mxu0 %v5703_v34  ;;  %5287 = vmatprep.mubr.bf16.mxu1 %v2007_v8 }
 0x132   : > { %4788 = vmatpush3.bf16.msra.mxu0 %v5704_v35 }
 0x133   : > { %4789 = vmatprep.subr.bf16.mxu0 %v5706_v43 }
 0x136   : > { %4790 = vmatpush3.bf16.msra.mxu0 %v5707_v44 }
 0x137   : > { %5047 = vmatprep.subr.bf16.mxu0 %v5726_v10 }
 0x139   : > { %2606 = vmatmul.mubr.bf16.vlgmr.msra.gmra.mrb[36].mxu0 %v1465_v63 }
 0x13a   : > { %5048 = vmatpush3.bf16.msra.mxu0 %v5727_v11 }
 0x13b   : > { %5049 = vmatprep.subr.bf16.mxu0 %v5729_v12 }
 0x13e   : > { %5050 = vmatpush3.bf16.msra.mxu0 %v5730_v13 }
 0x13f   : > { %5051 = vmatprep.subr.bf16.mxu0 %v5732_v47 }
 0x142   : > { %5052 = vmatpush3.bf16.msra.mxu0 %v5733_v48 }
 0x1ab   : > { %v861_v14 = vpop.f32.mrb[0].mxu1 }
 0x1ac   : > { %v5201_v15 = vpop.f32.mrb[0].mxu0  ;;  %v5269_v16 = vpop.f32.mrb[1].mxu1 }
 0x1ad   : > { %v628_v17 = vadd.f32 %v5201_v15, %v6467_v0  ;;  %v619_v18 = vpop.f32.mrb[1].mxu0  ;;  %v864_v19 = vpop.f32.mrb[2].mxu1 }
 0x1ae   : > { %v620_v20 = vadd.f32 %v6467_v0, %v619_v18  ;;  %v5202_v21 = vpop.f32.mrb[2].mxu0  ;;  %v5270_v22 = vpop.f32.mrb[3].mxu1  ;;  %v5735_v19 = vld [vmem:[#allocation13 + $0x1d8] sm:$0xff]  }
 0x1af   : > { %v631_v23 = vadd.f32 %v5202_v21, %v6467_v0  ;;  %v622_v24 = vpop.f32.mrb[3].mxu0  ;;  %v748_v26 = vmax.f32 %v628_v17, 0.0  ;;  %5053 = vmatprep.subr.bf16.mxu0 %v5735_v19 }
 0x1b0   : > { %v623_v25 = vadd.f32 %v6467_v0, %v622_v24  ;;  %v746_v28 = vmax.f32 %v620_v20, 0.0 }
 0x1b1   : > { %v749_v27 = vmax.f32 %v631_v23, 0.0 }
 0x1b2   : > { %v747_v29 = vmax.f32 %v623_v25, 0.0 }
 0x1b3   : > { %v1233_v30 = vpack.c.bf16 %v749_v27, %v748_v26 }
 0x1b4   : > { %v1232_v31 = vpack.c.bf16 %v747_v29, %v746_v28  ;;  %v5205_v32 = vpop.f32.mrb[4].mxu0 }
 0x1b5   : > { %v1265_v33 = vrot.slane %v1233_v30, 4  ;;  %v644_v34 = vadd.f32 %v5205_v32, %v6467_v0  ;;  %v635_v35 = vpop.f32.mrb[5].mxu0  ;;  %v5736_v32 = vld [vmem:[#allocation13 + $0x198] sm:$0xff]  }
 0x1b6   : > { %v1264_v36 = vrot.slane %v1232_v31, 4  ;;  %v636_v37 = vadd.f32 %v6467_v0, %v635_v35  ;;  %v5206_v38 = vpop.f32.mrb[6].mxu0  ;;  %5054 = vmatpush3.bf16.msra.mxu0 %v5736_v32 }
 0x1b7   : > { %1299 = vst [vmem:[#allocation2 + $0x28] ss:$-4 sps:$4 sm:$0xff] %v1265_v33   ;;  %v647_v39 = vadd.f32 %v5206_v38, %v6467_v0  ;;  %v638_v40 = vpop.f32.mrb[7].mxu0  ;;  %v752_v42 = vmax.f32 %v644_v34, 0.0 }
 0x1b8   : > { %1297 = vst [vmem:[#allocation2 + $0x18] ss:$-4 sps:$4 sm:$0xff] %v1264_v36   ;;  %v639_v41 = vadd.f32 %v6467_v0, %v638_v40  ;;  %v750_v44 = vmax.f32 %v636_v37, 0.0 }
 0x1b9   : > { %v753_v43 = vmax.f32 %v647_v39, 0.0 }
 0x1ba   : > { %v751_v45 = vmax.f32 %v639_v41, 0.0 }
 0x1bb   : > { %v1235_v46 = vpack.c.bf16 %v753_v43, %v752_v42 }
 0x1bc   : > { %v1234_v49 = vpack.c.bf16 %v751_v45, %v750_v44  ;;  %v5209_v50 = vpop.f32.mrb[8].mxu0 }
 0x1bd   : > { %v1267_v51 = vrot.slane %v1235_v46, 4  ;;  %v660_v52 = vadd.f32 %v5209_v50, %v6467_v0  ;;  %v651_v53 = vpop.f32.mrb[9].mxu0 }
 0x1be   : > { %v1266_v54 = vrot.slane %v1234_v49, 4  ;;  %v652_v55 = vadd.f32 %v6467_v0, %v651_v53  ;;  %v5210_v56 = vpop.f32.mrb[10].mxu0  ;;  %v6479_v57 = vld [vmem:[#allocation2 + $0x20] sm:$0xf0]  ;;  %v1796_v31 = vld [vmem:[#allocation2 + $0x28] sm:$0xf] }
 0x1bf   : > { %1303 = vst [vmem:[#allocation2 + $0x48] ss:$-4 sps:$4 sm:$0xff] %v1267_v51   ;;  %v756_v58 = vmax.f32 %v660_v52, 0.0  ;;  %v663_v59 = vadd.f32 %v5210_v56, %v6467_v0  ;;  %v654_v60 = vpop.f32.mrb[11].mxu0  ;;  %v1793_v61 = vld [vmem:[#allocation2 + $0x10] sm:$0xf0] }
 0x1c0   : > { %v1794_v62 = vld [vmem:[#allocation2 + $0x18] sm:$0xf]  ;;  %1301 = vst [vmem:[#allocation2 + $0x38] ss:$-4 sps:$4 sm:$0xff] %v1266_v54   ;;  %v754_v63 = vmax.f32 %v652_v55, 0.0  ;;  %v655_v1 = vadd.f32 %v6467_v0, %v654_v60  ;;  %v1867_v2 = vrot.slane %v1793_v61, 4 }
 0x1c1   : > { %v1868_v3 = vrot.slane %v1794_v62, 4  ;;  %v1414_v4 = vld [vmem:[#allocation2 + $0x10] sm:$0xf8]  ;;  %v757_v5 = vmax.f32 %v663_v59, 0.0  ;;  %v1415_v6 = vld [vmem:[#allocation2 + $0x18] sm:$0xf] }
 0x1c2   : > { %v1467_v7 = vshrl.u32 %v1414_v4, 16  ;;  %v1470_v8 = vshll.u32 %v1414_v4, 16  ;;  %v1870_v9 = vrot.slane %v6479_v57, 4  ;;  %v755_v10 = vmax.f32 %v655_v1, 0.0  ;;  %v1956_v14 = vld [vmem:[#allocation2 + $0x10] sm:$0xf0] }
 0x1c3   : > { %v6485_v11 = vsel %vm1863_vm8, %v1867_v2, %v1868_v3  ;;  %v1475_v12 = vshrl.u32 %v1415_v6, 16  ;;  %v1478_v13 = vshll.u32 %v1415_v6, 16  ;;  %v1237_v15 = vpack.c.bf16 %v757_v5, %v756_v58  ;;  %v1957_v24 = vld [vmem:[#allocation2 + $0x18] sm:$0x1f]  ;;  %v1958_v38 = vld [vmem:[#allocation2 + $0x20] sm:$0xf0] }
 0x1c4   : > { %2613 = vmatprep.mubr.bf16.mxu0 %v6485_v11  ;;  %v1469_v16 = vrot.slane %v1467_v7, 3  ;;  %v1472_v17 = vrot.slane %v1470_v8, 4  ;;  %v2009_v18 = vshrl.u32 %v1956_v14, 16  ;;  %v1236_v20 = vpack.c.bf16 %v755_v10, %v754_v63  ;;  %v5213_v21 = vpop.f32.mrb[12].mxu0  ;;  %v1959_v44 = vld [vmem:[#allocation2 + $0x28] sm:$0x1f] }
 0x1c5   : > { %v1477_v22 = vrot.slane %v1475_v12, 3  ;;  %v1480_v23 = vrot.slane %v1478_v13, 4  ;;  %v2012_v25 = vshll.u32 %v1956_v14, 16  ;;  %v1269_v26 = vrot.slane %v1237_v15, 4  ;;  %v667_v28 = vpop.f32.mrb[13].mxu0  ;;  %v5711_v59 = vld [vmem:[#allocation13 + $0xc0] sm:$0xff]  }
 0x1c6   : > { %v676_v27 = vadd.f32 %v5213_v21, %v6467_v0  ;;  %v1473_v29 = vor.u32 %v1472_v17, %v1469_v16  ;;  %v2011_v30 = vrot.slane %v2009_v18, 4  ;;  %v1268_v33 = vrot.slane %v1236_v20, 4  ;;  %v5214_v35 = vpop.f32.mrb[14].mxu0  ;;  %v1416_v62 = vld [vmem:[#allocation2 + $0x20] sm:$0xf8]  ;;  %v5712_v6 = vld [vmem:[#allocation13 + $0x108] sm:$0xff]  }
 0x1c7   : > { %v668_v34 = vadd.f32 %v6467_v0, %v667_v28  ;;  %v1481_v36 = vor.u32 %v1480_v23, %v1477_v22  ;;  %v2014_v37 = vrot.slane %v2012_v25, 5  ;;  %1307 = vst [vmem:[#allocation2 + $0x68] ss:$-4 sps:$4 sm:$0xff] %v1269_v26   ;;  %v679_v40 = vadd.f32 %v5214_v35, %v6467_v0  ;;  %v670_v41 = vpop.f32.mrb[15].mxu0  ;;  %v5737_v63 = vld [vmem:[#allocation13 + $0x1e0] sm:$0xff]   ;;  %v5713_v20 = vld [vmem:[#allocation13 + $0xc8] sm:$0xff]  }
 0x1c8   : > { %v760_v39 = vmax.f32 %v676_v27, 0.0  ;;  %v2017_v42 = vshrl.u32 %v1957_v24, 16  ;;  %v2020_v43 = vshll.u32 %v1957_v24, 16  ;;  %1305 = vst [vmem:[#allocation2 + $0x58] ss:$-4 sps:$4 sm:$0xff] %v1268_v33   ;;  %v671_v46 = vadd.f32 %v6467_v0, %v670_v41  ;;  %5055 = vmatprep.subr.bf16.mxu0 %v5737_v63  ;;  %v5738_v14 = vld [vmem:[#allocation13 + $0x1a0] sm:$0xff]  }
 0x1c9   : > { %v758_v45 = vmax.f32 %v668_v34, 0.0  ;;  %v6493_v47 = vsel %vm1448_vm9, %v1473_v29, %v1481_v36  ;;  %v2015_v48 = vor.u32 %v2014_v37, %v2011_v30  ;;  %v761_v49 = vmax.f32 %v679_v40, 0.0  ;;  %v1417_v13 = vld [vmem:[#allocation2 + $0x28] sm:$0xf]  ;;  %v1960_v27 = vld [vmem:[#allocation2 + $0x30] sm:$0xf0]  ;;  %5056 = vmatpush3.bf16.msra.mxu0 %v5738_v14 }
 0x1ca   : > { %2614 = vmatmul.mubr.bf16.gmra.mrb[40].mxu0 %v6493_v47  ;;  %v2019_v50 = vrot.slane %v2017_v42, 4  ;;  %v2022_v51 = vrot.slane %v2020_v43, 5  ;;  %v1871_v52 = vrot.slane %v1796_v31, 4  ;;  %v759_v53 = vmax.f32 %v671_v46, 0.0  ;;  %v5739_v21 = vld [vmem:[#allocation13 + $0x1e8] sm:$0xff]   ;;  %v5714_v34 = vld [vmem:[#allocation13 + $0x110] sm:$0xff]  }
 0x1cb   : > { %v2026_v54 = vshrl.u32 %v1958_v38, 16  ;;  %v2029_v55 = vshll.u32 %v1958_v38, 16  ;;  %v2034_v56 = vshrl.u32 %v1959_v44, 16  ;;  %v1239_v57 = vpack.c.bf16 %v761_v49, %v760_v39  ;;  %v5740_v28 = vld [vmem:[#allocation13 + $0x1a8] sm:$0xff]   ;;  %v1961_v33 = vld [vmem:[#allocation2 + $0x38] sm:$0x1f]  ;;  %5057 = vmatprep.subr.bf16.mxu0 %v5739_v21 }
 0x1cc   : > { %v2023_v58 = vor.u32 %v2022_v51, %v2019_v50  ;;  %v6497_v60 = vsel %vm1863_vm8, %v1870_v9, %v1871_v52  ;;  %v2037_v61 = vshll.u32 %v1959_v44, 16  ;;  %v1238_v1 = vpack.c.bf16 %v759_v53, %v758_v45  ;;  %v5217_v5 = vpop.f32.mrb[16].mxu0  ;;  %v5715_v39 = vld [vmem:[#allocation13 + $0xd0] sm:$0xff]   ;;  %v5716_v45 = vld [vmem:[#allocation13 + $0x118] sm:$0xff]   ;;  %v1962_v52 = vld [vmem:[#allocation2 + $0x40] sm:$0xf0] }
 0x1cd   : > { %2621 = vmatprep.mubr.bf16.mxu0 %v6497_v60  ;;  %v2028_v2 = vrot.slane %v2026_v54, 4  ;;  %v2031_v3 = vrot.slane %v2029_v55, 5  ;;  %v2036_v4 = vrot.slane %v2034_v56, 4  ;;  %v1271_v7 = vrot.slane %v1239_v57, 4  ;;  %v683_v9 = vpop.f32.mrb[17].mxu0  ;;  %5058 = vmatpush3.bf16.msra.mxu0 %v5740_v28  ;;  %v5717_v14 = vld [vmem:[#allocation13 + $0xd8] sm:$0xff]  }
 0x1ce   : > { %v6501_v8 = vsel %vm1990_vm10, %v2015_v48, %v2023_v58  ;;  %v2039_v10 = vrot.slane %v2037_v61, 5  ;;  %v692_v12 = vadd.f32 %v5217_v5, %v6467_v0  ;;  %v1270_v15 = vrot.slane %v1238_v1, 4  ;;  %v5218_v18 = vpop.f32.mrb[18].mxu0  ;;  %v1797_v44 = vld [vmem:[#allocation2 + $0x30] sm:$0xf0] }
 0x1cf   : > { %5288 = vmatmul.mubr.bf16.vlgmr.msra.gmra.mrb[4].mxu1 %v6501_v8  ;;  %v2032_v16 = vor.u32 %v2031_v3, %v2028_v2  ;;  %v684_v17 = vadd.f32 %v6467_v0, %v683_v9  ;;  %v1484_v19 = vshrl.u32 %v1416_v62, 16  ;;  %1311 = vst [vmem:[#allocation2 + $0x88] ss:$-4 sps:$4 sm:$0xff] %v1271_v7   ;;  %v695_v24 = vadd.f32 %v5218_v18, %v6467_v0  ;;  %v686_v25 = vpop.f32.mrb[19].mxu0  ;;  %v1798_v51 = vld [vmem:[#allocation2 + $0x38] sm:$0xf] }
 0x1d0   : > { %4912 = vmatpush3.bf16.msra.mxu1 %v5711_v59  ;;  %v2040_v22 = vor.u32 %v2039_v10, %v2036_v4  ;;  %v764_v23 = vmax.f32 %v692_v12, 0.0  ;;  %v1487_v26 = vshll.u32 %v1416_v62, 16  ;;  %1309 = vst [vmem:[#allocation2 + $0x78] ss:$-4 sps:$4 sm:$0xff] %v1270_v15   ;;  %v687_v30 = vadd.f32 %v6467_v0, %v686_v25  ;;  %v1963_v57 = vld [vmem:[#allocation2 + $0x48] sm:$0x1f] }
 0x1d1   : > { %v762_v29 = vmax.f32 %v684_v17, 0.0  ;;  %4913 = vmatprep.subr.bf16.mxu1 %v5712_v6  ;;  %v1486_v31 = vrot.slane %v1484_v19, 3  ;;  %v1492_v32 = vshrl.u32 %v1417_v13, 16  ;;  %v765_v36 = vmax.f32 %v695_v24, 0.0  ;;  %v1418_v19 = vld [vmem:[#allocation2 + $0x30] sm:$0xf8] }
 0x1d2   : > { %v6509_v35 = vsel %vm1990_vm10, %v2032_v16, %v2040_v22  ;;  %v1489_v37 = vrot.slane %v1487_v26, 4  ;;  %v1495_v38 = vshll.u32 %v1417_v13, 16  ;;  %v763_v40 = vmax.f32 %v687_v30, 0.0  ;;  %v5742_v21 = vld [vmem:[#allocation13 + $0x1f0] sm:$0xff]   ;;  %v1419_v26 = vld [vmem:[#allocation2 + $0x38] sm:$0xf] }
 0x1d3   : > { %5291 = vmatprep.mubr.bf16.mxu1 %v6509_v35  ;;  %v1494_v41 = vrot.slane %v1492_v32, 3  ;;  %v2043_v42 = vshrl.u32 %v1960_v27, 16  ;;  %v2046_v43 = vshll.u32 %v1960_v27, 16  ;;  %v1241_v46 = vpack.c.bf16 %v765_v36, %v764_v23  ;;  %v5743_v27 = vld [vmem:[#allocation13 + $0x1b0] sm:$0xff]   ;;  %5059 = vmatprep.subr.bf16.mxu0 %v5742_v21 }
 0x1d4   : > { %v1490_v48 = vor.u32 %v1489_v37, %v1486_v31  ;;  %v1497_v49 = vrot.slane %v1495_v38, 4  ;;  %v2051_v50 = vshrl.u32 %v1961_v33, 16  ;;  %4914 = vmatpush3.bf16.msra.mxu1 %v5713_v20  ;;  %v1240_v53 = vpack.c.bf16 %v763_v40, %v762_v29  ;;  %v5221_v58 = vpop.f32.mrb[20].mxu0  ;;  %v5718_v20 = vld [vmem:[#allocation13 + $0x120] sm:$0xff]   ;;  %v1964_v32 = vld [vmem:[#allocation2 + $0x50] sm:$0xf0]  ;;  %5060 = vmatpush3.bf16.msra.mxu0 %v5743_v27 }
 0x1d5   : > { %v2045_v54 = vrot.slane %v2043_v42, 4  ;;  %v2048_v55 = vrot.slane %v2046_v43, 5  ;;  %v2054_v56 = vshll.u32 %v1961_v33, 16  ;;  %4915 = vmatprep.subr.bf16.mxu1 %v5714_v34  ;;  %v1273_v59 = vrot.slane %v1241_v46, 4  ;;  %v699_v1 = vpop.f32.mrb[21].mxu0  ;;  %v5719_v38 = vld [vmem:[#allocation13 + $0xe0] sm:$0xff]  }
 0x1d6   : > { %v1498_v61 = vor.u32 %v1497_v49, %v1494_v41  ;;  %v2053_v62 = vrot.slane %v2051_v50, 4  ;;  %v1873_v63 = vrot.slane %v1797_v44, 4  ;;  %v1272_v2 = vrot.slane %v1240_v53, 4  ;;  %v5222_v6 = vpop.f32.mrb[22].mxu0  ;;  %v1965_v44 = vld [vmem:[#allocation2 + $0x58] sm:$0x1f] }
 0x1d7   : > { %v2049_v3 = vor.u32 %v2048_v55, %v2045_v54  ;;  %v2056_v4 = vrot.slane %v2054_v56, 5  ;;  %v1874_v5 = vrot.slane %v1798_v51, 4  ;;  %1315 = vst [vmem:[#allocation2 + $0xa8] ss:$-4 sps:$4 sm:$0xff] %v1273_v59   ;;  %v2060_v10 = vshrl.u32 %v1962_v52, 16  ;;  %v702_v13 = vpop.f32.mrb[23].mxu0 }
 0x1d8   : > { %v6513_v7 = vsel %vm1448_vm9, %v1490_v48, %v1498_v61  ;;  %v2063_v12 = vshll.u32 %v1962_v52, 16  ;;  %v2068_v9 = vshrl.u32 %v1963_v57, 16  ;;  %4916 = vmatpush3.bf16.msra.mxu1 %v5715_v39  ;;  %1313 = vst [vmem:[#allocation2 + $0x98] ss:$-4 sps:$4 sm:$0xff] %v1272_v2   ;;  %v2071_v17 = vshll.u32 %v1963_v57, 16  ;;  %v5720_v39 = vld [vmem:[#allocation13 + $0x128] sm:$0xff]  }
 0x1d9   : > { %2622 = vmatmul.mubr.bf16.gmra.mrb[44].mxu0 %v6513_v7  ;;  %v2057_v15 = vor.u32 %v2056_v4, %v2053_v62  ;;  %v6517_v16 = vsel %vm1863_vm8, %v1873_v63, %v1874_v5  ;;  %v708_v18 = vadd.f32 %v5221_v58, %v6467_v0  ;;  %4917 = vmatprep.subr.bf16.mxu1 %v5716_v45  ;;  %v2062_v22 = vrot.slane %v2060_v10, 4  ;;  %v1799_v45 = vld [vmem:[#allocation2 + $0x40] sm:$0xf0]  ;;  %v5744_v53 = vld [vmem:[#allocation13 + $0x1f8] sm:$0xff]   ;;  %v1800_v58 = vld [vmem:[#allocation2 + $0x48] sm:$0xf] }
 0x1da   : > { %2629 = vmatprep.mubr.bf16.mxu0 %v6517_v16  ;;  %v2065_v23 = vrot.slane %v2063_v12, 5  ;;  %v2070_v24 = vrot.slane %v2068_v9, 4  ;;  %v700_v25 = vadd.f32 %v6467_v0, %v699_v1  ;;  %v2073_v29 = vrot.slane %v2071_v17, 5  ;;  %v5745_v61 = vld [vmem:[#allocation13 + $0x1b8] sm:$0xff]   ;;  %5061 = vmatprep.subr.bf16.mxu0 %v5744_v53  ;;  %v1967_v9 = vld [vmem:[#allocation2 + $0x68] sm:$0x1f] }
 0x1db   : > { %v6523_v28 = vsel %vm1990_vm10, %v2049_v3, %v2057_v15  ;;  %v768_v30 = vmax.f32 %v708_v18, 0.0  ;;  %v711_v31 = vadd.f32 %v5222_v6, %v6467_v0  ;;  %v703_v36 = vadd.f32 %v6467_v0, %v702_v13  ;;  %v1966_v3 = vld [vmem:[#allocation2 + $0x60] sm:$0xf0]  ;;  %v5721_v13 = vld [vmem:[#allocation13 + $0xe8] sm:$0xff]   ;;  %5062 = vmatpush3.bf16.msra.mxu0 %v5745_v61 }
 0x1dc   : > { %5292 = vmatmul.mubr.bf16.gmra.mrb[8].mxu1 %v6523_v28  ;;  %v2066_v33 = vor.u32 %v2065_v23, %v2062_v22  ;;  %v766_v34 = vmax.f32 %v700_v25, 0.0  ;;  %v1501_v37 = vshrl.u32 %v1418_v19, 16  ;;  %v2074_v40 = vor.u32 %v2073_v29, %v2070_v24  ;;  %v5225_v46 = vpop.f32.mrb[24].mxu0 }
 0x1dd   : > { %v769_v41 = vmax.f32 %v711_v31, 0.0  ;;  %v1504_v42 = vshll.u32 %v1418_v19, 16  ;;  %v1509_v43 = vshrl.u32 %v1419_v26, 16  ;;  %4918 = vmatpush3.bf16.msra.mxu1 %v5717_v14  ;;  %v767_v48 = vmax.f32 %v703_v36, 0.0  ;;  %v715_v52 = vpop.f32.mrb[25].mxu0  ;;  %v5722_v19 = vld [vmem:[#allocation13 + $0x130] sm:$0xff]  }
 0x1de   : > { %v1503_v49 = vrot.slane %v1501_v37, 3  ;;  %v1512_v50 = vshll.u32 %v1419_v26, 16  ;;  %v2077_v51 = vshrl.u32 %v1964_v32, 16  ;;  %4919 = vmatprep.subr.bf16.mxu1 %v5718_v20  ;;  %v6529_v54 = vsel %vm1990_vm10, %v2066_v33, %v2074_v40  ;;  %v5226_v59 = vpop.f32.mrb[26].mxu0  ;;  %v1420_v33 = vld [vmem:[#allocation2 + $0x40] sm:$0xf8] }
 0x1df   : > { %v1243_v55 = vpack.c.bf16 %v769_v41, %v768_v30  ;;  %v1506_v56 = vrot.slane %v1504_v42, 4  ;;  %v1511_v57 = vrot.slane %v1509_v43, 3  ;;  %5295 = vmatprep.mubr.bf16.mxu1 %v6529_v54  ;;  %v1242_v62 = vpack.c.bf16 %v767_v48, %v766_v34  ;;  %v718_v4 = vpop.f32.mrb[27].mxu0  ;;  %v5723_v36 = vld [vmem:[#allocation13 + $0xf0] sm:$0xff]   ;;  %v5724_v42 = vld [vmem:[#allocation13 + $0x138] sm:$0xff]  }
 0x1e0   : > { %v1514_v63 = vrot.slane %v1512_v50, 4  ;;  %v2079_v1 = vrot.slane %v2077_v51, 4  ;;  %v2080_v2 = vshll.u32 %v1964_v32, 16  ;;  %v2085_v10 = vshrl.u32 %v1965_v44, 16  ;;  %v1968_v50 = vld [vmem:[#allocation2 + $0x70] sm:$0xf0] }
 0x1e1   : > { %v1275_v5 = vrot.slane %v1243_v55, 4  ;;  %v1507_v6 = vor.u32 %v1506_v56, %v1503_v49  ;;  %v2088_v12 = vshll.u32 %v1965_v44, 16  ;;  %4920 = vmatpush3.bf16.msra.mxu1 %v5719_v38  ;;  %v1274_v14 = vrot.slane %v1242_v62, 4  ;;  %v1421_v49 = vld [vmem:[#allocation2 + $0x48] sm:$0xf] }
 0x1e2   : > { %v1515_v15 = vor.u32 %v1514_v63, %v1511_v57  ;;  %v2082_v17 = vrot.slane %v2080_v2, 5  ;;  %v1876_v18 = vrot.slane %v1799_v45, 4  ;;  %4921 = vmatprep.subr.bf16.mxu1 %v5720_v39  ;;  %v2087_v20 = vrot.slane %v2085_v10, 4  ;;  %v6556_v63 = vld [vmem:[#allocation13 + $0x140] sm:$0xff]  }
 0x1e3   : > { %1319 = vst [vmem:[#allocation2 + $0xc8] ss:$-4 sps:$4 sm:$0xff] %v1275_v5   ;;  %v2090_v21 = vrot.slane %v2088_v12, 5  ;;  %v1877_v22 = vrot.slane %v1800_v58, 4  ;;  %v2094_v23 = vshrl.u32 %v1966_v3, 16  ;;  %v2097_v26 = vshll.u32 %v1966_v3, 16 }
 0x1e4   : > { %1317 = vst [vmem:[#allocation2 + $0xb8] ss:$-4 sps:$4 sm:$0xff] %v1274_v14   ;;  %v6533_v24 = vsel %vm1448_vm9, %v1507_v6, %v1515_v15  ;;  %v2083_v25 = vor.u32 %v2082_v17, %v2079_v1  ;;  %v2102_v27 = vshrl.u32 %v1967_v9, 16  ;;  %v2105_v32 = vshll.u32 %v1967_v9, 16  ;;  %v6539_v34 = vpop.f32.mrb[28].mxu0 }
 0x1e5   : > { %2630 = vmatmul.mubr.bf16.gmra.mrb[48].mxu0 %v6533_v24  ;;  %v2091_v29 = vor.u32 %v2090_v21, %v2087_v20  ;;  %v6537_v30 = vsel %vm1863_vm8, %v1876_v18, %v1877_v22  ;;  %v2096_v31 = vrot.slane %v2094_v23, 4  ;;  %4922 = vmatpush3.bf16.msra.mxu1 %v5721_v13  ;;  %v2099_v37 = vrot.slane %v2097_v26, 5  ;;  %v6544_v41 = vpop.f32.mrb[29].mxu0  ;;  %v1801_v13 = vld [vmem:[#allocation2 + $0x50] sm:$0xf0] }
 0x1e6   : > { %2637 = vmatprep.mubr.bf16.mxu0 %v6537_v30  ;;  %v2104_v38 = vrot.slane %v2102_v27, 4  ;;  %v724_v39 = vadd.f32 %v5225_v46, %v6467_v0  ;;  %v716_v40 = vadd.f32 %v6467_v0, %v715_v52  ;;  %4923 = vmatprep.subr.bf16.mxu1 %v5722_v19  ;;  %v2107_v44 = vrot.slane %v2105_v32, 5  ;;  %v6551_v51 = vpop.f32.mrb[30].mxu0  ;;  %v1802_v14 = vld [vmem:[#allocation2 + $0x58] sm:$0xf] }
 0x1e7   : > { %v6547_v43 = vsel %vm1990_vm10, %v2083_v25, %v2091_v29  ;;  %v727_v45 = vadd.f32 %v5226_v59, %v6467_v0  ;;  %v719_v48 = vadd.f32 %v6467_v0, %v718_v4  ;;  %v2100_v46 = vor.u32 %v2099_v37, %v2096_v31  ;;  %v6554_v56 = vpop.f32.mrb[31].mxu0  ;;  %v5725_v59 = vld [vmem:[#allocation13 + $0xf8] sm:$0xff]   ;;  %v1970_v20 = vld [vmem:[#allocation2 + $0x80] sm:$0xf0]  ;;  %v1971_v26 = vld [vmem:[#allocation2 + $0x88] sm:$0x1f] }
 0x1e8   : > { %5296 = vmatmul.mubr.bf16.gmra.mrb[12].mxu1 %v6547_v43  ;;  %v772_v52 = vmax.f32 %v724_v39, 0.0  ;;  %v770_v53 = vmax.f32 %v716_v40, 0.0  ;;  %v1518_v55 = vshrl.u32 %v1420_v33, 16  ;;  %v2108_v57 = vor.u32 %v2107_v44, %v2104_v38  ;;  %v1969_v4 = vld [vmem:[#allocation2 + $0x78] sm:$0x1f] }
 0x1e9   : > { %v773_v58 = vmax.f32 %v727_v45, 0.0  ;;  %v771_v61 = vmax.f32 %v719_v48, 0.0  ;;  %v1521_v62 = vshll.u32 %v1420_v33, 16  ;;  %4924 = vmatpush3.bf16.msra.mxu1 %v5723_v36  ;;  %v1526_v2 = vshrl.u32 %v1421_v49, 16 }
 0x1ea   : > { %v1520_v1 = vrot.slane %v1518_v55, 3  ;;  %v1529_v3 = vshll.u32 %v1421_v49, 16  ;;  %v2111_v5 = vshrl.u32 %v1968_v50, 16  ;;  %4925 = vmatprep.subr.bf16.mxu1 %v5724_v42  ;;  %v6559_v6 = vsel %vm1990_vm10, %v2100_v46, %v2108_v57 }
 0x1eb   : > { %v1245_v10 = vpack.c.bf16 %v773_v58, %v772_v52  ;;  %v1244_v12 = vpack.c.bf16 %v771_v61, %v770_v53  ;;  %v1523_v9 = vrot.slane %v1521_v62, 4  ;;  %5299 = vmatprep.mubr.bf16.mxu1 %v6559_v6  ;;  %v1528_v15 = vrot.slane %v1526_v2, 3  ;;  %v1422_v52 = vld [vmem:[#allocation2 + $0x50] sm:$0xf8] }
 0x1ec   : > { %v1531_v17 = vrot.slane %v1529_v3, 4  ;;  %v2113_v18 = vrot.slane %v2111_v5, 4  ;;  %v2114_v19 = vshll.u32 %v1968_v50, 16  ;;  %v2119_v25 = vshrl.u32 %v1969_v4, 16  ;;  %v815_v33 = vpop.f32.mrb[32].mxu0 }
 0x1ed   : > { %v1277_v21 = vrot.slane %v1245_v10, 4  ;;  %v1276_v22 = vrot.slane %v1244_v12, 4  ;;  %v1524_v23 = vor.u32 %v1523_v9, %v1520_v1  ;;  %4926 = vmatpush3.bf16.msra.mxu1 %v5725_v59  ;;  %v2122_v31 = vshll.u32 %v1969_v4, 16  ;;  %v5249_v53 = vpop.f32.mrb[33].mxu0  ;;  %v1423_v4 = vld [vmem:[#allocation2 + $0x58] sm:$0xf] }
 0x1ee   : > { %v1532_v27 = vor.u32 %v1531_v17, %v1528_v15  ;;  %v2116_v29 = vrot.slane %v2114_v19, 5  ;;  %v1879_v32 = vrot.slane %v1801_v13, 4  ;;  %5319 = vmatprep.subr.bf16.mxu1 %v6556_v63  ;;  %v2121_v36 = vrot.slane %v2119_v25, 4  ;;  %v818_v62 = vpop.f32.mrb[34].mxu0  ;;  %v1972_v5 = vld [vmem:[#allocation2 + $0x90] sm:$0xf0] }
 0x1ef   : > { %1323 = vst [vmem:[#allocation2 + $0xe8] ss:$-4 sps:$4 sm:$0xff] %v1277_v21   ;;  %1321 = vst [vmem:[#allocation2 + $0xd8] ss:$-4 sps:$4 sm:$0xff] %v1276_v22   ;;  %v1880_v37 = vrot.slane %v1802_v14, 4  ;;  %v2128_v38 = vshrl.u32 %v1970_v20, 16  ;;  %v740_v58 = vadd.f32 %v6539_v34, %v6467_v0  ;;  %v732_v61 = vadd.f32 %v6467_v0, %v6544_v41 }
 0x1f0   : > { %v2131_v39 = vshll.u32 %v1970_v20, 16  ;;  %v6564_v40 = vsel %vm1448_vm9, %v1524_v23, %v1532_v27  ;;  %v2117_v42 = vor.u32 %v2116_v29, %v2113_v18  ;;  %v2124_v44 = vrot.slane %v2122_v31, 5  ;;  %v5250_v10 = vpop.f32.mrb[35].mxu0  ;;  %v1973_v20 = vld [vmem:[#allocation2 + $0x98] sm:$0x1f] }
 0x1f1   : > { %v2136_v45 = vshrl.u32 %v1971_v26, 16  ;;  %2638 = vmatmul.mubr.bf16.gmra.mrb[52].mxu0 %v6564_v40  ;;  %v6568_v48 = vsel %vm1863_vm8, %v1879_v32, %v1880_v37  ;;  %v2130_v49 = vrot.slane %v2128_v38, 4  ;;  %v2139_v46 = vshll.u32 %v1971_v26, 16  ;;  %v1803_v25 = vld [vmem:[#allocation2 + $0x60] sm:$0xf0] }
 0x1f2   : > { %v2133_v50 = vrot.slane %v2131_v39, 5  ;;  %v2125_v55 = vor.u32 %v2124_v44, %v2121_v36  ;;  %2645 = vmatprep.mubr.bf16.mxu0 %v6568_v48  ;;  %v743_v2 = vadd.f32 %v6551_v51, %v6467_v0  ;;  %v735_v3 = vadd.f32 %v6467_v0, %v6554_v56  ;;  %v1804_v26 = vld [vmem:[#allocation2 + $0x68] sm:$0xf]  ;;  %v1974_v33 = vld [vmem:[#allocation2 + $0xa0] sm:$0xf0] }
 0x1f3   : > { %v2138_v57 = vrot.slane %v2136_v45, 4  ;;  %v2141_v1 = vrot.slane %v2139_v46, 5  ;;  %v776_v9 = vmax.f32 %v740_v58, 0.0  ;;  %v774_v34 = vmax.f32 %v732_v61, 0.0  ;;  %v1976_v10 = vld [vmem:[#allocation2 + $0xb0] sm:$0xf0] }
 0x1f4   : > { %v2134_v59 = vor.u32 %v2133_v50, %v2130_v49  ;;  %v6580_v12 = vsel %vm1990_vm10, %v2117_v42, %v2125_v55  ;;  %v1535_v13 = vshrl.u32 %v1422_v52, 16  ;;  %v777_v14 = vmax.f32 %v743_v2, 0.0  ;;  %v1975_v42 = vld [vmem:[#allocation2 + $0xa8] sm:$0x1f] }
 0x1f5   : > { %5300 = vmatmul.mubr.bf16.gmra.mrb[16].mxu1 %v6580_v12  ;;  %v2142_v41 = vor.u32 %v2141_v1, %v2138_v57  ;;  %v775_v15 = vmax.f32 %v735_v3, 0.0  ;;  %v1538_v17 = vshll.u32 %v1422_v52, 16  ;;  %v1543_v51 = vshrl.u32 %v1423_v4, 16  ;;  %v1424_v57 = vld [vmem:[#allocation2 + $0x60] sm:$0xf8] }
 0x1f6   : > { %v1537_v18 = vrot.slane %v1535_v13, 3  ;;  %v1546_v19 = vshll.u32 %v1423_v4, 16  ;;  %v2145_v0 = vshrl.u32 %v1972_v5, 16  ;;  %v1247_v21 = vpack.c.bf16 %v777_v14, %v776_v9  ;;  %v1425_v1 = vld [vmem:[#allocation2 + $0x68] sm:$0xf] }
 0x1f7   : > { %v6584_v56 = vsel %vm1990_vm10, %v2134_v59, %v2142_v41  ;;  %v1246_v22 = vpack.c.bf16 %v775_v15, %v774_v34  ;;  %v1540_v23 = vrot.slane %v1538_v17, 4  ;;  %v1545_v27 = vrot.slane %v1543_v51, 3  ;;  %v1805_v14 = vld [vmem:[#allocation2 + $0x70] sm:$0xf0] }
 0x1f8   : > { %5303 = vmatprep.mubr.bf16.mxu1 %v6584_v56  ;;  %v1548_v29 = vrot.slane %v1546_v19, 4  ;;  %v2147_v31 = vrot.slane %v2145_v0, 4  ;;  %v2148_v32 = vshll.u32 %v1972_v5, 16  ;;  %v1279_v36 = vrot.slane %v1247_v21, 4  ;;  %v1977_v19 = vld [vmem:[#allocation2 + $0xb8] sm:$0x1f] }
 0x1f9   : > { %v1278_v37 = vrot.slane %v1246_v22, 4  ;;  %v1541_v38 = vor.u32 %v1540_v23, %v1537_v18  ;;  %v2153_v39 = vshrl.u32 %v1973_v20, 16  ;;  %v2156_v49 = vshll.u32 %v1973_v20, 16  ;;  %v1806_v23 = vld [vmem:[#allocation2 + $0x78] sm:$0xf] }
 0x1fa   : > { %v1549_v44 = vor.u32 %v1548_v29, %v1545_v27  ;;  %v2150_v45 = vrot.slane %v2148_v32, 5  ;;  %v1882_v50 = vrot.slane %v1803_v25, 4  ;;  %1327 = vst [vmem:[#allocation2 + $0x108] ss:$-4 sps:$4 sm:$0xff] %v1279_v36   ;;  %v1883_v52 = vrot.slane %v1804_v26, 4 }
 0x1fb   : > { %1325 = vst [vmem:[#allocation2 + $0xf8] ss:$-4 sps:$4 sm:$0xff] %v1278_v37   ;;  %v2155_v46 = vrot.slane %v2153_v39, 4  ;;  %v2162_v53 = vshrl.u32 %v1974_v33, 16  ;;  %v2165_v55 = vshll.u32 %v1974_v33, 16  ;;  %v2158_v62 = vrot.slane %v2156_v49, 5 }
 0x1fc   : > { %v6588_v58 = vsel %vm1448_vm9, %v1541_v38, %v1549_v44  ;;  %v2151_v61 = vor.u32 %v2150_v45, %v2147_v31  ;;  %v2170_v59 = vshrl.u32 %v1975_v42, 16  ;;  %v6592_v2 = vsel %vm1863_vm8, %v1882_v50, %v1883_v52  ;;  %v1978_v31 = vld [vmem:[#allocation2 + $0xc0] sm:$0xf0]  ;;  %v1979_v38 = vld [vmem:[#allocation2 + $0xc8] sm:$0x1f] }
 0x1fd   : > { %2646 = vmatmul.mubr.bf16.gmra.mrb[56].mxu0 %v6588_v58  ;;  %v2164_v3 = vrot.slane %v2162_v53, 4  ;;  %v2167_v4 = vrot.slane %v2165_v55, 5  ;;  %v2173_v5 = vshll.u32 %v1975_v42, 16  ;;  %v2159_v9 = vor.u32 %v2158_v62, %v2155_v46  ;;  %v1426_v53 = vld [vmem:[#allocation2 + $0x70] sm:$0xf8] }
 0x1fe   : > { %2653 = vmatprep.mubr.bf16.mxu0 %v6592_v2  ;;  %v2172_v34 = vrot.slane %v2170_v59, 4  ;;  %v1552_v13 = vshrl.u32 %v1424_v57, 16  ;;  %v1555_v41 = vshll.u32 %v1424_v57, 16  ;;  %v1560_v18 = vshrl.u32 %v1425_v1, 16  ;;  %v1427_v59 = vld [vmem:[#allocation2 + $0x78] sm:$0xf] }
 0x1ff   : > { %v2168_v15 = vor.u32 %v2167_v4, %v2164_v3  ;;  %v2175_v17 = vrot.slane %v2173_v5, 5  ;;  %v1563_v51 = vshll.u32 %v1425_v1, 16  ;;  %v6596_v20 = vsel %vm1990_vm10, %v2151_v61, %v2159_v9 }
 0x200   : > { %v1554_v0 = vrot.slane %v1552_v13, 3  ;;  %v1557_v21 = vrot.slane %v1555_v41, 4  ;;  %v2179_v22 = vshrl.u32 %v1976_v10, 16  ;;  %5304 = vmatmul.mubr.bf16.gmra.mrb[20].mxu1 %v6596_v20  ;;  %v1562_v26 = vrot.slane %v1560_v18, 3 }
 0x201   : > { %v2176_v25 = vor.u32 %v2175_v17, %v2172_v34  ;;  %v1565_v27 = vrot.slane %v1563_v51, 4  ;;  %v2182_v29 = vshll.u32 %v1976_v10, 16  ;;  %v2187_v36 = vshrl.u32 %v1977_v19, 16  ;;  %v1980_v10 = vld [vmem:[#allocation2 + $0xd0] sm:$0xf0] }
 0x202   : > { %v1558_v32 = vor.u32 %v1557_v21, %v1554_v0  ;;  %v2181_v33 = vrot.slane %v2179_v22, 4  ;;  %v2190_v37 = vshll.u32 %v1977_v19, 16  ;;  %v1885_v45 = vrot.slane %v1805_v14, 4  ;;  %v1807_v14 = vld [vmem:[#allocation2 + $0x80] sm:$0xf0] }
 0x203   : > { %v6600_v39 = vsel %vm1990_vm10, %v2168_v15, %v2176_v25  ;;  %v1566_v42 = vor.u32 %v1565_v27, %v1562_v26  ;;  %v2184_v44 = vrot.slane %v2182_v29, 5  ;;  %v2189_v49 = vrot.slane %v2187_v36, 4  ;;  %v1981_v19 = vld [vmem:[#allocation2 + $0xd8] sm:$0x1f]  ;;  %v1808_v25 = vld [vmem:[#allocation2 + $0x88] sm:$0xf] }
 0x204   : > { %5307 = vmatprep.mubr.bf16.mxu1 %v6600_v39  ;;  %v2192_v50 = vrot.slane %v2190_v37, 5  ;;  %v1886_v46 = vrot.slane %v1806_v23, 4  ;;  %v2196_v52 = vshrl.u32 %v1978_v31, 16  ;;  %v2199_v61 = vshll.u32 %v1978_v31, 16 }
 0x205   : > { %v6604_v55 = vsel %vm1448_vm9, %v1558_v32, %v1566_v42  ;;  %v2185_v57 = vor.u32 %v2184_v44, %v2181_v33  ;;  %v2204_v62 = vshrl.u32 %v1979_v38, 16  ;;  %v2207_v5 = vshll.u32 %v1979_v38, 16  ;;  %v1982_v32 = vld [vmem:[#allocation2 + $0xe0] sm:$0xf0]  ;;  %v1983_v42 = vld [vmem:[#allocation2 + $0xe8] sm:$0x1f] }
 0x206   : > { %2654 = vmatmul.mubr.bf16.gmra.mrb[60].mxu0 %v6604_v55  ;;  %v2193_v1 = vor.u32 %v2192_v50, %v2189_v49  ;;  %v6608_v3 = vsel %vm1863_vm8, %v1885_v45, %v1886_v46  ;;  %v2198_v4 = vrot.slane %v2196_v52, 4  ;;  %v2201_v9 = vrot.slane %v2199_v61, 5  ;;  %v1428_v61 = vld [vmem:[#allocation2 + $0x80] sm:$0xf8] }
 0x207   : > { %2661 = vmatprep.mubr.bf16.mxu0 %v6608_v3  ;;  %v2206_v34 = vrot.slane %v2204_v62, 4  ;;  %v1569_v13 = vshrl.u32 %v1426_v53, 16  ;;  %v1572_v41 = vshll.u32 %v1426_v53, 16  ;;  %v2209_v17 = vrot.slane %v2207_v5, 5  ;;  %v1429_v5 = vld [vmem:[#allocation2 + $0x88] sm:$0xf] }
 0x208   : > { %v6612_v15 = vsel %vm1990_vm10, %v2185_v57, %v2193_v1  ;;  %v1577_v18 = vshrl.u32 %v1427_v59, 16  ;;  %v1580_v51 = vshll.u32 %v1427_v59, 16  ;;  %v2202_v0 = vor.u32 %v2201_v9, %v2198_v4 }
 0x209   : > { %5308 = vmatmul.mubr.bf16.gmra.mrb[24].mxu1 %v6612_v15  ;;  %v1571_v21 = vrot.slane %v1569_v13, 3  ;;  %v1574_v22 = vrot.slane %v1572_v41, 4  ;;  %v2213_v23 = vshrl.u32 %v1980_v10, 16  ;;  %v2210_v26 = vor.u32 %v2209_v17, %v2206_v34  ;;  %v1984_v41 = vld [vmem:[#allocation2 + $0xf0] sm:$0xf0] }
 0x20a   : > { %v1579_v27 = vrot.slane %v1577_v18, 3  ;;  %v1582_v29 = vrot.slane %v1580_v51, 4  ;;  %v2216_v31 = vshll.u32 %v1980_v10, 16  ;;  %v2221_v37 = vshrl.u32 %v1981_v19, 16 }
 0x20b   : > { %v1575_v33 = vor.u32 %v1574_v22, %v1571_v21  ;;  %v2215_v36 = vrot.slane %v2213_v23, 4  ;;  %v2224_v38 = vshll.u32 %v1981_v19, 16  ;;  %v6616_v44 = vsel %vm1990_vm10, %v2202_v0, %v2210_v26  ;;  %v1809_v19 = vld [vmem:[#allocation2 + $0x90] sm:$0xf0] }
 0x20c   : > { %v1583_v45 = vor.u32 %v1582_v29, %v1579_v27  ;;  %v2218_v49 = vrot.slane %v2216_v31, 5  ;;  %v1888_v50 = vrot.slane %v1807_v14, 4  ;;  %5311 = vmatprep.mubr.bf16.mxu1 %v6616_v44  ;;  %v2223_v46 = vrot.slane %v2221_v37, 4 }
 0x20d   : > { %v2226_v52 = vrot.slane %v2224_v38, 5  ;;  %v1889_v53 = vrot.slane %v1808_v25, 4  ;;  %v2230_v57 = vshrl.u32 %v1982_v32, 16  ;;  %v2233_v1 = vshll.u32 %v1982_v32, 16  ;;  %v1985_v25 = vld [vmem:[#allocation2 + $0xf8] sm:$0x1f] }
 0x20e   : > { %v6620_v62 = vsel %vm1448_vm9, %v1575_v33, %v1583_v45  ;;  %v2219_v59 = vor.u32 %v2218_v49, %v2215_v36  ;;  %v2238_v4 = vshrl.u32 %v1983_v42, 16  ;;  %v2241_v13 = vshll.u32 %v1983_v42, 16  ;;  %v1810_v32 = vld [vmem:[#allocation2 + $0x98] sm:$0xf]  ;;  %v1430_v42 = vld [vmem:[#allocation2 + $0x90] sm:$0xf8] }
 0x20f   : > { %2662 = vmatmul.mubr.bf16.gmra.mrb[64].mxu0 %v6620_v62  ;;  %v2227_v10 = vor.u32 %v2226_v52, %v2223_v46  ;;  %v6624_v9 = vsel %vm1863_vm8, %v1888_v50, %v1889_v53  ;;  %v2232_v34 = vrot.slane %v2230_v57, 4  ;;  %v2235_v14 = vrot.slane %v2233_v1, 5  ;;  %v1431_v52 = vld [vmem:[#allocation2 + $0x98] sm:$0xf] }
 0x210   : > { %2669 = vmatprep.mubr.bf16.mxu0 %v6624_v9  ;;  %v2240_v17 = vrot.slane %v2238_v4, 4  ;;  %v1586_v18 = vshrl.u32 %v1428_v61, 16  ;;  %v1589_v51 = vshll.u32 %v1428_v61, 16  ;;  %v2243_v21 = vrot.slane %v2241_v13, 5 }
 0x211   : > { %v6628_v0 = vsel %vm1990_vm10, %v2219_v59, %v2227_v10  ;;  %v1594_v22 = vshrl.u32 %v1429_v5, 16  ;;  %v1597_v23 = vshll.u32 %v1429_v5, 16  ;;  %v2236_v26 = vor.u32 %v2235_v14, %v2232_v34 }
 0x212   : > { %5312 = vmatmul.mubr.bf16.gmra.mrb[28].mxu1 %v6628_v0  ;;  %v1588_v27 = vrot.slane %v1586_v18, 3  ;;  %v1591_v29 = vrot.slane %v1589_v51, 4  ;;  %v2247_v31 = vshrl.u32 %v1984_v41, 16  ;;  %v2244_v33 = vor.u32 %v2243_v21, %v2240_v17  ;;  %v1432_v17 = vld [vmem:[#allocation2 + $0xa0] sm:$0xf8] }
 0x213   : > { %v1596_v36 = vrot.slane %v1594_v22, 3  ;;  %v1599_v37 = vrot.slane %v1597_v23, 4  ;;  %v2250_v38 = vshll.u32 %v1984_v41, 16  ;;  %v2255_v50 = vshrl.u32 %v1985_v25, 16  ;;  %v1433_v22 = vld [vmem:[#allocation2 + $0xa8] sm:$0xf] }
 0x214   : > { %v1592_v45 = vor.u32 %v1591_v29, %v1588_v27  ;;  %v2249_v49 = vrot.slane %v2247_v31, 4  ;;  %v2258_v46 = vshll.u32 %v1985_v25, 16  ;;  %v6632_v53 = vsel %vm1990_vm10, %v2236_v26, %v2244_v33  ;;  %v1811_v26 = vld [vmem:[#allocation2 + $0xa0] sm:$0xf0]  ;;  %v1812_v27 = vld [vmem:[#allocation2 + $0xa8] sm:$0xf] }
 0x215   : > { %v1600_v57 = vor.u32 %v1599_v37, %v1596_v36  ;;  %v2252_v61 = vrot.slane %v2250_v38, 5  ;;  %v1891_v59 = vrot.slane %v1809_v19, 4  ;;  %5315 = vmatprep.mubr.bf16.mxu1 %v6632_v53  ;;  %v2257_v1 = vrot.slane %v2255_v50, 4 }
 0x216   : > { %v2260_v4 = vrot.slane %v2258_v46, 5  ;;  %v1892_v5 = vrot.slane %v1810_v32, 4  ;;  %v1603_v10 = vshrl.u32 %v1430_v42, 16  ;;  %v1606_v41 = vshll.u32 %v1430_v42, 16 }
 0x217   : > { %v6636_v34 = vsel %vm1448_vm9, %v1592_v45, %v1600_v57  ;;  %v2253_v13 = vor.u32 %v2252_v61, %v2249_v49  ;;  %v1611_v14 = vshrl.u32 %v1431_v52, 16  ;;  %v1614_v21 = vshll.u32 %v1431_v52, 16 }
 0x218   : > { %2670 = vmatmul.mubr.bf16.gmra.mrb[68].mxu0 %v6636_v34  ;;  %v2261_v18 = vor.u32 %v2260_v4, %v2257_v1  ;;  %v6640_v51 = vsel %vm1863_vm8, %v1891_v59, %v1892_v5  ;;  %v1605_v19 = vrot.slane %v1603_v10, 3  ;;  %v1608_v23 = vrot.slane %v1606_v41, 4  ;;  %v1434_v59 = vld [vmem:[#allocation2 + $0xb0] sm:$0xf8]  ;;  %v1435_v4 = vld [vmem:[#allocation2 + $0xb8] sm:$0xf] }
 0x219   : > { %2677 = vmatprep.mubr.bf16.mxu0 %v6640_v51  ;;  %v1613_v25 = vrot.slane %v1611_v14, 3  ;;  %v1616_v31 = vrot.slane %v1614_v21, 4  ;;  %v1620_v32 = vshrl.u32 %v1432_v17, 16  ;;  %v1623_v33 = vshll.u32 %v1432_v17, 16  ;;  %v1814_v5 = vld [vmem:[#allocation2 + $0xb8] sm:$0xf] }
 0x21a   : > { %v6644_v29 = vsel %vm1990_vm10, %v2253_v13, %v2261_v18  ;;  %v1609_v36 = vor.u32 %v1608_v23, %v1605_v19  ;;  %v1628_v37 = vshrl.u32 %v1433_v22, 16  ;;  %v1631_v38 = vshll.u32 %v1433_v22, 16  ;;  %v5731_v10 = vld [vmem:[#allocation13 + $0x148] sm:$0xff]   ;;  %v5734_v23 = vld [vmem:[#allocation13 + $0x150] sm:$0xff]  }
 0x21b   : > { %5316 = vmatmul.mubr.bf16.gmra.mrb[32].mxu1 %v6644_v29  ;;  %v1617_v42 = vor.u32 %v1616_v31, %v1613_v25  ;;  %v1894_v45 = vrot.slane %v1811_v26, 4  ;;  %v1895_v49 = vrot.slane %v1812_v27, 4  ;;  %v1622_v50 = vrot.slane %v1620_v32, 3 }
 0x21c   : > { %3201 = vmatprep.mubr.bf16.mxu1 %v6485_v11  ;;  %v1625_v46 = vrot.slane %v1623_v33, 4  ;;  %v1630_v57 = vrot.slane %v1628_v37, 3  ;;  %v1633_v61 = vrot.slane %v1631_v38, 4  ;;  %v1813_v11 = vld [vmem:[#allocation2 + $0xb0] sm:$0xf0]  ;;  %v1637_v41 = vshrl.u32 %v1434_v59, 16 }
 0x21d   : > { %v6649_v52 = vsel %vm1448_vm9, %v1609_v36, %v1617_v42  ;;  %v6653_v1 = vsel %vm1863_vm8, %v1894_v45, %v1895_v49  ;;  %v1640_v17 = vshll.u32 %v1434_v59, 16  ;;  %v1645_v18 = vshrl.u32 %v1435_v4, 16  ;;  %v1815_v36 = vld [vmem:[#allocation2 + $0xc0] sm:$0xf0]  ;;  %v1816_v37 = vld [vmem:[#allocation2 + $0xc8] sm:$0xf] }
 0x21e   : > { %v1626_v13 = vor.u32 %v1625_v46, %v1622_v50  ;;  %v1634_v14 = vor.u32 %v1633_v61, %v1630_v57  ;;  %v1648_v19 = vshll.u32 %v1435_v4, 16  ;;  %v1897_v21 = vrot.slane %v1813_v11, 4  ;;  %v5741_v38 = vld [vmem:[#allocation13 + $0x158] sm:$0xff]   ;;  %v4791_v4 = vpop.f32.mrb[36].mxu0  ;;  %v5746_v11 = vld [vmem:[#allocation13 + $0x160] sm:$0xff]  }
 0x21f   : > { %v1898_v22 = vrot.slane %v1814_v5, 4  ;;  %v1639_v25 = vrot.slane %v1637_v41, 3  ;;  %v1642_v27 = vrot.slane %v1640_v17, 4  ;;  %v1647_v31 = vrot.slane %v1645_v18, 3  ;;  %v4792_v5 = vpop.f32.mrb[37].mxu0 }
 0x220   : > { %2678 = vmatmul.mubr.bf16.gmra.mrb[72].mxu0 %v6649_v52  ;;  %v6660_v26 = vsel %vm1448_vm9, %v1626_v13, %v1634_v14  ;;  %v1650_v32 = vrot.slane %v1648_v19, 4  ;;  %v1900_v61 = vrot.slane %v1815_v36, 4  ;;  %v1901_v59 = vrot.slane %v1816_v37, 4  ;;  %v1438_v18 = vld [vmem:[#allocation2 + $0xd0] sm:$0xf8] }
 0x221   : > { %2685 = vmatprep.mubr.bf16.mxu0 %v6653_v1  ;;  %v6664_v33 = vsel %vm1863_vm8, %v1897_v21, %v1898_v22  ;;  %v1643_v49 = vor.u32 %v1642_v27, %v1639_v25  ;;  %v1439_v21 = vld [vmem:[#allocation2 + $0xd8] sm:$0xf]  ;;  %v1817_v22 = vld [vmem:[#allocation2 + $0xd0] sm:$0xf0]  ;;  %v5747_v25 = vld [vmem:[#allocation13 + $0x168] sm:$0xff]   ;;  %v6677_v27 = vadd.f32 %v4792_v5, %v4791_v4 }
 0x222   : > { %v1651_v50 = vor.u32 %v1650_v32, %v1647_v31  ;;  %v6674_v19 = vsel %vm1863_vm8, %v1900_v61, %v1901_v59  ;;  %v1671_v32 = vshrl.u32 %v1438_v18, 16  ;;  %v1679_v36 = vshrl.u32 %v1439_v21, 16 }
 0x223   : > { %3202 = vmatmul.mubr.bf16.vlgmr.msra.gmra.mrb[36].mxu1 %v6493_v47  ;;  %v1436_v47 = vld [vmem:[#allocation2 + $0xc0] sm:$0xf8]  ;;  %v1682_v37 = vshll.u32 %v1439_v21, 16 }
 0x224   : > { %5320 = vmatpush3.bf16.msra.mxu1 %v6556_v63  ;;  %3209 = vmatprep.mubr.bf16.mxu1 %v6497_v60  ;;  %v1437_v63 = vld [vmem:[#allocation2 + $0xc8] sm:$0xf]  ;;  %v1654_v42 = vshrl.u32 %v1436_v47, 16  ;;  %v1657_v45 = vshll.u32 %v1436_v47, 16  ;;  %v6670_v41 = vsel %vm1448_vm9, %v1643_v49, %v1651_v50  ;;  %v5748_v50 = vld [vmem:[#allocation13 + $0x170] sm:$0xff]   ;;  %v1681_v4 = vrot.slane %v1679_v36, 3 }
 0x225   : > { %5321 = vmatprep.subr.bf16.mxu1 %v5731_v10  ;;  %v1662_v46 = vshrl.u32 %v1437_v63, 16  ;;  %v1665_v57 = vshll.u32 %v1437_v63, 16  ;;  %v1674_v63 = vshll.u32 %v1438_v18, 16  ;;  %v1684_v5 = vrot.slane %v1682_v37, 4  ;;  %v5749_v18 = vld [vmem:[#allocation13 + $0x178] sm:$0xff]  }
 0x226   : > { %v1659_v13 = vrot.slane %v1657_v45, 4 }
 0x227   : > { %v1664_v14 = vrot.slane %v1662_v46, 3  ;;  %v1667_v17 = vrot.slane %v1665_v57, 4  ;;  %v1673_v57 = vrot.slane %v1671_v32, 3  ;;  %v1676_v59 = vrot.slane %v1674_v63, 4 }
 0x228   : > { %2686 = vmatmul.mubr.bf16.gmra.mrb[76].mxu0 %v6660_v26  ;;  %5322 = vmatpush3.bf16.msra.mxu1 %v5731_v10  ;;  %v1656_v10 = vrot.slane %v1654_v42, 3  ;;  %v4794_v42 = vpop.f32.mrb[38].mxu0 }
 0x229   : > { %2693 = vmatprep.mubr.bf16.mxu0 %v6664_v33  ;;  %5323 = vmatprep.subr.bf16.mxu1 %v5734_v23  ;;  %v1668_v47 = vor.u32 %v1667_v17, %v1664_v14  ;;  %v4795_v49 = vpop.f32.mrb[39].mxu0  ;;  %v1441_v14 = vld [vmem:[#allocation2 + $0xe8] sm:$0xf] }
 0x22a   : > { %v1660_v31 = vor.u32 %v1659_v13, %v1656_v10  ;;  %v6681_v46 = vadd.f32 %v4795_v49, %v4794_v42  ;;  %v1440_v10 = vld [vmem:[#allocation2 + $0xe0] sm:$0xf8]  ;;  %v1820_v17 = vld [vmem:[#allocation2 + $0xe8] sm:$0xf]  ;;  %v1696_v32 = vshrl.u32 %v1441_v14, 16 }
 0x22b   : > { %3210 = vmatmul.mubr.bf16.gmra.mrb[40].mxu1 %v6513_v7  ;;  %v1688_v21 = vshrl.u32 %v1440_v10, 16  ;;  %v1907_v36 = vrot.slane %v1820_v17, 4 }
 0x22c   : > { %3217 = vmatprep.mubr.bf16.mxu1 %v6517_v16  ;;  %5324 = vmatpush3.bf16.msra.mxu1 %v5734_v23  ;;  %v1818_v23 = vld [vmem:[#allocation2 + $0xd8] sm:$0xf]  ;;  %v6684_v61 = vsel %vm1448_vm9, %v1660_v31, %v1668_v47  ;;  %v1685_v31 = vor.u32 %v1684_v5, %v1681_v4  ;;  %v1699_v47 = vshll.u32 %v1441_v14, 16 }
 0x22d   : > { %5325 = vmatprep.subr.bf16.mxu1 %v5741_v38  ;;  %v1904_v45 = vrot.slane %v1818_v23, 4  ;;  %v1677_v23 = vor.u32 %v1676_v59, %v1673_v57  ;;  %v1690_v37 = vrot.slane %v1688_v21, 3  ;;  %v1443_v59 = vld [vmem:[#allocation2 + $0xf8] sm:$0xf] }
 0x22e   : > { %v1701_v49 = vrot.slane %v1699_v47, 4  ;;  %v1822_v4 = vld [vmem:[#allocation2 + $0xf8] sm:$0xf]  ;;  %v1713_v21 = vshrl.u32 %v1443_v59, 16 }
 0x230   : > { %2694 = vmatmul.mubr.bf16.gmra.mrb[80].mxu0 %v6670_v41  ;;  %5326 = vmatpush3.bf16.msra.mxu1 %v5741_v38  ;;  %v1903_v38 = vrot.slane %v1817_v22, 4  ;;  %v1691_v22 = vshll.u32 %v1440_v10, 16  ;;  %v1442_v10 = vld [vmem:[#allocation2 + $0xf0] sm:$0xf8] }
 0x231   : > { %2701 = vmatprep.mubr.bf16.mxu0 %v6674_v19  ;;  %5327 = vmatprep.subr.bf16.mxu1 %v5746_v11  ;;  %v1705_v14 = vshrl.u32 %v1442_v10, 16  ;;  %v1708_v17 = vshll.u32 %v1442_v10, 16 }
 0x232   : > { %v6688_v13 = vsel %vm1863_vm8, %v1903_v38, %v1904_v45  ;;  %v1693_v42 = vrot.slane %v1691_v22, 4  ;;  %v6696_v38 = vsel %vm1448_vm9, %v1677_v23, %v1685_v31  ;;  %v1698_v45 = vrot.slane %v1696_v32, 3 }
 0x233   : > { %3218 = vmatmul.mubr.bf16.gmra.mrb[44].mxu1 %v6533_v24  ;;  %v1716_v22 = vshll.u32 %v1443_v59, 16  ;;  %v1910_v31 = vrot.slane %v1822_v4, 4  ;;  %v1707_v32 = vrot.slane %v1705_v14, 3  ;;  %v1710_v47 = vrot.slane %v1708_v17, 4 }
 0x234   : > { %3225 = vmatprep.mubr.bf16.mxu1 %v6537_v30  ;;  %5328 = vmatpush3.bf16.msra.mxu1 %v5746_v11  ;;  %v1819_v11 = vld [vmem:[#allocation2 + $0xe0] sm:$0xf0]  ;;  %v1694_v5 = vor.u32 %v1693_v42, %v1690_v37 }
 0x235   : > { %5329 = vmatprep.subr.bf16.mxu1 %v5747_v25  ;;  %v1906_v63 = vrot.slane %v1819_v11, 4  ;;  %v1702_v11 = vor.u32 %v1701_v49, %v1698_v45  ;;  %v1711_v42 = vor.u32 %v1710_v47, %v1707_v32  ;;  %v5757_v32 = vld [vmem:[#allocation13 + $0x238] sm:$0xff]  }
 0x237   : > { %v6700_v57 = vsel %vm1863_vm8, %v1906_v63, %v1907_v36  ;;  %v1715_v63 = vrot.slane %v1713_v21, 3  ;;  %v1718_v36 = vrot.slane %v1716_v22, 4 }
 0x238   : > { %2702 = vmatmul.mubr.bf16.gmra.mrb[84].mxu0 %v6684_v61  ;;  %5330 = vmatpush3.bf16.msra.mxu1 %v5747_v25  ;;  %v6693_v25 = vld [vmem:[#allocation13 + $0x200] sm:$0xff]  }
 0x239   : > { %2709 = vmatprep.mubr.bf16.mxu0 %v6688_v13  ;;  %5331 = vmatprep.subr.bf16.mxu1 %v5748_v50  ;;  %v1719_v45 = vor.u32 %v1718_v36, %v1715_v63 }
 0x23b   : > { %3226 = vmatmul.mubr.bf16.gmra.mrb[48].mxu1 %v6564_v40  ;;  %v6717_v49 = vsel %vm1448_vm9, %v1711_v42, %v1719_v45  ;;  %v1447_v42 = vld [vmem:[#allocation2 + $0x118] sm:$0xf]  ;;  %v1825_v45 = vld [vmem:[#allocation2 + $0x110] sm:$0xf0] }
 0x23c   : > { %3233 = vmatprep.mubr.bf16.mxu1 %v6568_v48  ;;  %5332 = vmatpush3.bf16.msra.mxu1 %v5748_v50  ;;  %v1821_v50 = vld [vmem:[#allocation2 + $0xf0] sm:$0xf0] }
 0x23d   : > { %5333 = vmatprep.subr.bf16.mxu1 %v5749_v18  ;;  %v1909_v23 = vrot.slane %v1821_v50, 4 }
 0x23f   : > { %v6711_v37 = vsel %vm1863_vm8, %v1909_v23, %v1910_v31  ;;  %v5756_v23 = vld [vmem:[#allocation13 + $0x230] sm:$0xff]  }
 0x240   : > { %2710 = vmatmul.mubr.bf16.gmra.mrb[88].mxu0 %v6696_v38  ;;  %5334 = vmatpush3.bf16.msra.mxu1 %v5749_v18  ;;  %v6707_v18 = vsel %vm1448_vm9, %v1694_v5, %v1702_v11 }
 0x241   : > { %2717 = vmatprep.mubr.bf16.mxu0 %v6700_v57  ;;  %5367 = vmatprep.subr.bf16.mxu1 %v6693_v25 }
 0x243   : > { %3234 = vmatmul.mubr.bf16.gmra.mrb[52].mxu1 %v6588_v58 }
 0x244   : > { %3241 = vmatprep.mubr.bf16.mxu1 %v6592_v2 }
 0x248   : > { %2718 = vmatmul.mubr.bf16.gmra.mrb[92].mxu0 %v6707_v18 }
 0x249   : > { %2725 = vmatprep.mubr.bf16.mxu0 %v6711_v37 }
 0x24b   : > { %3242 = vmatmul.mubr.bf16.gmra.mrb[56].mxu1 %v6604_v55 }
 0x24c   : > { %3249 = vmatprep.mubr.bf16.mxu1 %v6608_v3 }
 0x250   : > { %2726 = vmatmul.mubr.bf16.gmra.mrb[96].mxu0 %v6717_v49 }
 0x251   : > { %3861 = vmatprep.mubr.bf16.mxu0 %v6497_v60  ;;  %v1444_v60 = vld [vmem:[#allocation2 + $0x100] sm:$0xf8] }
 0x253   : > { %3250 = vmatmul.mubr.bf16.gmra.mrb[60].mxu1 %v6620_v62 }
 0x254   : > { %3257 = vmatprep.mubr.bf16.mxu1 %v6624_v9 }
 0x258   : > { %3862 = vmatmul.mubr.bf16.vlgmr.msra.gmra.mrb[100].mxu0 %v6513_v7  ;;  %v1445_v7 = vld [vmem:[#allocation2 + $0x108] sm:$0xf] }
 0x259   : > { %3869 = vmatprep.mubr.bf16.mxu0 %v6517_v16  ;;  %v1823_v16 = vld [vmem:[#allocation2 + $0x100] sm:$0xf0] }
 0x25b   : > { %3258 = vmatmul.mubr.bf16.gmra.mrb[64].mxu1 %v6636_v34 }
 0x25c   : > { %3265 = vmatprep.mubr.bf16.mxu1 %v6640_v51 }
 0x260   : > { %3870 = vmatmul.mubr.bf16.gmra.mrb[104].mxu0 %v6533_v24  ;;  %v1824_v24 = vld [vmem:[#allocation2 + $0x108] sm:$0xf] }
 0x261   : > { %3877 = vmatprep.mubr.bf16.mxu0 %v6537_v30  ;;  %v1722_v30 = vshrl.u32 %v1444_v60, 16 }
 0x263   : > { %3266 = vmatmul.mubr.bf16.gmra.mrb[68].mxu1 %v6649_v52 }
 0x264   : > { %3273 = vmatprep.mubr.bf16.mxu1 %v6653_v1 }
 0x268   : > { %3878 = vmatmul.mubr.bf16.gmra.mrb[108].mxu0 %v6564_v40  ;;  %v1725_v40 = vshll.u32 %v1444_v60, 16  ;;  %v1826_v60 = vld [vmem:[#allocation2 + $0x118] sm:$0xf] }
 0x269   : > { %3885 = vmatprep.mubr.bf16.mxu0 %v6568_v48  ;;  %v1730_v48 = vshrl.u32 %v1445_v7, 16 }
 0x26b   : > { %3274 = vmatmul.mubr.bf16.gmra.mrb[72].mxu1 %v6660_v26 }
 0x26c   : > { %3281 = vmatprep.mubr.bf16.mxu1 %v6664_v33 }
 0x270   : > { %3886 = vmatmul.mubr.bf16.gmra.mrb[112].mxu0 %v6588_v58  ;;  %v1733_v58 = vshll.u32 %v1445_v7, 16 }
 0x271   : > { %3893 = vmatprep.mubr.bf16.mxu0 %v6592_v2  ;;  %v1912_v2 = vrot.slane %v1823_v16, 4  ;;  %v1747_v16 = vshrl.u32 %v1447_v42, 16 }
 0x273   : > { %3282 = vmatmul.mubr.bf16.gmra.mrb[76].mxu1 %v6670_v41 }
 0x274   : > { %3289 = vmatprep.mubr.bf16.mxu1 %v6674_v19 }
 0x278   : > { %3894 = vmatmul.mubr.bf16.gmra.mrb[116].mxu0 %v6604_v55  ;;  %v1913_v55 = vrot.slane %v1824_v24, 4  ;;  %v1750_v24 = vshll.u32 %v1447_v42, 16 }
 0x279   : > { %3901 = vmatprep.mubr.bf16.mxu0 %v6608_v3  ;;  %v1724_v3 = vrot.slane %v1722_v30, 3  ;;  %v1915_v30 = vrot.slane %v1825_v45, 4 }
 0x27b   : > { %3290 = vmatmul.mubr.bf16.gmra.mrb[80].mxu1 %v6684_v61 }
 0x27c   : > { %3297 = vmatprep.mubr.bf16.mxu1 %v6688_v13 }
 0x280   : > { %3902 = vmatmul.mubr.bf16.gmra.mrb[120].mxu0 %v6620_v62  ;;  %v1727_v62 = vrot.slane %v1725_v40, 4  ;;  %v1916_v40 = vrot.slane %v1826_v60, 4 }
 0x281   : > { %3909 = vmatprep.mubr.bf16.mxu0 %v6624_v9  ;;  %v1732_v9 = vrot.slane %v1730_v48, 3 }
 0x282   : > { %v1728_v10 = vor.u32 %v1727_v62, %v1724_v3  ;;  %v1749_v3 = vrot.slane %v1747_v16, 3  ;;  %v1752_v62 = vrot.slane %v1750_v24, 4 }
 0x283   : > { %3298 = vmatmul.mubr.bf16.gmra.mrb[84].mxu1 %v6696_v38 }
 0x284   : > { %3305 = vmatprep.mubr.bf16.mxu1 %v6700_v57 }
 0x288   : > { %3910 = vmatmul.mubr.bf16.gmra.mrb[124].mxu0 %v6636_v34  ;;  %v1735_v34 = vrot.slane %v1733_v58, 4 }
 0x289   : > { %3917 = vmatprep.mubr.bf16.mxu0 %v6640_v51  ;;  %v6755_v51 = vsel %vm1863_vm8, %v1912_v2, %v1913_v55 }
 0x28a   : > { %v1736_v59 = vor.u32 %v1735_v34, %v1732_v9  ;;  %v1917_v34 = vsel %vm1863_vm8, %v1915_v30, %v1916_v40 }
 0x28b   : > { %3306 = vmatmul.mubr.bf16.gmra.mrb[88].mxu1 %v6707_v18 }
 0x28c   : > { %3313 = vmatprep.mubr.bf16.mxu1 %v6711_v37 }
 0x290   : > { %3918 = vmatmul.mubr.bf16.gmra.mrb[128].mxu0 %v6649_v52  ;;  %v6761_v52 = vsel %vm1448_vm9, %v1728_v10, %v1736_v59 }
 0x291   : > { %3925 = vmatprep.mubr.bf16.mxu0 %v6653_v1 }
 0x293   : > { %3314 = vmatmul.mubr.bf16.gmra.mrb[92].mxu1 %v6717_v49 }
 0x294   : > { %3321 = vmatprep.mubr.bf16.mxu1 %v6755_v51 }
 0x298   : > { %3926 = vmatmul.mubr.bf16.gmra.mrb[132].mxu0 %v6660_v26  ;;  %v5751_v26 = vld [vmem:[#allocation13 + $0x208] sm:$0xff]  }
 0x299   : > { %3933 = vmatprep.mubr.bf16.mxu0 %v6664_v33  ;;  %v5753_v33 = vld [vmem:[#allocation13 + $0x218] sm:$0xff]  }
 0x29b   : > { %3322 = vmatmul.mubr.bf16.gmra.mrb[96].mxu1 %v6761_v52 }
 0x29c   : > { %5335 = vmatprep.mubr.bf16.mxu1 %v6501_v8  ;;  %v5752_v8 = vld [vmem:[#allocation13 + $0x210] sm:$0xff]  }
 0x29d   : > { %v4797_v1 = vpop.f32.mrb[40].mxu0 }
 0x29e   : > { %v4798_v50 = vpop.f32.mrb[41].mxu0 }
 0x29f   : > { %v6765_v4 = vadd.f32 %v4798_v50, %v4797_v1  ;;  %v4800_v5 = vpop.f32.mrb[42].mxu0  ;;  %v1753_v1 = vor.u32 %v1752_v62, %v1749_v3  ;;  %v1986_v50 = vld [vmem:[#allocation2 + $0x100] sm:$0xf0] }
 0x2a0   : > { %3934 = vmatmul.mubr.bf16.gmra.mrb[136].mxu0 %v6670_v41  ;;  %v4801_v14 = vpop.f32.mrb[43].mxu0 }
 0x2a1   : > { %3941 = vmatprep.mubr.bf16.mxu0 %v6674_v19  ;;  %v6769_v11 = vadd.f32 %v4801_v14, %v4800_v5  ;;  %v1987_v5 = vld [vmem:[#allocation2 + $0x108] sm:$0x1f] }
 0x2a3   : > { %5336 = vmatmul.mubr.bf16.vlgmr.msra.gmra.mrb[4].mxu1 %v6509_v35 }
 0x2a4   : > { %5368 = vmatpush3.bf16.msra.mxu1 %v6693_v25  ;;  %5339 = vmatprep.mubr.bf16.mxu1 %v6523_v28  ;;  %v5754_v25 = vld [vmem:[#allocation13 + $0x220] sm:$0xff]  }
 0x2a5   : > { %5369 = vmatprep.subr.bf16.mxu1 %v5751_v26 }
 0x2a8   : > { %3942 = vmatmul.mubr.bf16.gmra.mrb[140].mxu0 %v6684_v61  ;;  %5370 = vmatpush3.bf16.msra.mxu1 %v5751_v26  ;;  %v2264_v26 = vshrl.u32 %v1986_v50, 16 }
 0x2a9   : > { %3949 = vmatprep.mubr.bf16.mxu0 %v6688_v13  ;;  %5371 = vmatprep.subr.bf16.mxu1 %v5752_v8  ;;  %v5755_v13 = vld [vmem:[#allocation13 + $0x228] sm:$0xff]  }
 0x2ab   : > { %5340 = vmatmul.mubr.bf16.gmra.mrb[8].mxu1 %v6529_v54 }
 0x2ac   : > { %5343 = vmatprep.mubr.bf16.mxu1 %v6547_v43  ;;  %5372 = vmatpush3.bf16.msra.mxu1 %v5752_v8  ;;  %v4803_v41 = vpop.f32.mrb[44].mxu0  ;;  %v2267_v8 = vshll.u32 %v1986_v50, 16 }
 0x2ad   : > { %5373 = vmatprep.subr.bf16.mxu1 %v5753_v33  ;;  %v4804_v19 = vpop.f32.mrb[45].mxu0 }
 0x2ae   : > { %v6778_v17 = vadd.f32 %v4804_v19, %v4803_v41  ;;  %v4806_v21 = vpop.f32.mrb[46].mxu0  ;;  %v2275_v41 = vshll.u32 %v1987_v5, 16 }
 0x2af   : > { %v4807_v22 = vpop.f32.mrb[47].mxu0 }
 0x2b0   : > { %3950 = vmatmul.mubr.bf16.gmra.mrb[144].mxu0 %v6696_v38  ;;  %5374 = vmatpush3.bf16.msra.mxu1 %v5753_v33  ;;  %v6781_v61 = vadd.f32 %v4807_v22, %v4806_v21  ;;  %v2272_v33 = vshrl.u32 %v1987_v5, 16 }
 0x2b1   : > { %3957 = vmatprep.mubr.bf16.mxu0 %v6700_v57  ;;  %5375 = vmatprep.subr.bf16.mxu1 %v5754_v25 }
 0x2b3   : > { %5344 = vmatmul.mubr.bf16.gmra.mrb[12].mxu1 %v6559_v6 }
 0x2b4   : > { %5347 = vmatprep.mubr.bf16.mxu1 %v6580_v12  ;;  %5376 = vmatpush3.bf16.msra.mxu1 %v5754_v25  ;;  %v2266_v25 = vrot.slane %v2264_v26, 4 }
 0x2b5   : > { %5377 = vmatprep.subr.bf16.mxu1 %v5755_v13 }
 0x2b8   : > { %3958 = vmatmul.mubr.bf16.gmra.mrb[148].mxu0 %v6707_v18  ;;  %v4809_v31 = vpop.f32.mrb[48].mxu0  ;;  %5378 = vmatpush3.bf16.msra.mxu1 %v5755_v13  ;;  %v1446_v18 = vld [vmem:[#allocation2 + $0x110] sm:$0xf8]  ;;  %v2269_v13 = vrot.slane %v2267_v8, 5 }
 0x2b9   : > { %3965 = vmatprep.mubr.bf16.mxu0 %v6711_v37  ;;  %v4810_v38 = vpop.f32.mrb[49].mxu0  ;;  %5379 = vmatprep.subr.bf16.mxu1 %v5756_v23  ;;  %v1739_v37 = vshrl.u32 %v1446_v18, 16  ;;  %v1742_v7 = vshll.u32 %v1446_v18, 16 }
 0x2ba   : > { %v6788_v47 = vadd.f32 %v4810_v38, %v4809_v31  ;;  %v4812_v57 = vpop.f32.mrb[50].mxu0  ;;  %v2277_v31 = vrot.slane %v2275_v41, 5 }
 0x2bb   : > { %5348 = vmatmul.mubr.bf16.gmra.mrb[16].mxu1 %v6584_v56  ;;  %v4813_v63 = vpop.f32.mrb[51].mxu0  ;;  %v1741_v2 = vrot.slane %v1739_v37, 3  ;;  %v1744_v55 = vrot.slane %v1742_v7, 4 }
 0x2bc   : > { %5351 = vmatprep.mubr.bf16.mxu1 %v6596_v20  ;;  %v6792_v36 = vadd.f32 %v4813_v63, %v4812_v57  ;;  %5380 = vmatpush3.bf16.msra.mxu1 %v5756_v23  ;;  %v2274_v23 = vrot.slane %v2272_v33, 4  ;;  %v2270_v57 = vor.u32 %v2269_v13, %v2266_v25 }
 0x2bd   : > { %5381 = vmatprep.subr.bf16.mxu1 %v5757_v32  ;;  %v1745_v59 = vor.u32 %v1744_v55, %v1741_v2 }
 0x2be   : > { %v2278_v63 = vor.u32 %v2277_v31, %v2274_v23 }
 0x2bf   : > { %v1754_v14 = vsel %vm1448_vm9, %v1745_v59, %v1753_v1 }
 0x2c0   : > { %3966 = vmatmul.mubr.bf16.gmra.mrb[152].mxu0 %v6717_v49  ;;  %5382 = vmatpush3.bf16.msra.mxu1 %v5757_v32  ;;  %v6814_v42 = vsel %vm1990_vm10, %v2270_v57, %v2278_v63 }
 0x2c1   : > { %3973 = vmatprep.mubr.bf16.mxu0 %v6755_v51 }
 0x2c3   : > { %5352 = vmatmul.mubr.bf16.gmra.mrb[20].mxu1 %v6600_v39 }
 0x2c4   : > { %5355 = vmatprep.mubr.bf16.mxu1 %v6612_v15  ;;  %v4815_v48 = vpop.f32.mrb[52].mxu0 }
 0x2c5   : > { %v4816_v58 = vpop.f32.mrb[53].mxu0 }
 0x2c6   : > { %v6798_v49 = vadd.f32 %v4816_v58, %v4815_v48  ;;  %v4818_v9 = vpop.f32.mrb[54].mxu0 }
 0x2c7   : > { %v4819_v51 = vpop.f32.mrb[55].mxu0 }
 0x2c8   : > { %3974 = vmatmul.mubr.bf16.gmra.mrb[156].mxu0 %v6761_v52  ;;  %v6802_v10 = vadd.f32 %v4819_v51, %v4818_v9 }
 0x2c9   : > { %3981 = vmatprep.mubr.bf16.mxu0 %v1917_v34 }
 0x2cb   : > { %5356 = vmatmul.mubr.bf16.gmra.mrb[24].mxu1 %v6616_v44 }
 0x2cc   : > { %5359 = vmatprep.mubr.bf16.mxu1 %v6628_v0 }
 0x2d0   : > { %3982 = vmatmul.mubr.bf16.gmra.mrb[160].mxu0 %v1754_v14  ;;  %v4821_v19 = vpop.f32.mrb[56].mxu0 }
 0x2d1   : > { %v4822_v52 = vpop.f32.mrb[57].mxu0 }
 0x2d2   : > { %v6807_v21 = vadd.f32 %v4822_v52, %v4821_v19  ;;  %v4824_v22 = vpop.f32.mrb[58].mxu0 }
 0x2d3   : > { %5360 = vmatmul.mubr.bf16.gmra.mrb[28].mxu1 %v6632_v53  ;;  %v4825_v38 = vpop.f32.mrb[59].mxu0 }
 0x2d4   : > { %5363 = vmatprep.mubr.bf16.mxu1 %v6644_v29  ;;  %v6811_v32 = vadd.f32 %v4825_v38, %v4824_v22 }
 0x2d9   : > { %v4827_v18 = vpop.f32.mrb[60].mxu0 }
 0x2da   : > { %v4828_v45 = vpop.f32.mrb[61].mxu0 }
 0x2db   : > { %5364 = vmatmul.mubr.bf16.gmra.mrb[32].mxu1 %v6814_v42  ;;  %v6817_v60 = vadd.f32 %v4828_v45, %v4827_v18  ;;  %v4830_v37 = vpop.f32.mrb[62].mxu0 }
 0x2dc   : > { %5383 = vmatprep.mubr.bf16.mxu1 %v6509_v35  ;;  %v4831_v7 = vpop.f32.mrb[63].mxu0 }
 0x2dd   : > { %v6820_v16 = vadd.f32 %v4831_v7, %v4830_v37 }
 0x2e2   : > { %v4833_v24 = vpop.f32.mrb[64].mxu0 }
 0x2e3   : > { %5384 = vmatmul.mubr.bf16.vlgmr.msra.gmra.mrb[4].mxu1 %v6523_v28  ;;  %v4834_v30 = vpop.f32.mrb[65].mxu0 }
 0x2e4   : > { %5387 = vmatprep.mubr.bf16.mxu1 %v6529_v54  ;;  %v6824_v40 = vadd.f32 %v4834_v30, %v4833_v24  ;;  %v4836_v48 = vpop.f32.mrb[66].mxu0 }
 0x2e5   : > { %v4837_v58 = vpop.f32.mrb[67].mxu0 }
 0x2e6   : > { %v6826_v2 = vadd.f32 %v4837_v58, %v4836_v48  ;;  %v1988_v58 = vld [vmem:[#allocation2 + $0x110] sm:$0xf0] }
 0x2eb   : > { %5388 = vmatmul.mubr.bf16.gmra.mrb[8].mxu1 %v6547_v43  ;;  %v4839_v55 = vpop.f32.mrb[68].mxu0 }
 0x2ec   : > { %5391 = vmatprep.mubr.bf16.mxu1 %v6559_v6  ;;  %v4840_v35 = vpop.f32.mrb[69].mxu0 }
 0x2ed   : > { %v6830_v3 = vadd.f32 %v4840_v35, %v4839_v55  ;;  %v4842_v62 = vpop.f32.mrb[70].mxu0 }
 0x2ee   : > { %v4843_v9 = vpop.f32.mrb[71].mxu0 }
 0x2ef   : > { %v6832_v28 = vadd.f32 %v4843_v9, %v4842_v62  ;;  %v2281_v62 = vshrl.u32 %v1988_v58, 16 }
 0x2f3   : > { %5392 = vmatmul.mubr.bf16.gmra.mrb[12].mxu1 %v6580_v12  ;;  %v4845_v54 = vpop.f32.mrb[72].mxu0 }
 0x2f4   : > { %5395 = vmatprep.mubr.bf16.mxu1 %v6584_v56  ;;  %v4846_v34 = vpop.f32.mrb[73].mxu0 }
 0x2f5   : > { %v6836_v51 = vadd.f32 %v4846_v34, %v4845_v54  ;;  %v4848_v59 = vpop.f32.mrb[74].mxu0  ;;  %v2284_v34 = vshll.u32 %v1988_v58, 16 }
 0x2f6   : > { %v4927_v43 = vpop.f32.mrb[36].mxu1  ;;  %v4849_v1 = vpop.f32.mrb[75].mxu0 }
 0x2f7   : > { %v4928_v50 = vpop.f32.mrb[37].mxu1  ;;  %v6838_v6 = vadd.f32 %v4849_v1, %v4848_v59 }
 0x2f8   : > { %v4929_v5 = vadd.f32 %v4928_v50, %v4927_v43  ;;  %v4930_v14 = vpop.f32.mrb[38].mxu1 }
 0x2f9   : > { %v4931_v26 = vpop.f32.mrb[39].mxu1 }
 0x2fa   : > { %v6841_v8 = vadd.f32 %v4929_v5, %v6677_v27  ;;  %v4932_v33 = vadd.f32 %v4931_v26, %v4930_v14 }
 0x2fb   : > { %5396 = vmatmul.mubr.bf16.gmra.mrb[16].mxu1 %v6596_v20  ;;  %v4851_v12 = vpop.f32.mrb[76].mxu0 }
 0x2fc   : > { %v6845_v56 = vadd.f32 %v4932_v33, %v6681_v46  ;;  %5399 = vmatprep.mubr.bf16.mxu1 %v6600_v39  ;;  %v4852_v41 = vpop.f32.mrb[77].mxu0 }
 0x2fd   : > { %v6848_v19 = vadd.f32 %v4852_v41, %v4851_v12  ;;  %v4854_v52 = vpop.f32.mrb[78].mxu0  ;;  %v2286_v41 = vrot.slane %v2284_v34, 5 }
 0x2fe   : > { %v4933_v25 = vpop.f32.mrb[40].mxu1  ;;  %v4855_v22 = vpop.f32.mrb[79].mxu0 }
 0x2ff   : > { %v4934_v13 = vpop.f32.mrb[41].mxu1  ;;  %v6850_v23 = vadd.f32 %v4855_v22, %v4854_v52 }
 0x300   : > { %v4935_v27 = vadd.f32 %v4934_v13, %v4933_v25  ;;  %v4936_v31 = vpop.f32.mrb[42].mxu1 }
 0x301   : > { %v4937_v38 = vpop.f32.mrb[43].mxu1 }
 0x302   : > { %v6853_v20 = vadd.f32 %v4935_v27, %v6765_v4  ;;  %v4938_v57 = vadd.f32 %v4937_v38, %v4936_v31 }
 0x303   : > { %5400 = vmatmul.mubr.bf16.gmra.mrb[20].mxu1 %v6612_v15  ;;  %v4857_v46 = vpop.f32.mrb[80].mxu0  ;;  %v1989_v15 = vld [vmem:[#allocation2 + $0x118] sm:$0x1f] }
 0x304   : > { %v6857_v39 = vadd.f32 %v4938_v57, %v6769_v11  ;;  %5403 = vmatprep.mubr.bf16.mxu1 %v6616_v44  ;;  %v4858_v63 = vpop.f32.mrb[81].mxu0  ;;  %v2289_v59 = vshrl.u32 %v1989_v15, 16  ;;  %v2292_v43 = vshll.u32 %v1989_v15, 16 }
 0x305   : > { %v6860_v18 = vadd.f32 %v4858_v63, %v4857_v46  ;;  %v4860_v45 = vpop.f32.mrb[82].mxu0 }
 0x306   : > { %v4939_v37 = vpop.f32.mrb[44].mxu1  ;;  %v4861_v7 = vpop.f32.mrb[83].mxu0  ;;  %v2294_v52 = vrot.slane %v2292_v43, 5 }
 0x307   : > { %v4940_v24 = vpop.f32.mrb[45].mxu1  ;;  %v6862_v30 = vadd.f32 %v4861_v7, %v4860_v45 }
 0x308   : > { %v4941_v4 = vadd.f32 %v4940_v24, %v4939_v37  ;;  %v4942_v48 = vpop.f32.mrb[46].mxu1 }
 0x309   : > { %v4943_v55 = vpop.f32.mrb[47].mxu1 }
 0x30a   : > { %v6865_v35 = vadd.f32 %v4941_v4, %v6778_v17  ;;  %v4944_v11 = vadd.f32 %v4943_v55, %v4942_v48 }
 0x30b   : > { %5404 = vmatmul.mubr.bf16.gmra.mrb[24].mxu1 %v6628_v0  ;;  %v4863_v44 = vpop.f32.mrb[84].mxu0  ;;  %v2283_v0 = vrot.slane %v2281_v62, 4 }
 0x30c   : > { %v6869_v9 = vadd.f32 %v4944_v11, %v6781_v61  ;;  %5407 = vmatprep.mubr.bf16.mxu1 %v6632_v53  ;;  %v4864_v54 = vpop.f32.mrb[85].mxu0  ;;  %v2291_v61 = vrot.slane %v2289_v59, 4 }
 0x30d   : > { %v6872_v1 = vadd.f32 %v4864_v54, %v4863_v44  ;;  %v4866_v50 = vpop.f32.mrb[86].mxu0  ;;  %v2287_v38 = vor.u32 %v2286_v41, %v2283_v0 }
 0x30e   : > { %v4945_v5 = vpop.f32.mrb[48].mxu1  ;;  %v4867_v17 = vpop.f32.mrb[87].mxu0  ;;  %v2295_v57 = vor.u32 %v2294_v52, %v2291_v61 }
 0x30f   : > { %v4946_v14 = vpop.f32.mrb[49].mxu1  ;;  %v6874_v26 = vadd.f32 %v4867_v17, %v4866_v50 }
 0x310   : > { %v4947_v33 = vadd.f32 %v4946_v14, %v4945_v5  ;;  %v4948_v12 = vpop.f32.mrb[50].mxu1 }
 0x311   : > { %v4949_v25 = vpop.f32.mrb[51].mxu1 }
 0x312   : > { %v6877_v53 = vadd.f32 %v4947_v33, %v6788_v47  ;;  %v4950_v22 = vadd.f32 %v4949_v25, %v4948_v12 }
 0x313   : > { %5408 = vmatmul.mubr.bf16.gmra.mrb[28].mxu1 %v6644_v29  ;;  %v4869_v13 = vpop.f32.mrb[88].mxu0  ;;  %v2296_v29 = vsel %vm1990_vm10, %v2287_v38, %v2295_v57 }
 0x314   : > { %v6881_v27 = vadd.f32 %v4950_v22, %v6792_v36  ;;  %5411 = vmatprep.mubr.bf16.mxu1 %v6814_v42  ;;  %v4870_v31 = vpop.f32.mrb[89].mxu0 }
 0x315   : > { %v6884_v46 = vadd.f32 %v4870_v31, %v4869_v13  ;;  %v4872_v63 = vpop.f32.mrb[90].mxu0 }
 0x316   : > { %v4951_v45 = vpop.f32.mrb[52].mxu1  ;;  %v4873_v37 = vpop.f32.mrb[91].mxu0 }
 0x317   : > { %v4952_v7 = vpop.f32.mrb[53].mxu1  ;;  %v6886_v47 = vadd.f32 %v4873_v37, %v4872_v63 }
 0x318   : > { %v4953_v24 = vadd.f32 %v4952_v7, %v4951_v45  ;;  %v4954_v4 = vpop.f32.mrb[54].mxu1 }
 0x319   : > { %v4955_v48 = vpop.f32.mrb[55].mxu1 }
 0x31a   : > { %v6890_v36 = vadd.f32 %v4953_v24, %v6798_v49  ;;  %v4956_v42 = vadd.f32 %v4955_v48, %v4954_v4 }
 0x31b   : > { %5412 = vmatmul.mubr.bf16.gmra.mrb[32].mxu1 %v2296_v29  ;;  %v4875_v58 = vpop.f32.mrb[92].mxu0 }
 0x31c   : > { %v6893_v55 = vadd.f32 %v4956_v42, %v6802_v10  ;;  %v4876_v15 = vpop.f32.mrb[93].mxu0 }
 0x31d   : > { %v6895_v11 = vadd.f32 %v4876_v15, %v4875_v58  ;;  %v4878_v44 = vpop.f32.mrb[94].mxu0 }
 0x31e   : > { %v4957_v62 = vpop.f32.mrb[56].mxu1  ;;  %v4879_v54 = vpop.f32.mrb[95].mxu0 }
 0x31f   : > { %v4958_v34 = vpop.f32.mrb[57].mxu1  ;;  %v6897_v59 = vadd.f32 %v4879_v54, %v4878_v44 }
 0x320   : > { %v4959_v43 = vadd.f32 %v4958_v34, %v4957_v62  ;;  %v4960_v50 = vpop.f32.mrb[58].mxu1 }
 0x321   : > { %v4961_v5 = vpop.f32.mrb[59].mxu1 }
 0x322   : > { %v6900_v49 = vadd.f32 %v4959_v43, %v6807_v21  ;;  %v4962_v17 = vadd.f32 %v4961_v5, %v4960_v50 }
 0x323   : > { %v4881_v14 = vpop.f32.mrb[96].mxu0 }
 0x324   : > { %v6903_v10 = vadd.f32 %v4962_v17, %v6811_v32  ;;  %v4882_v0 = vpop.f32.mrb[97].mxu0 }
 0x325   : > { %v6905_v33 = vadd.f32 %v4882_v0, %v4881_v14  ;;  %v4884_v12 = vpop.f32.mrb[98].mxu0 }
 0x326   : > { %v4963_v41 = vpop.f32.mrb[60].mxu1  ;;  %v4885_v61 = vpop.f32.mrb[99].mxu0 }
 0x327   : > { %v4964_v52 = vpop.f32.mrb[61].mxu1  ;;  %v6907_v25 = vadd.f32 %v4885_v61, %v4884_v12 }
 0x328   : > { %v4965_v22 = vadd.f32 %v4964_v52, %v4963_v41  ;;  %v4966_v13 = vpop.f32.mrb[62].mxu1 }
 0x329   : > { %v4967_v31 = vpop.f32.mrb[63].mxu1 }
 0x32a   : > { %v6910_v21 = vadd.f32 %v4965_v22, %v6817_v60  ;;  %v4968_v38 = vadd.f32 %v4967_v31, %v4966_v13 }
 0x32b   : > { %v5063_v57 = vpop.f32.mrb[100].mxu0 }
 0x32c   : > { %v6913_v32 = vadd.f32 %v4968_v38, %v6820_v16  ;;  %v5064_v63 = vpop.f32.mrb[101].mxu0 }
 0x32d   : > { %v5065_v45 = vadd.f32 %v5064_v63, %v5063_v57  ;;  %v5066_v37 = vpop.f32.mrb[102].mxu0 }
 0x32e   : > { %v4969_v7 = vpop.f32.mrb[64].mxu1  ;;  %v5067_v24 = vpop.f32.mrb[103].mxu0 }
 0x32f   : > { %v4970_v4 = vpop.f32.mrb[65].mxu1  ;;  %v5068_v29 = vadd.f32 %v5067_v24, %v5066_v37  ;;  %v6916_v48 = vadd.f32 %v6841_v8, %v5065_v45 }
 0x330   : > { %v4971_v42 = vadd.f32 %v4970_v4, %v4969_v7  ;;  %v4972_v58 = vpop.f32.mrb[66].mxu1 }
 0x331   : > { %v4973_v15 = vpop.f32.mrb[67].mxu1  ;;  %v6919_v60 = vadd.f32 %v6845_v56, %v5068_v29 }
 0x332   : > { %v6922_v44 = vadd.f32 %v4971_v42, %v6824_v40  ;;  %v4974_v16 = vadd.f32 %v4973_v15, %v4972_v58 }
 0x333   : > { %v5069_v62 = vpop.f32.mrb[104].mxu0 }
 0x334   : > { %v6925_v54 = vadd.f32 %v4974_v16, %v6826_v2  ;;  %v5070_v34 = vpop.f32.mrb[105].mxu0 }
 0x335   : > { %v5071_v43 = vadd.f32 %v5070_v34, %v5069_v62  ;;  %v5072_v50 = vpop.f32.mrb[106].mxu0 }
 0x336   : > { %v4975_v5 = vpop.f32.mrb[68].mxu1  ;;  %v5073_v8 = vpop.f32.mrb[107].mxu0 }
 0x337   : > { %v4976_v17 = vpop.f32.mrb[69].mxu1  ;;  %v5074_v14 = vadd.f32 %v5073_v8, %v5072_v50  ;;  %v6928_v0 = vadd.f32 %v6853_v20, %v5071_v43 }
 0x338   : > { %v4977_v56 = vadd.f32 %v4976_v17, %v4975_v5  ;;  %v4978_v12 = vpop.f32.mrb[70].mxu1 }
 0x339   : > { %v4979_v41 = vpop.f32.mrb[71].mxu1  ;;  %v6931_v40 = vadd.f32 %v6857_v39, %v5074_v14 }
 0x33a   : > { %v6934_v61 = vadd.f32 %v4977_v56, %v6830_v3  ;;  %v4980_v2 = vadd.f32 %v4979_v41, %v4978_v12 }
 0x33b   : > { %v5075_v52 = vpop.f32.mrb[108].mxu0 }
 0x33c   : > { %v6937_v22 = vadd.f32 %v4980_v2, %v6832_v28  ;;  %v5076_v13 = vpop.f32.mrb[109].mxu0 }
 0x33d   : > { %v5077_v31 = vadd.f32 %v5076_v13, %v5075_v52  ;;  %v5078_v38 = vpop.f32.mrb[110].mxu0 }
 0x33e   : > { %v4981_v57 = vpop.f32.mrb[72].mxu1  ;;  %v5079_v20 = vpop.f32.mrb[111].mxu0 }
 0x33f   : > { %v4982_v63 = vpop.f32.mrb[73].mxu1  ;;  %v5080_v45 = vadd.f32 %v5079_v20, %v5078_v38  ;;  %v6940_v37 = vadd.f32 %v6865_v35, %v5077_v31 }
 0x340   : > { %v4983_v39 = vadd.f32 %v4982_v63, %v4981_v57  ;;  %v4984_v7 = vpop.f32.mrb[74].mxu1 }
 0x341   : > { %v4985_v24 = vpop.f32.mrb[75].mxu1  ;;  %v6943_v3 = vadd.f32 %v6869_v9, %v5080_v45 }
 0x342   : > { %v6946_v4 = vadd.f32 %v4983_v39, %v6836_v51  ;;  %v4986_v28 = vadd.f32 %v4985_v24, %v4984_v7 }
 0x343   : > { %v5081_v29 = vpop.f32.mrb[112].mxu0 }
 0x344   : > { %v6949_v42 = vadd.f32 %v4986_v28, %v6838_v6  ;;  %v5082_v58 = vpop.f32.mrb[113].mxu0 }
 0x345   : > { %v5083_v15 = vadd.f32 %v5082_v58, %v5081_v29  ;;  %v5084_v16 = vpop.f32.mrb[114].mxu0 }
 0x346   : > { %v4987_v62 = vpop.f32.mrb[76].mxu1  ;;  %v5085_v35 = vpop.f32.mrb[115].mxu0 }
 0x347   : > { %v4988_v34 = vpop.f32.mrb[77].mxu1  ;;  %v5086_v43 = vadd.f32 %v5085_v35, %v5084_v16  ;;  %v6952_v50 = vadd.f32 %v6877_v53, %v5083_v15 }
 0x348   : > { %v4989_v9 = vadd.f32 %v4988_v34, %v4987_v62  ;;  %v4990_v5 = vpop.f32.mrb[78].mxu1 }
 0x349   : > { %v4991_v8 = vpop.f32.mrb[79].mxu1  ;;  %v6955_v51 = vadd.f32 %v6881_v27, %v5086_v43 }
 0x34a   : > { %v6958_v17 = vadd.f32 %v4989_v9, %v6848_v19  ;;  %v4992_v6 = vadd.f32 %v4991_v8, %v4990_v5 }
 0x34b   : > { %v5087_v14 = vpop.f32.mrb[116].mxu0 }
 0x34c   : > { %v6961_v56 = vadd.f32 %v4992_v6, %v6850_v23  ;;  %v5088_v12 = vpop.f32.mrb[117].mxu0 }
 0x34d   : > { %v5089_v41 = vadd.f32 %v5088_v12, %v5087_v14  ;;  %v5090_v2 = vpop.f32.mrb[118].mxu0 }
 0x34e   : > { %v4993_v52 = vpop.f32.mrb[80].mxu1  ;;  %v5091_v53 = vpop.f32.mrb[119].mxu0 }
 0x34f   : > { %v4994_v13 = vpop.f32.mrb[81].mxu1  ;;  %v5092_v31 = vadd.f32 %v5091_v53, %v5090_v2  ;;  %v6964_v38 = vadd.f32 %v6890_v36, %v5089_v41 }
 0x350   : > { %v4995_v27 = vadd.f32 %v4994_v13, %v4993_v52  ;;  %v4996_v57 = vpop.f32.mrb[82].mxu1 }
 0x351   : > { %v4997_v20 = vpop.f32.mrb[83].mxu1  ;;  %v6967_v19 = vadd.f32 %v6893_v55, %v5092_v31 }
 0x352   : > { %v6970_v63 = vadd.f32 %v4995_v27, %v6860_v18  ;;  %v4998_v23 = vadd.f32 %v4997_v20, %v4996_v57 }
 0x353   : > { %v5093_v45 = vpop.f32.mrb[120].mxu0 }
 0x354   : > { %v6973_v39 = vadd.f32 %v4998_v23, %v6862_v30  ;;  %v5094_v7 = vpop.f32.mrb[121].mxu0 }
 0x355   : > { %v5095_v24 = vadd.f32 %v5094_v7, %v5093_v45  ;;  %v5096_v28 = vpop.f32.mrb[122].mxu0 }
 0x356   : > { %v4999_v29 = vpop.f32.mrb[84].mxu1  ;;  %v5097_v36 = vpop.f32.mrb[123].mxu0 }
 0x357   : > { %v5000_v58 = vpop.f32.mrb[85].mxu1  ;;  %v5098_v15 = vadd.f32 %v5097_v36, %v5096_v28  ;;  %v6976_v16 = vadd.f32 %v6900_v49, %v5095_v24 }
 0x358   : > { %v5001_v55 = vadd.f32 %v5000_v58, %v4999_v29  ;;  %v5002_v62 = vpop.f32.mrb[86].mxu1 }
 0x359   : > { %v5003_v35 = vpop.f32.mrb[87].mxu1  ;;  %v6979_v18 = vadd.f32 %v6903_v10, %v5098_v15 }
 0x35a   : > { %v6982_v34 = vadd.f32 %v5001_v55, %v6872_v1  ;;  %v5004_v30 = vadd.f32 %v5003_v35, %v5002_v62 }
 0x35b   : > { %v5099_v43 = vpop.f32.mrb[124].mxu0 }
 0x35c   : > { %v6985_v9 = vadd.f32 %v5004_v30, %v6874_v26  ;;  %v5100_v5 = vpop.f32.mrb[125].mxu0 }
 0x35d   : > { %v5101_v8 = vadd.f32 %v5100_v5, %v5099_v43  ;;  %v5102_v6 = vpop.f32.mrb[126].mxu0 }
 0x35e   : > { %v5005_v14 = vpop.f32.mrb[88].mxu1  ;;  %v5103_v49 = vpop.f32.mrb[127].mxu0 }
 0x35f   : > { %v5006_v12 = vpop.f32.mrb[89].mxu1  ;;  %v5104_v41 = vadd.f32 %v5103_v49, %v5102_v6  ;;  %v6988_v2 = vadd.f32 %v6910_v21, %v5101_v8 }
 0x360   : > { %v5007_v10 = vadd.f32 %v5006_v12, %v5005_v14  ;;  %v5008_v52 = vpop.f32.mrb[90].mxu1 }
 0x361   : > { %v5009_v53 = vpop.f32.mrb[91].mxu1  ;;  %v6991_v1 = vadd.f32 %v6913_v32, %v5104_v41 }
 0x362   : > { %v6994_v13 = vadd.f32 %v5007_v10, %v6884_v46  ;;  %v5010_v26 = vadd.f32 %v5009_v53, %v5008_v52 }
 0x363   : > { %v5105_v31 = vpop.f32.mrb[128].mxu0 }
 0x364   : > { %v6997_v27 = vadd.f32 %v5010_v26, %v6886_v47  ;;  %v5106_v57 = vpop.f32.mrb[129].mxu0 }
 0x365   : > { %v5107_v20 = vadd.f32 %v5106_v57, %v5105_v31  ;;  %v5108_v23 = vpop.f32.mrb[130].mxu0 }
 0x366   : > { %v5011_v45 = vpop.f32.mrb[92].mxu1  ;;  %v5109_v21 = vpop.f32.mrb[131].mxu0 }
 0x367   : > { %v5012_v7 = vpop.f32.mrb[93].mxu1  ;;  %v5110_v24 = vadd.f32 %v5109_v21, %v5108_v23  ;;  %v7000_v28 = vadd.f32 %v6922_v44, %v5107_v20 }
 0x368   : > { %v5013_v32 = vadd.f32 %v5012_v7, %v5011_v45  ;;  %v5014_v29 = vpop.f32.mrb[94].mxu1 }
 0x369   : > { %v5015_v36 = vpop.f32.mrb[95].mxu1  ;;  %v7003_v46 = vadd.f32 %v6925_v54, %v5110_v24 }
 0x36a   : > { %v7006_v58 = vadd.f32 %v5013_v32, %v6895_v11  ;;  %v5016_v47 = vadd.f32 %v5015_v36, %v5014_v29 }
 0x36b   : > { %v5111_v15 = vpop.f32.mrb[132].mxu0 }
 0x36c   : > { %v7009_v55 = vadd.f32 %v5016_v47, %v6897_v59  ;;  %v5112_v62 = vpop.f32.mrb[133].mxu0 }
 0x36d   : > { %v5113_v35 = vadd.f32 %v5112_v62, %v5111_v15  ;;  %v5114_v30 = vpop.f32.mrb[134].mxu0 }
 0x36e   : > { %v5017_v43 = vpop.f32.mrb[96].mxu1  ;;  %v5115_v44 = vpop.f32.mrb[135].mxu0 }
 0x36f   : > { %v5018_v5 = vpop.f32.mrb[97].mxu1  ;;  %v5116_v8 = vadd.f32 %v5115_v44, %v5114_v30  ;;  %v7012_v6 = vadd.f32 %v6934_v61, %v5113_v35 }
 0x370   : > { %v5019_v54 = vadd.f32 %v5018_v5, %v5017_v43  ;;  %v5020_v14 = vpop.f32.mrb[98].mxu1 }
 0x371   : > { %v5021_v49 = vpop.f32.mrb[99].mxu1  ;;  %v7015_v11 = vadd.f32 %v6937_v22, %v5116_v8 }
 0x372   : > { %v5499_v12 = vadd.f32 %v5019_v54, %v6905_v33  ;;  %v5022_v59 = vadd.f32 %v5021_v49, %v5020_v14 }
 0x373   : > { %v5117_v41 = vpop.f32.mrb[136].mxu0 }
 0x374   : > { %v5505_v10 = vadd.f32 %v5022_v59, %v6907_v25  ;;  %v5118_v52 = vpop.f32.mrb[137].mxu0 }
 0x375   : > { %v5119_v53 = vadd.f32 %v5118_v52, %v5117_v41  ;;  %v5120_v26 = vpop.f32.mrb[138].mxu0 }
 0x376   : > { %v5121_v31 = vpop.f32.mrb[139].mxu0 }
 0x377   : > { %v5122_v57 = vadd.f32 %v5121_v31, %v5120_v26  ;;  %v7020_v61 = vadd.f32 %v6946_v4, %v5119_v53 }
 0x379   : > { %v7023_v20 = vadd.f32 %v6949_v42, %v5122_v57 }
 0x37b   : > { %v5123_v23 = vpop.f32.mrb[140].mxu0 }
 0x37c   : > { %v5124_v22 = vpop.f32.mrb[141].mxu0 }
 0x37d   : > { %v5125_v45 = vadd.f32 %v5124_v22, %v5123_v23  ;;  %v5126_v21 = vpop.f32.mrb[142].mxu0 }
 0x37e   : > { %v5127_v33 = vpop.f32.mrb[143].mxu0 }
 0x37f   : > { %v5128_v7 = vadd.f32 %v5127_v33, %v5126_v21  ;;  %v7026_v24 = vadd.f32 %v6958_v17, %v5125_v45 }
 0x381   : > { %v7029_v25 = vadd.f32 %v6961_v56, %v5128_v7 }
 0x383   : > { %v5129_v32 = vpop.f32.mrb[144].mxu0 }
 0x384   : > { %v5130_v29 = vpop.f32.mrb[145].mxu0 }
 0x385   : > { %v5131_v36 = vadd.f32 %v5130_v29, %v5129_v32  ;;  %v5132_v4 = vpop.f32.mrb[146].mxu0 }
 0x386   : > { %v5133_v47 = vpop.f32.mrb[147].mxu0 }
 0x387   : > { %v5134_v15 = vadd.f32 %v5133_v47, %v5132_v4  ;;  %v7032_v42 = vadd.f32 %v6970_v63, %v5131_v36 }
 0x389   : > { %v7035_v62 = vadd.f32 %v6973_v39, %v5134_v15 }
 0x38b   : > { %v5135_v35 = vpop.f32.mrb[148].mxu0 }
 0x38c   : > { %v5136_v30 = vpop.f32.mrb[149].mxu0 }
 0x38d   : > { %v5137_v43 = vadd.f32 %v5136_v30, %v5135_v35  ;;  %v5138_v17 = vpop.f32.mrb[150].mxu0  ;;  %v4352_v30 = vld [vmem:[%s6337_s12 + $0x10] sm:$0xff] }
 0x38e   : > { %v5139_v44 = vpop.f32.mrb[151].mxu0 }
 0x38f   : > { %v5140_v5 = vadd.f32 %v5139_v44, %v5138_v17  ;;  %v7038_v56 = vadd.f32 %v6982_v34, %v5137_v43 }
 0x391   : > { %v7041_v8 = vadd.f32 %v6985_v9, %v5140_v5  ;;  %v4350_v5 = vld [vmem:[%s6337_s12] sm:$0xff] }
 0x393   : > { %v5141_v54 = vpop.f32.mrb[152].mxu0 }
 0x394   : > { %v5142_v14 = vpop.f32.mrb[153].mxu0 }
 0x395   : > { %v5143_v49 = vadd.f32 %v5142_v14, %v5141_v54  ;;  %v5144_v63 = vpop.f32.mrb[154].mxu0  ;;  %v4353_v14 = vld [vmem:[%s6337_s12 + $0x18] sm:$0xff] }
 0x396   : > { %v5145_v59 = vpop.f32.mrb[155].mxu0 }
 0x397   : > { %v5146_v41 = vadd.f32 %v5145_v59, %v5144_v63  ;;  %v7044_v39 = vadd.f32 %v6994_v13, %v5143_v49  ;;  %v4351_v59 = vld [vmem:[%s6337_s12 + $0x8] sm:$0xff] }
 0x399   : > { %v7047_v52 = vadd.f32 %v6997_v27, %v5146_v41 }
 0x39b   : > { %v5147_v53 = vpop.f32.mrb[156].mxu0 }
 0x39c   : > { %v5148_v26 = vpop.f32.mrb[157].mxu0 }
 0x39d   : > { %v5149_v31 = vadd.f32 %v5148_v26, %v5147_v53  ;;  %v5150_v34 = vpop.f32.mrb[158].mxu0 }
 0x39e   : > { %v5151_v57 = vpop.f32.mrb[159].mxu0 }
 0x39f   : > { %v5152_v23 = vadd.f32 %v5151_v57, %v5150_v34  ;;  %v7050_v9 = vadd.f32 %v7006_v58, %v5149_v31  ;;  %v7062_v58 = vld [vmem:[%s7258_s6] ss:$0 sm:$0xff] }
 0x3a1   : > { %v7053_v22 = vadd.f32 %v7009_v55, %v5152_v23 }
 0x3a3   : > { %v5153_v45 = vpop.f32.mrb[160].mxu0 }
 0x3a4   : > { %v5154_v21 = vpop.f32.mrb[161].mxu0 }
 0x3a5   : > { %v5155_v13 = vadd.f32 %v5154_v21, %v5153_v45  ;;  %v5156_v33 = vpop.f32.mrb[162].mxu0 }
 0x3a6   : > { %v5157_v7 = vpop.f32.mrb[163].mxu0 }
 0x3a7   : > { %v5158_v27 = vadd.f32 %v5157_v7, %v5156_v33  ;;  %v7055_v32 = vadd.f32 %v5499_v12, %v5155_v13  ;;  %v4356_v33 = vld [vmem:[%s6337_s12 + $0x30] sm:$0xff] }
 0x3a9   : > { %v7057_v29 = vadd.f32 %v5505_v10, %v5158_v27 }
 0x3b6   : > { %v5385_v36 = vpop.f32.mrb[4].mxu1 }
 0x3b7   : > { %v5417_v55 = vadd.f32 %v6928_v0, %v5385_v36  ;;  %v4024_v4 = vpop.f32.mrb[5].mxu1  ;;  %v4354_v36 = vld [vmem:[%s6337_s12 + $0x20] sm:$0xff] }
 0x3b8   : > { %v5420_v47 = vadd.f32 %v6916_v48, %v4024_v4  ;;  %v5386_v15 = vpop.f32.mrb[6].mxu1  ;;  %v4357_v4 = vld [vmem:[%s6337_s12 + $0x38] sm:$0xff] }
 0x3b9   : > { %v4288_v35 = vadd.f32 %v5417_v55, %v7062_v58  ;;  %v5423_v12 = vadd.f32 %v6931_v40, %v5386_v15  ;;  %v4027_v10 = vpop.f32.mrb[7].mxu1 }
 0x3ba   : > { %v4286_v43 = vadd.f32 %v5420_v47, %v7062_v58  ;;  %v5426_v17 = vadd.f32 %v6919_v60, %v4027_v10 }
 0x3bb   : > { %v4320_v44 = vmax.f32 %v4288_v35, 0.0  ;;  %v4289_v0 = vadd.f32 %v5423_v12, %v7062_v58  ;;  %v4355_v35 = vld [vmem:[%s6337_s12 + $0x28] sm:$0xff] }
 0x3bc   : > { %v4318_v54 = vmax.f32 %v4286_v43, 0.0  ;;  %v4287_v48 = vadd.f32 %v5426_v17, %v7062_v58 }
 0x3bd   : > { %v4384_v49 = vadd.f32 %v4352_v30, %v4320_v44  ;;  %v4321_v63 = vmax.f32 %v4289_v0, 0.0 }
 0x3be   : > { %v4382_v41 = vadd.f32 %v4350_v5, %v4318_v54  ;;  %v4319_v40 = vmax.f32 %v4287_v48, 0.0  ;;  %v5389_v53 = vpop.f32.mrb[8].mxu1 }
 0x3bf   : > { %4416 = vst [vmem:[%s7078_s24 + $0x10] sm:$0xff] %v4384_v49  ;;  %v4385_v60 = vadd.f32 %v4353_v14, %v4321_v63  ;;  %v5429_v26 = vadd.f32 %v6952_v50, %v5389_v53  ;;  %v4040_v31 = vpop.f32.mrb[9].mxu1  ;;  %v4360_v49 = vld [vmem:[%s6337_s12 + $0x50] sm:$0xff]  ;;  %v4361_v53 = vld [vmem:[%s6337_s12 + $0x58] sm:$0xff] }
 0x3c0   : > { %4414 = vst [vmem:[%s7078_s24] sm:$0xff] %v4382_v41  ;;  %v4383_v34 = vadd.f32 %v4351_v59, %v4319_v40  ;;  %v5432_v57 = vadd.f32 %v6940_v37, %v4040_v31  ;;  %v5390_v23 = vpop.f32.mrb[10].mxu1  ;;  %v4358_v41 = vld [vmem:[%s6337_s12 + $0x40] sm:$0xff]  ;;  %v4359_v31 = vld [vmem:[%s6337_s12 + $0x48] sm:$0xff] }
 0x3c1   : > { %4417 = vst [vmem:[%s7078_s24 + $0x18] sm:$0xff] %v4385_v60  ;;  %v4292_v45 = vadd.f32 %v5429_v26, %v7062_v58  ;;  %v5435_v21 = vadd.f32 %v6955_v51, %v5390_v23  ;;  %v4043_v13 = vpop.f32.mrb[11].mxu1 }
 0x3c2   : > { %4415 = vst [vmem:[%s7078_s24 + $0x8] sm:$0xff] %v4383_v34  ;;  %v4290_v7 = vadd.f32 %v5432_v57, %v7062_v58  ;;  %v5438_v50 = vadd.f32 %v6943_v3, %v4043_v13 }
 0x3c3   : > { %v4324_v27 = vmax.f32 %v4292_v45, 0.0  ;;  %v4293_v37 = vadd.f32 %v5435_v21, %v7062_v58 }
 0x3c4   : > { %v4322_v55 = vmax.f32 %v4290_v7, 0.0  ;;  %v4291_v47 = vadd.f32 %v5438_v50, %v7062_v58 }
 0x3c5   : > { %v4388_v15 = vadd.f32 %v4356_v33, %v4324_v27  ;;  %v4325_v51 = vmax.f32 %v4293_v37, 0.0  ;;  %v4364_v37 = vld [vmem:[%s6337_s12 + $0x70] sm:$0xff] }
 0x3c6   : > { %v4386_v12 = vadd.f32 %v4354_v36, %v4322_v55  ;;  %v4323_v10 = vmax.f32 %v4291_v47, 0.0  ;;  %v5393_v30 = vpop.f32.mrb[12].mxu1  ;;  %v4362_v47 = vld [vmem:[%s6337_s12 + $0x60] sm:$0xff] }
 0x3c7   : > { %4420 = vst [vmem:[%s7078_s24 + $0x30] sm:$0xff] %v4388_v15  ;;  %v4389_v3 = vadd.f32 %v4357_v4, %v4325_v51  ;;  %v5441_v43 = vadd.f32 %v6976_v16, %v5393_v30  ;;  %v4056_v17 = vpop.f32.mrb[13].mxu1  ;;  %v4365_v51 = vld [vmem:[%s6337_s12 + $0x78] sm:$0xff] }
 0x3c8   : > { %4418 = vst [vmem:[%s7078_s24 + $0x20] sm:$0xff] %v4386_v12  ;;  %v4387_v44 = vadd.f32 %v4355_v35, %v4323_v10  ;;  %v5444_v5 = vadd.f32 %v6964_v38, %v4056_v17  ;;  %v5394_v0 = vpop.f32.mrb[14].mxu1  ;;  %v4363_v10 = vld [vmem:[%s6337_s12 + $0x68] sm:$0xff] }
 0x3c9   : > { %4421 = vst [vmem:[%s7078_s24 + $0x38] sm:$0xff] %v4389_v3  ;;  %v4296_v54 = vadd.f32 %v5441_v43, %v7062_v58  ;;  %v5447_v14 = vadd.f32 %v6979_v18, %v5394_v0  ;;  %v4059_v48 = vpop.f32.mrb[15].mxu1 }
 0x3ca   : > { %4419 = vst [vmem:[%s7078_s24 + $0x28] sm:$0xff] %v4387_v44  ;;  %v4294_v63 = vadd.f32 %v5444_v5, %v7062_v58  ;;  %v5450_v16 = vadd.f32 %v6967_v19, %v4059_v48 }
 0x3cb   : > { %v4328_v59 = vmax.f32 %v4296_v54, 0.0  ;;  %v4297_v38 = vadd.f32 %v5447_v14, %v7062_v58 }
 0x3cc   : > { %v4326_v40 = vmax.f32 %v4294_v63, 0.0  ;;  %v4295_v60 = vadd.f32 %v5450_v16, %v7062_v58  ;;  %v4368_v63 = vld [vmem:[%s6337_s12 + $0x90] sm:$0xff] }
 0x3cd   : > { %v4392_v26 = vadd.f32 %v4360_v49, %v4328_v59  ;;  %v4329_v18 = vmax.f32 %v4297_v38, 0.0 }
 0x3ce   : > { %v4390_v34 = vadd.f32 %v4358_v41, %v4326_v40  ;;  %v4327_v57 = vmax.f32 %v4295_v60, 0.0  ;;  %v5397_v23 = vpop.f32.mrb[16].mxu1  ;;  %v4366_v41 = vld [vmem:[%s6337_s12 + $0x80] sm:$0xff]  ;;  %v4369_v40 = vld [vmem:[%s6337_s12 + $0x98] sm:$0xff] }
 0x3cf   : > { %4424 = vst [vmem:[%s7078_s24 + $0x50] sm:$0xff] %v4392_v26  ;;  %v4393_v19 = vadd.f32 %v4361_v53, %v4329_v18  ;;  %v5453_v45 = vadd.f32 %v7000_v28, %v5397_v23  ;;  %v4072_v21 = vpop.f32.mrb[17].mxu1  ;;  %v4367_v26 = vld [vmem:[%s6337_s12 + $0x88] sm:$0xff] }
 0x3d0   : > { %4422 = vst [vmem:[%s7078_s24 + $0x40] sm:$0xff] %v4390_v34  ;;  %v4391_v13 = vadd.f32 %v4359_v31, %v4327_v57  ;;  %v5456_v33 = vadd.f32 %v6988_v2, %v4072_v21  ;;  %v5398_v7 = vpop.f32.mrb[18].mxu1 }
 0x3d1   : > { %4425 = vst [vmem:[%s7078_s24 + $0x58] sm:$0xff] %v4393_v19  ;;  %v4300_v50 = vadd.f32 %v5453_v45, %v7062_v58  ;;  %v5459_v27 = vadd.f32 %v7003_v46, %v5398_v7  ;;  %v4075_v36 = vpop.f32.mrb[19].mxu1 }
 0x3d2   : > { %4423 = vst [vmem:[%s7078_s24 + $0x48] sm:$0xff] %v4391_v13  ;;  %v4298_v55 = vadd.f32 %v5456_v33, %v7062_v58  ;;  %v5462_v28 = vadd.f32 %v6991_v1, %v4075_v36 }
 0x3d3   : > { %v4332_v4 = vmax.f32 %v4300_v50, 0.0  ;;  %v4301_v2 = vadd.f32 %v5459_v27, %v7062_v58  ;;  %v4372_v50 = vld [vmem:[%s6337_s12 + $0xb0] sm:$0xff] }
 0x3d4   : > { %v4330_v15 = vmax.f32 %v4298_v55, 0.0  ;;  %v4299_v35 = vadd.f32 %v5462_v28, %v7062_v58  ;;  %v4373_v28 = vld [vmem:[%s6337_s12 + $0xb8] sm:$0xff] }
 0x3d5   : > { %v4396_v12 = vadd.f32 %v4364_v37, %v4332_v4  ;;  %v4333_v46 = vmax.f32 %v4301_v2, 0.0  ;;  %v4370_v37 = vld [vmem:[%s6337_s12 + $0xa0] sm:$0xff]  ;;  %v4371_v2 = vld [vmem:[%s6337_s12 + $0xa8] sm:$0xff] }
 0x3d6   : > { %v4394_v30 = vadd.f32 %v4362_v47, %v4330_v15  ;;  %v4331_v3 = vmax.f32 %v4299_v35, 0.0  ;;  %v5401_v43 = vpop.f32.mrb[20].mxu1 }
 0x3d7   : > { %4428 = vst [vmem:[%s7078_s24 + $0x70] sm:$0xff] %v4396_v12  ;;  %v4397_v1 = vadd.f32 %v4365_v51, %v4333_v46  ;;  %v5465_v17 = vadd.f32 %v7020_v61, %v5401_v43  ;;  %v4088_v44 = vpop.f32.mrb[21].mxu1 }
 0x3d8   : > { %4426 = vst [vmem:[%s7078_s24 + $0x60] sm:$0xff] %v4394_v30  ;;  %v4395_v5 = vadd.f32 %v4363_v10, %v4331_v3  ;;  %v5468_v0 = vadd.f32 %v7012_v6, %v4088_v44  ;;  %v5402_v54 = vpop.f32.mrb[22].mxu1  ;;  %v4376_v44 = vld [vmem:[%s6337_s12 + $0xd0] sm:$0xff] }
 0x3d9   : > { %4429 = vst [vmem:[%s7078_s24 + $0x78] sm:$0xff] %v4397_v1  ;;  %v4304_v14 = vadd.f32 %v5465_v17, %v7062_v58  ;;  %v5471_v48 = vadd.f32 %v7023_v20, %v5402_v54  ;;  %v4091_v49 = vpop.f32.mrb[23].mxu1  ;;  %v4374_v54 = vld [vmem:[%s6337_s12 + $0xc0] sm:$0xff] }
 0x3da   : > { %4427 = vst [vmem:[%s7078_s24 + $0x68] sm:$0xff] %v4395_v5  ;;  %v4302_v16 = vadd.f32 %v5468_v0, %v7062_v58  ;;  %v5474_v61 = vadd.f32 %v7015_v11, %v4091_v49 }
 0x3db   : > { %v4336_v59 = vmax.f32 %v4304_v14, 0.0  ;;  %v4305_v6 = vadd.f32 %v5471_v48, %v7062_v58  ;;  %v4377_v48 = vld [vmem:[%s6337_s12 + $0xd8] sm:$0xff] }
 0x3dc   : > { %v4334_v38 = vmax.f32 %v4302_v16, 0.0  ;;  %v4303_v53 = vadd.f32 %v5474_v61, %v7062_v58  ;;  %v4375_v16 = vld [vmem:[%s6337_s12 + $0xc8] sm:$0xff] }
 0x3dd   : > { %v4400_v60 = vadd.f32 %v4368_v63, %v4336_v59  ;;  %v4337_v20 = vmax.f32 %v4305_v6, 0.0 }
 0x3de   : > { %v4398_v18 = vadd.f32 %v4366_v41, %v4334_v38  ;;  %v4335_v31 = vmax.f32 %v4303_v53, 0.0  ;;  %v5405_v34 = vpop.f32.mrb[24].mxu1 }
 0x3df   : > { %4432 = vst [vmem:[%s7078_s24 + $0x90] sm:$0xff] %v4400_v60  ;;  %v4401_v11 = vadd.f32 %v4369_v40, %v4337_v20  ;;  %v5477_v57 = vadd.f32 %v7032_v42, %v5405_v34  ;;  %v4104_v23 = vpop.f32.mrb[25].mxu1 }
 0x3e0   : > { %4430 = vst [vmem:[%s7078_s24 + $0x80] sm:$0xff] %v4398_v18  ;;  %v4399_v19 = vadd.f32 %v4367_v26, %v4335_v31  ;;  %v5480_v45 = vadd.f32 %v7026_v24, %v4104_v23  ;;  %v5406_v21 = vpop.f32.mrb[26].mxu1  ;;  %v4380_v31 = vld [vmem:[%s6337_s12 + $0xf0] sm:$0xff] }
 0x3e1   : > { %4433 = vst [vmem:[%s7078_s24 + $0x98] sm:$0xff] %v4401_v11  ;;  %v4308_v13 = vadd.f32 %v5477_v57, %v7062_v58  ;;  %v5483_v33 = vadd.f32 %v7035_v62, %v5406_v21  ;;  %v4107_v7 = vpop.f32.mrb[27].mxu1  ;;  %v4378_v57 = vld [vmem:[%s6337_s12 + $0xe0] sm:$0xff] }
 0x3e2   : > { %4431 = vst [vmem:[%s7078_s24 + $0x88] sm:$0xff] %v4399_v19  ;;  %v4306_v27 = vadd.f32 %v5480_v45, %v7062_v58  ;;  %v5486_v42 = vadd.f32 %v7029_v25, %v4107_v7  ;;  %v4381_v19 = vld [vmem:[%s6337_s12 + $0xf8] sm:$0xff] }
 0x3e3   : > { %v4340_v36 = vmax.f32 %v4308_v13, 0.0  ;;  %v4309_v24 = vadd.f32 %v5483_v33, %v7062_v58  ;;  %v4379_v13 = vld [vmem:[%s6337_s12 + $0xe8] sm:$0xff] }
 0x3e4   : > { %v4338_v55 = vmax.f32 %v4306_v27, 0.0  ;;  %v4307_v4 = vadd.f32 %v5486_v42, %v7062_v58 }
 0x3e5   : > { %v4404_v47 = vadd.f32 %v4372_v50, %v4340_v36  ;;  %v4341_v62 = vmax.f32 %v4309_v24, 0.0 }
 0x3e6   : > { %v4402_v15 = vadd.f32 %v4370_v37, %v4338_v55  ;;  %v4339_v51 = vmax.f32 %v4307_v4, 0.0  ;;  %v5409_v35 = vpop.f32.mrb[28].mxu1 }
 0x3e7   : > { %4436 = vst [vmem:[%s7078_s24 + $0xb0] sm:$0xff] %v4404_v47  ;;  %v4405_v25 = vadd.f32 %v4373_v28, %v4341_v62  ;;  %v5489_v12 = vadd.f32 %v7044_v39, %v5409_v35  ;;  %v4120_v46 = vpop.f32.mrb[29].mxu1 }
 0x3e8   : > { %4434 = vst [vmem:[%s7078_s24 + $0xa0] sm:$0xff] %v4402_v15  ;;  %v4403_v10 = vadd.f32 %v4371_v2, %v4339_v51  ;;  %v5492_v30 = vadd.f32 %v7038_v56, %v4120_v46  ;;  %v5410_v3 = vpop.f32.mrb[30].mxu1 }
 0x3e9   : > { %4437 = vst [vmem:[%s7078_s24 + $0xb8] sm:$0xff] %v4405_v25  ;;  %v4312_v43 = vadd.f32 %v5489_v12, %v7062_v58  ;;  %v5495_v1 = vadd.f32 %v7047_v52, %v5410_v3  ;;  %v4123_v17 = vpop.f32.mrb[31].mxu1 }
 0x3ea   : > { %4435 = vst [vmem:[%s7078_s24 + $0xa8] sm:$0xff] %v4403_v10  ;;  %v4310_v5 = vadd.f32 %v5492_v30, %v7062_v58  ;;  %v5498_v39 = vadd.f32 %v7041_v8, %v4123_v17 }
 0x3eb   : > { %v4344_v0 = vmax.f32 %v4312_v43, 0.0  ;;  %v4313_v56 = vadd.f32 %v5495_v1, %v7062_v58 }
 0x3ec   : > { %v4342_v14 = vmax.f32 %v4310_v5, 0.0  ;;  %v4311_v49 = vadd.f32 %v5498_v39, %v7062_v58 }
 0x3ed   : > { %v4408_v63 = vadd.f32 %v4376_v44, %v4344_v0  ;;  %v4345_v52 = vmax.f32 %v4313_v56, 0.0 }
 0x3ee   : > { %v4406_v61 = vadd.f32 %v4374_v54, %v4342_v14  ;;  %v4343_v59 = vmax.f32 %v4311_v49, 0.0  ;;  %v5413_v41 = vpop.f32.mrb[32].mxu1 }
 0x3ef   : > { %4440 = vst [vmem:[%s7078_s24 + $0xd0] sm:$0xff] %v4408_v63  ;;  %v4409_v8 = vadd.f32 %v4377_v48, %v4345_v52  ;;  %v5501_v6 = vadd.f32 %v7055_v32, %v5413_v41  ;;  %v4136_v38 = vpop.f32.mrb[33].mxu1 }
 0x3f0   : > { %4438 = vst [vmem:[%s7078_s24 + $0xc0] sm:$0xff] %v4406_v61  ;;  %v4407_v40 = vadd.f32 %v4375_v16, %v4343_v59  ;;  %v5504_v53 = vadd.f32 %v7050_v9, %v4136_v38  ;;  %v5414_v60 = vpop.f32.mrb[34].mxu1 }
 0x3f1   : > { %4441 = vst [vmem:[%s7078_s24 + $0xd8] sm:$0xff] %v4409_v8  ;;  %v4316_v20 = vadd.f32 %v5501_v6, %v7062_v58  ;;  %v5507_v26 = vadd.f32 %v7057_v29, %v5414_v60  ;;  %v4139_v18 = vpop.f32.mrb[35].mxu1 }
 0x3f2   : > { %4439 = vst [vmem:[%s7078_s24 + $0xc8] sm:$0xff] %v4407_v40  ;;  %v4314_v32 = vadd.f32 %v5504_v53, %v7062_v58  ;;  %v5510_v34 = vadd.f32 %v7053_v22, %v4139_v18 }
 0x3f3   : > { %v4348_v11 = vmax.f32 %v4316_v20, 0.0  ;;  %v4317_v9 = vadd.f32 %v5507_v26, %v7062_v58 }
 0x3f4   : > { %v4346_v23 = vmax.f32 %v4314_v32, 0.0  ;;  %v4315_v29 = vadd.f32 %v5510_v34, %v7062_v58 }
 0x3f5   : > { %v4412_v45 = vadd.f32 %v4380_v31, %v4348_v11  ;;  %v4349_v21 = vmax.f32 %v4317_v9, 0.0 }
 0x3f6   : > { %v4410_v33 = vadd.f32 %v4378_v57, %v4346_v23  ;;  %v4347_v22 = vmax.f32 %v4315_v29, 0.0 }
 0x3f7   : > { %4444 = vst [vmem:[%s7078_s24 + $0xf0] sm:$0xff] %v4412_v45  ;;  %v4413_v7 = vadd.f32 %v4381_v19, %v4349_v21 }
 0x3f8   : > { %4442 = vst [vmem:[%s7078_s24 + $0xe0] sm:$0xff] %v4410_v33  ;;  %v4411_v58 = vadd.f32 %v4379_v13, %v4347_v22 }
 0x3f9   : > { %4445 = vst [vmem:[%s7078_s24 + $0xf8] sm:$0xff] %v4413_v7 }
 0x3fa   : > { %4443 = vst [vmem:[%s7078_s24 + $0xe8] sm:$0xff] %v4411_v58 }
 0x3fb   : > { %5917 = shalt.err (!%p5914_p9)
}
 0x3fc   : > { %s5918_s1 = scalar_lea.hbm %s7198_s8, 4096  ;;  %s5922_s13 = scalar_lea.hbm %s7317_s20, 8192 }
 0x3fd   : > { %p5919_p6 = scmp.ne.s32.totalorder %s7198_s8, %s5918_s1  ;;  %p5923_p3 = scmp.lt.u32.totalorder %s7198_s8, %s7317_s20 }
 0x3fe   : > { %p5924_p7 = scmp.lt.u32.totalorder %s5922_s13, %s5918_s1  ;;  %p5926_p2 = scmp.lt.u32.totalorder %s5918_s1, %s7198_s8 }
 0x3ff   : > { %p5920_p4 = pnand %p5919_p6, %p7318_p11 }
 0x400   : > { %p5925_p12 = por %p5924_p7, %p5923_p3 }
 0x401   : > { %p5921_p10 = pneg %p5920_p4 }
 0x402   : > { %p5927_p0 = por %p5926_p2, %p5925_p12 }
 0x404   : > { %p5928_p8 = pnand %p5927_p0, %p5921_p10 }
 0x406   : > { %5931 = shalt.err (!%p5928_p8)
}
 0x407   : > { %s6010_s15 = smov 128   ;;  %s6011_s30 = smov 8  }
 0x408   : > { %5589 = dma.vmem_to_hbm [thread:$0]  (%p7318_p11), %s7200_s26, 4096, %s7198_s8, %s4447_s27, %s6010_s15, %s6010_s15, %s6011_s30  }
 0x409 PF: > { %s7319_s10 = sld [smem:[#allocation19_spill]]  ;;  %s7320_s23 = sld [smem:[#allocation23_spill]] }
 0x40a   : > { %s7321_s7 = sld [smem:[#allocation22_spill]] }
 0x40f   : > { %s4478_s24 = sand.u32 1, %s7319_s10   ;;  %p7322_p1 = scmp.ne.s32.totalorder %s7320_s23, 0 }
 0x410   : > { %p7323_p13 = scmp.ge.s32.totalorder %s7321_s7, 2  ;;  %s4479_s9 = scalar_lea.sflag [#allocation7], %s4478_s24 }
 0x412   : > { %p5609_p5 = pnand %p7323_p13, %p7322_p1 }
 0x414   : > { %5969 = dma.done.wait (!%p5609_p5), %s4479_s9, 4096  }
 0x415   : > { %5971 = vsyncadd (!%p5609_p5), %s4479_s9, 4294963200  ;;  %s27_s29 = sadd.s32 1, %s7321_s7   ;;  %s7324_s21 = sld [smem:[#allocation20_spill]] }
 0x416   : > { %p24_p9 = scmp.ge.s32.totalorder %s27_s29, 4   ;;  %s7325_s26 = sld [smem:[#allocation25_spill]] }
 0x417   : > { %s7326_s27 = sld [smem:[#allocation21_spill]]  ;;  %s7327_s28 = sld [smem:[#allocation24_spill]] }
 0x418   : > { %s7328_s24 = smov %s5978_s25  ;;  %26 = sbr.rel (!%p24_p9) target bundleno = 13 (0xd), region = 131 }
 0x41b   : > { %s7329_s25 = smov %s7324_s21 }
 0x41f   :  { %4484 = vsyncpa [#allocation6], 1 }
 0x420   :  { %4486 = vsyncpa [#allocation6 + $0x1], 1 }
 0x421   :  { %4487 = vsyncpa [#allocation9], 1 }
 0x422   :  { %4489 = vsyncpa [#allocation9 + $0x1], 1 }
 0x423   :  { %4490 = vsyncpa [#allocation12], 1 }
 0x424   :  { %4491 = vsyncpa [#allocation7], 1 }
 0x425   :  { %4493 = vsyncpa [#allocation7 + $0x1], 1 }

</bundles_post_ra>
